<compile_context>
chip_gen: v7x
topology: tpu7x:2x2x1
jax: 0.10.0
libtpu: 0.0.40
codegen_flags: <defaults>
</compile_context>

<pallas_src>
import math

import numpy as np

import jax
import jax.numpy as jnp
from jax.experimental import pallas as pl
from jax.experimental.pallas import tpu as pltpu

NUM_CLASSES = 10
C1 = 10                 # conv1 output channels
C2 = 30                 # conv2 output channels
K = 5                   # conv kernel size
P1_HW = 14              # conv1 map after 2x2 pool (28 -> 14)
SLOT_PAD = 256          # per-image spatial slots (196 valid, padded to 2 lane tiles)
FEAT_W = C1 * SLOT_PAD  # 2560 flattened conv1 features per image
SHIFT_PAD = 128         # lane headroom for the pool-phase shifts (max shift 15)
G_PAD = 768             # conv2 output units 30*5*5 = 750, padded to 6*128
TG = 256                # conv2 output-column tile (grid = G_PAD // TG steps)
H_PAD = 128             # fc1 hidden 100 -> 128
CLS_PAD = 128           # classes 10 -> 128
POOL2_SHIFTS = (0, 1, 14, 15)   # 2x2-pool phase offsets in the 14-wide conv1 map


# ---------------------------------------------------------------------------
# The single fused kernel (grid over conv2 output-column tiles).
# ---------------------------------------------------------------------------
def _make_fused_kernel(n_img, np_rows, n_g_tiles):
    span = n_img * SLOT_PAD     # lanes per pool phase of the conv1 output

    def kernel(pt_ref, w1_ref, w2d_ref, b2_ref, wfc1_ref, bfc1_ref,
               wfc2_ref, bfc2_ref, out_ref, lhs_ref, h_ref):
        j = pl.program_id(0)

        # ---- step 0 only: conv1 (+bias folded) + 2x2 max-pool + ReLU,
        #      vectorized relayout, and build the conv2 LHS (bf16 scratch) ----
        @pl.when(j == 0)
        def _():
            # (16, 32) bf16 @ (32, 4*N*256) bf16 -> (16, 4*N*256) f32
            y1 = jnp.dot(w1_ref[...], pt_ref[...],
                         preferred_element_type=jnp.float32)
            z = y1[:, 0:span]
            for p in range(1, 4):                    # max over the 4 pool phases
                z = jnp.maximum(z, y1[:, p * span:(p + 1) * span])
            a1 = jnp.maximum(z, 0.0)                 # (16, N*256) f32

            # Relayout (vectorized, in registers):
            #   rows = images, lanes = (channel, spatial-slot).
            rows = []
            for n in range(n_img):
                rows.append(jnp.concatenate(
                    [a1[ci:ci + 1, n * SLOT_PAD:(n + 1) * SLOT_PAD]
                     for ci in range(C1)], axis=1))          # (1, FEAT_W)
            if np_rows > n_img:
                rows.append(jnp.zeros((np_rows - n_img, FEAT_W), jnp.float32))
            x = jnp.concatenate(rows, axis=0)                 # (np_rows, FEAT_W)
            # Zero lane headroom so the shift-15 slice reads finite zeros
            # (those lanes hit zero rows of w2d -- invariant, see header).
            x_ext = jnp.concatenate(
                [x, jnp.zeros((np_rows, SHIFT_PAD), jnp.float32)], axis=1)

            # conv2+pool LHS: 4 lane-shifted copies stacked on rows, stored
            # once in bf16 and reused by every G tile of the grid.
            for pi, s in enumerate(POOL2_SHIFTS):
                lhs_ref[pi * np_rows:(pi + 1) * np_rows, :] = (
                    x_ext[:, s:s + FEAT_W].astype(jnp.bfloat16))

            # fc1 accumulator init.
            h_ref[...] = jnp.zeros_like(h_ref)

        # ---- every step: one G tile of conv2 + pool + bias + ReLU, and the
        #      matching fc1 partial sum (reduction over G tiles) --------------
        y2 = jnp.dot(lhs_ref[...], w2d_ref[...],
                     preferred_element_type=jnp.float32)      # (4*np, TG)
        z2 = jnp.maximum(
            jnp.maximum(y2[0:np_rows], y2[np_rows:2 * np_rows]),
            jnp.maximum(y2[2 * np_rows:3 * np_rows], y2[3 * np_rows:4 * np_rows]))
        a2 = jnp.maximum(z2 + b2_ref[...], 0.0)               # (np, TG)
        h_ref[...] += jnp.dot(a2.astype(jnp.bfloat16), wfc1_ref[...],
                              preferred_element_type=jnp.float32)

        # ---- last step: fc1 bias+ReLU, fc2, masked log_softmax --------------
        @pl.when(j == n_g_tiles - 1)
        def _():
            h = jnp.maximum(h_ref[...] + bfc1_ref[...], 0.0)
            logits = (jnp.dot(h.astype(jnp.bfloat16), wfc2_ref[...],
                              preferred_element_type=jnp.float32)
                      + bfc2_ref[...])
            col = jax.lax.broadcasted_iota(jnp.int32, logits.shape, 1)
            masked = jnp.where(col < NUM_CLASSES, logits, -1e30)
            m = jnp.max(masked, axis=-1, keepdims=True)
            lse = m + jnp.log(jnp.sum(jnp.exp(masked - m), axis=-1, keepdims=True))
            out_ref[...] = logits - lse

    return kernel


# ---------------------------------------------------------------------------
# Host-side glue (input prep is cheap XLA inside the same jit; weight prep
# runs once in numpy).
# ---------------------------------------------------------------------------
def _build_conv1_patches(x):
    """im2col for conv1 from the raw (N,1,32,32) input, transposed so the
    contraction dim (25 taps + 1 bias tap) is on sublanes and
    (pool-phase, image, spatial-slot) is stacked on lanes."""
    n = x.shape[0]
    taps = []
    for kh in range(K):
        for kw in range(K):
            sh = x[:, 0, kh:kh + 28, kw:kw + 28]            # (N, 28, 28)
            phases = []
            for a in range(2):
                for b in range(2):
                    sub = sh[:, a::2, b::2].reshape(n, P1_HW * P1_HW)
                    sub = jnp.pad(sub, ((0, 0), (0, SLOT_PAD - P1_HW * P1_HW)))
                    phases.append(sub)                      # (N, 256)
            taps.append(jnp.stack(phases, axis=0))          # (4, N, 256)
    pt = jnp.stack(taps, axis=0)                            # (25, 4, N, 256)
    ones = jnp.ones((1, 4, n, SLOT_PAD), x.dtype)           # bias tap
    zeros = jnp.zeros((32 - K * K - 1, 4, n, SLOT_PAD), x.dtype)
    pt = jnp.concatenate([pt, ones, zeros], axis=0)         # (32, 4, N, 256)
    return pt.reshape(32, 4 * n * SLOT_PAD).astype(jnp.bfloat16)


def prepare_params(params):
    """One-time re-layout of the PyTorch-style parameters for the fused kernel."""
    w1 = np.asarray(params["conv1_w"], np.float32)     # (10, 1, 5, 5)
    b1 = np.asarray(params["conv1_b"], np.float32)
    w2 = np.asarray(params["conv2_w"], np.float32)     # (30, 10, 5, 5)
    b2 = np.asarray(params["conv2_b"], np.float32)
    fc1_w = np.asarray(params["fc1_w"], np.float32)    # (100, 750)
    fc1_b = np.asarray(params["fc1_b"], np.float32)
    fc2_w = np.asarray(params["fc2_w"], np.float32)    # (10, 100)
    fc2_b = np.asarray(params["fc2_b"], np.float32)

    # conv1 as (Cout-sublane, tap-lane) matrix; bias folded in at tap 25.
    w1m = np.zeros((16, 32), np.float32)
    w1m[:C1, :K * K] = w1.reshape(C1, K * K)
    w1m[:C1, K * K] = b1

    # conv2 (pool phase (0,0)) as a dense (input-feature, output-unit) matrix.
    #   input feature index  = ci*256 + (row*14 + col)    of the pooled conv1 map
    #   output unit index    = co*25 + r*5 + c            (== torch .view(-1,750))
    # Rows for padded slots (196..255 per channel) stay exactly zero -- required
    # by the lane-shift trick in the kernel.
    wd = np.zeros((FEAT_W, G_PAD), np.float32)
    ci_rows = np.arange(C1) * SLOT_PAD
    co_cols = np.arange(C2) * (5 * 5)
    for kh in range(K):
        for kw in range(K):
            for r in range(5):
                for c in range(5):
                    m = (2 * r + kh) * P1_HW + (2 * c + kw)
                    wd[(ci_rows + m)[:, None],
                       (co_cols + r * 5 + c)[None, :]] = w2[:, :, kh, kw].T
    b2_row = np.zeros((1, G_PAD), np.float32)
    b2_row[0, :C2 * 25] = np.repeat(b2, 25)

    wfc1 = np.zeros((G_PAD, H_PAD), np.float32)
    wfc1[:C2 * 25, :100] = fc1_w.T
    bfc1 = np.zeros((1, H_PAD), np.float32)
    bfc1[0, :100] = fc1_b

    wfc2 = np.zeros((H_PAD, CLS_PAD), np.float32)
    wfc2[:100, :NUM_CLASSES] = fc2_w.T
    bfc2 = np.zeros((1, CLS_PAD), np.float32)
    bfc2[0, :NUM_CLASSES] = fc2_b

    return {
        "w1": jnp.asarray(w1m, jnp.bfloat16),
        "w2d": jnp.asarray(wd, jnp.bfloat16),
        "b2": jnp.asarray(b2_row),                     # f32
        "wfc1": jnp.asarray(wfc1, jnp.bfloat16),       # bf16 fc weights (perf)
        "bfc1": jnp.asarray(bfc1),                     # f32
        "wfc2": jnp.asarray(wfc2, jnp.bfloat16),
        "bfc2": jnp.asarray(bfc2),                     # f32
    }


def cnn_forward(x, prep):
    # x: (N, 1, 32, 32) -> log-probs (N, 10).  Single fused pallas_call with a
    # grid over the conv2 output-column tiles so the big w2d DMA pipelines.
    n = x.shape[0]
    np_rows = ((n + 7) // 8) * 8
    n_g_tiles = G_PAD // TG
    pt = _build_conv1_patches(x)
    kernel = _make_fused_kernel(n, np_rows, n_g_tiles)
    out = pl.pallas_call(
        kernel,
        out_shape=jax.ShapeDtypeStruct((np_rows, CLS_PAD), jnp.float32),
        grid=(n_g_tiles,),
        in_specs=[
            pl.BlockSpec((32, 4 * n * SLOT_PAD), lambda j: (0, 0)),  # conv1 patches^T (bf16)
            pl.BlockSpec((16, 32), lambda j: (0, 0)),                # conv1 weight (+bias tap)
            pl.BlockSpec((FEAT_W, TG), lambda j: (0, j)),            # conv2+pool weight tile (bf16)
            pl.BlockSpec((1, TG), lambda j: (0, j)),                 # conv2 bias row tile
            pl.BlockSpec((TG, H_PAD), lambda j: (j, 0)),             # fc1 weight tile (bf16)
            pl.BlockSpec((1, H_PAD), lambda j: (0, 0)),              # fc1 bias row
            pl.BlockSpec((H_PAD, CLS_PAD), lambda j: (0, 0)),        # fc2 weight (bf16)
            pl.BlockSpec((1, CLS_PAD), lambda j: (0, 0)),            # fc2 bias row
        ],
        out_specs=pl.BlockSpec((np_rows, CLS_PAD), lambda j: (0, 0)),
        scratch_shapes=[
            pltpu.VMEM((4 * np_rows, FEAT_W), jnp.bfloat16),   # conv2 LHS (built once)
            pltpu.VMEM((np_rows, H_PAD), jnp.float32),         # fc1 accumulator
        ],
        compiler_params=pltpu.CompilerParams(
            dimension_semantics=("arbitrary",)),   # G axis carries scratch state
    )(pt, prep["w1"], prep["w2d"], prep["b2"], prep["wfc1"],
      prep["bfc1"], prep["wfc2"], prep["bfc2"])
    return out[:n, :NUM_CLASSES]


# ---------------------------------------------------------------------------
# Pure-JAX reference (mirrors the PyTorch module in eval mode) + init.
# ---------------------------------------------------------------------------
def reference_forward(x, params):
    dn = ("NCHW", "OIHW", "NCHW")
    with jax.default_matmul_precision("float32"):
        y = jax.lax.conv_general_dilated(x, params["conv1_w"], (1, 1), "VALID",
                                         dimension_numbers=dn)
        y = y + params["conv1_b"][None, :, None, None]
        y = jax.lax.reduce_window(y, -jnp.inf, jax.lax.max,
                                  (1, 1, 2, 2), (1, 1, 2, 2), "VALID")
        y = jnp.maximum(y, 0.0)
        y = jax.lax.conv_general_dilated(y, params["conv2_w"], (1, 1), "VALID",
                                         dimension_numbers=dn)
        y = y + params["conv2_b"][None, :, None, None]
        y = jax.lax.reduce_window(y, -jnp.inf, jax.lax.max,
                                  (1, 1, 2, 2), (1, 1, 2, 2), "VALID")
        y = jnp.maximum(y, 0.0)
        y = y.reshape(y.shape[0], -1)
        y = jnp.maximum(y @ params["fc1_w"].T + params["fc1_b"], 0.0)
        logits = y @ params["fc2_w"].T + params["fc2_b"]
    return jax.nn.log_softmax(logits, axis=-1)


def init_params(key):
    ks = jax.random.split(key, 8)

    def u(k, shape, fan_in):
        bound = 1.0 / math.sqrt(fan_in)
        return jax.random.uniform(k, shape, jnp.float32, -bound, bound)

    return {
        "conv1_w": u(ks[0], (10, 1, 5, 5), 1 * 5 * 5),
        "conv1_b": u(ks[1], (10,), 1 * 5 * 5),
        "conv2_w": u(ks[2], (30, 10, 5, 5), 10 * 5 * 5),
        "conv2_b": u(ks[3], (30,), 10 * 5 * 5),
        "fc1_w": u(ks[4], (100, 750), 750),
        "fc1_b": u(ks[5], (100,), 750),
        "fc2_w": u(ks[6], (10, 100), 100),
        "fc2_b": u(ks[7], (10,), 100),
    }


if __name__ == "__main__":
    key = jax.random.PRNGKey(0)
    pkey, xkey = jax.random.split(key)
    params = init_params(pkey)
    # 32x32 single-channel input (fc1 expects 30*5*5 after two conv+pool stages).
    x = jax.random.normal(xkey, (2, 1, 32, 32), dtype=jnp.float32)

    prep = prepare_params(params)
    out = jax.jit(cnn_forward)(x, prep)
    out = jax.block_until_ready(out)

    assert out.shape == (2, NUM_CLASSES), out.shape
    # log_softmax sanity: exp(out) rows sum to 1.
    row_sums = jnp.sum(jnp.exp(out), axis=-1)
    assert bool(jnp.all(jnp.abs(row_sums - 1.0) < 1e-4)), row_sums
    # End-to-end check vs. a pure-JAX f32 reference (kernel uses bf16 matmul inputs).
    ref = reference_forward(x, params)
    err = float(jnp.max(jnp.abs(out - ref)))
    assert err < 0.1, err
    print("KERNEL_OK")
</pallas_src>

<mosaic_0001>
module attributes {stable_mosaic.version = 11 : i64} {
  func.func @kernel(%arg0: i32, %arg1: memref<32x2048xbf16, #tpu.memory_space<vmem>>, %arg2: memref<16x32xbf16, #tpu.memory_space<vmem>>, %arg3: memref<2560x256xbf16, #tpu.memory_space<vmem>>, %arg4: memref<1x256xf32, #tpu.memory_space<vmem>>, %arg5: memref<256x128xbf16, #tpu.memory_space<vmem>>, %arg6: memref<1x128xf32, #tpu.memory_space<vmem>>, %arg7: memref<128x128xbf16, #tpu.memory_space<vmem>>, %arg8: memref<1x128xf32, #tpu.memory_space<vmem>>, %arg9: memref<8x128xf32, #tpu.memory_space<vmem>>, %arg10: memref<32x2560xbf16, #tpu.memory_space<vmem>>, %arg11: memref<8x128xf32, #tpu.memory_space<vmem>>) attributes {dimension_semantics = [#tpu.dimension_semantics<arbitrary>], iteration_bounds = array<i64: 3>, scalar_prefetch = 0 : i64, scratch_operands = 2 : i64, tpu.core_type = #tpu.core_type<tc>, window_params = [{pipeline_mode = #tpu.pipeline_mode<synchronous>, transform_indices = @transform_0, window_bounds = array<i64: 32, 2048>}, {pipeline_mode = #tpu.pipeline_mode<synchronous>, transform_indices = @transform_1, window_bounds = array<i64: 16, 32>}, {transform_indices = @transform_2, window_bounds = array<i64: 2560, 256>}, {transform_indices = @transform_3, window_bounds = array<i64: 1, 256>}, {transform_indices = @transform_4, window_bounds = array<i64: 256, 128>}, {pipeline_mode = #tpu.pipeline_mode<synchronous>, transform_indices = @transform_5, window_bounds = array<i64: 1, 128>}, {pipeline_mode = #tpu.pipeline_mode<synchronous>, transform_indices = @transform_6, window_bounds = array<i64: 128, 128>}, {pipeline_mode = #tpu.pipeline_mode<synchronous>, transform_indices = @transform_7, window_bounds = array<i64: 1, 128>}, {pipeline_mode = #tpu.pipeline_mode<synchronous>, transform_indices = @transform_8, window_bounds = array<i64: 8, 128>}]} {
    %c0_i32 = arith.constant 0 : i32
    %0 = arith.cmpi eq, %arg0, %c0_i32 : i32
    %1 = arith.extui %0 : i1 to i32
    %c0_i32_0 = arith.constant 0 : i32
    %2 = arith.cmpi ne, %1, %c0_i32_0 : i32
    scf.if %2 {
      %c0_15 = arith.constant 0 : index
      %c0_16 = arith.constant 0 : index
      %27 = vector.load %arg2[%c0_15, %c0_16] : memref<16x32xbf16, #tpu.memory_space<vmem>>, vector<16x32xbf16>
      %c0_17 = arith.constant 0 : index
      %c0_18 = arith.constant 0 : index
      %28 = vector.load %arg1[%c0_17, %c0_18] : memref<32x2048xbf16, #tpu.memory_space<vmem>>, vector<32x2048xbf16>
      %cst_19 = arith.constant dense<0.000000e+00> : vector<16x2048xf32>
      %29 = tpu.matmul %27, %28, %cst_19 {dimension_numbers = #tpu.dot_dimension_numbers<[1], [0], [0], [1], [0, 0, 1, 1], [], []>} : vector<16x32xbf16>, vector<32x2048xbf16>, vector<16x2048xf32> -> vector<16x2048xf32>
      %30 = vector.extract_strided_slice %29 {offsets = [0, 0], sizes = [16, 512], strides = [1, 1]} : vector<16x2048xf32> to vector<16x512xf32>
      %31 = vector.extract_strided_slice %29 {offsets = [0, 512], sizes = [16, 512], strides = [1, 1]} : vector<16x2048xf32> to vector<16x512xf32>
      %32 = arith.maximumf %30, %31 : vector<16x512xf32>
      %33 = vector.extract_strided_slice %29 {offsets = [0, 1024], sizes = [16, 512], strides = [1, 1]} : vector<16x2048xf32> to vector<16x512xf32>
      %34 = arith.maximumf %32, %33 : vector<16x512xf32>
      %35 = vector.extract_strided_slice %29 {offsets = [0, 1536], sizes = [16, 512], strides = [1, 1]} : vector<16x2048xf32> to vector<16x512xf32>
      %36 = arith.maximumf %34, %35 : vector<16x512xf32>
      %cst_20 = arith.constant 0.000000e+00 : f32
      %37 = vector.broadcast %cst_20 : f32 to vector<16x512xf32>
      %38 = arith.maximumf %36, %37 : vector<16x512xf32>
      %39 = vector.extract_strided_slice %38 {offsets = [0, 0], sizes = [1, 256], strides = [1, 1]} : vector<16x512xf32> to vector<1x256xf32>
      %40 = vector.extract_strided_slice %38 {offsets = [1, 0], sizes = [1, 256], strides = [1, 1]} : vector<16x512xf32> to vector<1x256xf32>
      %41 = vector.extract_strided_slice %38 {offsets = [2, 0], sizes = [1, 256], strides = [1, 1]} : vector<16x512xf32> to vector<1x256xf32>
      %42 = vector.extract_strided_slice %38 {offsets = [3, 0], sizes = [1, 256], strides = [1, 1]} : vector<16x512xf32> to vector<1x256xf32>
      %43 = vector.extract_strided_slice %38 {offsets = [4, 0], sizes = [1, 256], strides = [1, 1]} : vector<16x512xf32> to vector<1x256xf32>
      %44 = vector.extract_strided_slice %38 {offsets = [5, 0], sizes = [1, 256], strides = [1, 1]} : vector<16x512xf32> to vector<1x256xf32>
      %45 = vector.extract_strided_slice %38 {offsets = [6, 0], sizes = [1, 256], strides = [1, 1]} : vector<16x512xf32> to vector<1x256xf32>
      %46 = vector.extract_strided_slice %38 {offsets = [7, 0], sizes = [1, 256], strides = [1, 1]} : vector<16x512xf32> to vector<1x256xf32>
      %47 = vector.extract_strided_slice %38 {offsets = [8, 0], sizes = [1, 256], strides = [1, 1]} : vector<16x512xf32> to vector<1x256xf32>
      %48 = vector.extract_strided_slice %38 {offsets = [9, 0], sizes = [1, 256], strides = [1, 1]} : vector<16x512xf32> to vector<1x256xf32>
      %49 = tpu.concatenate %39, %40, %41, %42, %43, %44, %45, %46, %47, %48 in 1 : vector<1x256xf32>, vector<1x256xf32>, vector<1x256xf32>, vector<1x256xf32>, vector<1x256xf32>, vector<1x256xf32>, vector<1x256xf32>, vector<1x256xf32>, vector<1x256xf32>, vector<1x256xf32> -> vector<1x2560xf32>
      %50 = vector.extract_strided_slice %38 {offsets = [0, 256], sizes = [1, 256], strides = [1, 1]} : vector<16x512xf32> to vector<1x256xf32>
      %51 = vector.extract_strided_slice %38 {offsets = [1, 256], sizes = [1, 256], strides = [1, 1]} : vector<16x512xf32> to vector<1x256xf32>
      %52 = vector.extract_strided_slice %38 {offsets = [2, 256], sizes = [1, 256], strides = [1, 1]} : vector<16x512xf32> to vector<1x256xf32>
      %53 = vector.extract_strided_slice %38 {offsets = [3, 256], sizes = [1, 256], strides = [1, 1]} : vector<16x512xf32> to vector<1x256xf32>
      %54 = vector.extract_strided_slice %38 {offsets = [4, 256], sizes = [1, 256], strides = [1, 1]} : vector<16x512xf32> to vector<1x256xf32>
      %55 = vector.extract_strided_slice %38 {offsets = [5, 256], sizes = [1, 256], strides = [1, 1]} : vector<16x512xf32> to vector<1x256xf32>
      %56 = vector.extract_strided_slice %38 {offsets = [6, 256], sizes = [1, 256], strides = [1, 1]} : vector<16x512xf32> to vector<1x256xf32>
      %57 = vector.extract_strided_slice %38 {offsets = [7, 256], sizes = [1, 256], strides = [1, 1]} : vector<16x512xf32> to vector<1x256xf32>
      %58 = vector.extract_strided_slice %38 {offsets = [8, 256], sizes = [1, 256], strides = [1, 1]} : vector<16x512xf32> to vector<1x256xf32>
      %59 = vector.extract_strided_slice %38 {offsets = [9, 256], sizes = [1, 256], strides = [1, 1]} : vector<16x512xf32> to vector<1x256xf32>
      %60 = tpu.concatenate %50, %51, %52, %53, %54, %55, %56, %57, %58, %59 in 1 : vector<1x256xf32>, vector<1x256xf32>, vector<1x256xf32>, vector<1x256xf32>, vector<1x256xf32>, vector<1x256xf32>, vector<1x256xf32>, vector<1x256xf32>, vector<1x256xf32>, vector<1x256xf32> -> vector<1x2560xf32>
      %cst_21 = arith.constant 0.000000e+00 : f32
      %61 = vector.broadcast %cst_21 : f32 to vector<6x2560xf32>
      %62 = tpu.concatenate %49, %60, %61 in 0 : vector<1x2560xf32>, vector<1x2560xf32>, vector<6x2560xf32> -> vector<8x2560xf32>
      %cst_22 = arith.constant 0.000000e+00 : f32
      %63 = vector.broadcast %cst_22 : f32 to vector<8x128xf32>
      %64 = tpu.concatenate %62, %63 in 1 : vector<8x2560xf32>, vector<8x128xf32> -> vector<8x2688xf32>
      %65 = vector.extract_strided_slice %64 {offsets = [0, 0], sizes = [8, 2560], strides = [1, 1]} : vector<8x2688xf32> to vector<8x2560xf32>
      %66 = arith.truncf %65 : vector<8x2560xf32> to vector<8x2560xbf16>
      %c0_23 = arith.constant 0 : index
      %c0_24 = arith.constant 0 : index
      %67 = vector.load %arg10[%c0_23, %c0_24] : memref<32x2560xbf16, #tpu.memory_space<vmem>>, vector<8x2560xbf16>
      tpu.vector_store %arg10[%c0_23, %c0_24], %66 {strides = array<i32>} : memref<32x2560xbf16, #tpu.memory_space<vmem>>, vector<8x2560xbf16>,
      %68 = vector.extract_strided_slice %64 {offsets = [0, 1], sizes = [8, 2560], strides = [1, 1]} : vector<8x2688xf32> to vector<8x2560xf32>
      %69 = arith.truncf %68 : vector<8x2560xf32> to vector<8x2560xbf16>
      %c8 = arith.constant 8 : index
      %c0_25 = arith.constant 0 : index
      %70 = vector.load %arg10[%c8, %c0_25] : memref<32x2560xbf16, #tpu.memory_space<vmem>>, vector<8x2560xbf16>
      tpu.vector_store %arg10[%c8, %c0_25], %69 {strides = array<i32>} : memref<32x2560xbf16, #tpu.memory_space<vmem>>, vector<8x2560xbf16>,
      %71 = vector.extract_strided_slice %64 {offsets = [0, 14], sizes = [8, 2560], strides = [1, 1]} : vector<8x2688xf32> to vector<8x2560xf32>
      %72 = arith.truncf %71 : vector<8x2560xf32> to vector<8x2560xbf16>
      %c16 = arith.constant 16 : index
      %c0_26 = arith.constant 0 : index
      %73 = vector.load %arg10[%c16, %c0_26] : memref<32x2560xbf16, #tpu.memory_space<vmem>>, vector<8x2560xbf16>
      tpu.vector_store %arg10[%c16, %c0_26], %72 {strides = array<i32>} : memref<32x2560xbf16, #tpu.memory_space<vmem>>, vector<8x2560xbf16>,
      %74 = vector.extract_strided_slice %64 {offsets = [0, 15], sizes = [8, 2560], strides = [1, 1]} : vector<8x2688xf32> to vector<8x2560xf32>
      %75 = arith.truncf %74 : vector<8x2560xf32> to vector<8x2560xbf16>
      %c24 = arith.constant 24 : index
      %c0_27 = arith.constant 0 : index
      %76 = vector.load %arg10[%c24, %c0_27] : memref<32x2560xbf16, #tpu.memory_space<vmem>>, vector<8x2560xbf16>
      tpu.vector_store %arg10[%c24, %c0_27], %75 {strides = array<i32>} : memref<32x2560xbf16, #tpu.memory_space<vmem>>, vector<8x2560xbf16>,
      %cst_28 = arith.constant 0.000000e+00 : f32
      %77 = vector.broadcast %cst_28 : f32 to vector<8x128xf32>
      %c0_29 = arith.constant 0 : index
      %c0_30 = arith.constant 0 : index
      %78 = vector.load %arg11[%c0_29, %c0_30] : memref<8x128xf32, #tpu.memory_space<vmem>>, vector<8x128xf32>
      tpu.vector_store %arg11[%c0_29, %c0_30], %77 {strides = array<i32>} : memref<8x128xf32, #tpu.memory_space<vmem>>, vector<8x128xf32>,
    } else {
    }
    %c0 = arith.constant 0 : index
    %c0_1 = arith.constant 0 : index
    %3 = vector.load %arg10[%c0, %c0_1] : memref<32x2560xbf16, #tpu.memory_space<vmem>>, vector<32x2560xbf16>
    %c0_2 = arith.constant 0 : index
    %c0_3 = arith.constant 0 : index
    %4 = vector.load %arg3[%c0_2, %c0_3] : memref<2560x256xbf16, #tpu.memory_space<vmem>>, vector<2560x256xbf16>
    %cst = arith.constant dense<0.000000e+00> : vector<32x256xf32>
    %5 = tpu.matmul %3, %4, %cst {dimension_numbers = #tpu.dot_dimension_numbers<[1], [0], [0], [1], [0, 0, 1, 1], [], []>} : vector<32x2560xbf16>, vector<2560x256xbf16>, vector<32x256xf32> -> vector<32x256xf32>
    %6 = vector.extract_strided_slice %5 {offsets = [0, 0], sizes = [8, 256], strides = [1, 1]} : vector<32x256xf32> to vector<8x256xf32>
    %7 = vector.extract_strided_slice %5 {offsets = [8, 0], sizes = [8, 256], strides = [1, 1]} : vector<32x256xf32> to vector<8x256xf32>
    %8 = arith.maximumf %6, %7 : vector<8x256xf32>
    %9 = vector.extract_strided_slice %5 {offsets = [16, 0], sizes = [8, 256], strides = [1, 1]} : vector<32x256xf32> to vector<8x256xf32>
    %10 = vector.extract_strided_slice %5 {offsets = [24, 0], sizes = [8, 256], strides = [1, 1]} : vector<32x256xf32> to vector<8x256xf32>
    %11 = arith.maximumf %9, %10 : vector<8x256xf32>
    %12 = arith.maximumf %8, %11 : vector<8x256xf32>
    %c0_4 = arith.constant 0 : index
    %c0_5 = arith.constant 0 : index
    %13 = vector.load %arg4[%c0_4, %c0_5] : memref<1x256xf32, #tpu.memory_space<vmem>>, vector<1x256xf32>
    %14 = vector.broadcast %13 : vector<1x256xf32> to vector<8x256xf32>
    %15 = arith.addf %12, %14 : vector<8x256xf32>
    %cst_6 = arith.constant 0.000000e+00 : f32
    %16 = vector.broadcast %cst_6 : f32 to vector<8x256xf32>
    %17 = arith.maximumf %15, %16 : vector<8x256xf32>
    %c0_7 = arith.constant 0 : index
    %c0_8 = arith.constant 0 : index
    %18 = vector.load %arg11[%c0_7, %c0_8] : memref<8x128xf32, #tpu.memory_space<vmem>>, vector<8x128xf32>
    %19 = arith.truncf %17 : vector<8x256xf32> to vector<8x256xbf16>
    %c0_9 = arith.constant 0 : index
    %c0_10 = arith.constant 0 : index
    %20 = vector.load %arg5[%c0_9, %c0_10] : memref<256x128xbf16, #tpu.memory_space<vmem>>, vector<256x128xbf16>
    %cst_11 = arith.constant dense<0.000000e+00> : vector<8x128xf32>
    %21 = tpu.matmul %19, %20, %cst_11 {dimension_numbers = #tpu.dot_dimension_numbers<[1], [0], [0], [1], [0, 0, 1, 1], [], []>} : vector<8x256xbf16>, vector<256x128xbf16>, vector<8x128xf32> -> vector<8x128xf32>
    %22 = arith.addf %18, %21 : vector<8x128xf32>
    %c0_12 = arith.constant 0 : index
    %c0_13 = arith.constant 0 : index
    %23 = vector.load %arg11[%c0_12, %c0_13] : memref<8x128xf32, #tpu.memory_space<vmem>>, vector<8x128xf32>
    tpu.vector_store %arg11[%c0_12, %c0_13], %22 {strides = array<i32>} : memref<8x128xf32, #tpu.memory_space<vmem>>, vector<8x128xf32>,
    %c2_i32 = arith.constant 2 : i32
    %24 = arith.cmpi eq, %arg0, %c2_i32 : i32
    %25 = arith.extui %24 : i1 to i32
    %c0_i32_14 = arith.constant 0 : i32
    %26 = arith.cmpi ne, %25, %c0_i32_14 : i32
    scf.if %26 {
      %c0_15 = arith.constant 0 : index
      %c0_16 = arith.constant 0 : index
      %27 = vector.load %arg11[%c0_15, %c0_16] : memref<8x128xf32, #tpu.memory_space<vmem>>, vector<8x128xf32>
      %c0_17 = arith.constant 0 : index
      %c0_18 = arith.constant 0 : index
      %28 = vector.load %arg6[%c0_17, %c0_18] : memref<1x128xf32, #tpu.memory_space<vmem>>, vector<1x128xf32>
      %29 = vector.broadcast %28 : vector<1x128xf32> to vector<8x128xf32>
      %30 = arith.addf %27, %29 : vector<8x128xf32>
      %cst_19 = arith.constant 0.000000e+00 : f32
      %31 = vector.broadcast %cst_19 : f32 to vector<8x128xf32>
      %32 = arith.maximumf %30, %31 : vector<8x128xf32>
      %33 = arith.truncf %32 : vector<8x128xf32> to vector<8x128xbf16>
      %c0_20 = arith.constant 0 : index
      %c0_21 = arith.constant 0 : index
      %34 = vector.load %arg7[%c0_20, %c0_21] : memref<128x128xbf16, #tpu.memory_space<vmem>>, vector<128x128xbf16>
      %cst_22 = arith.constant dense<0.000000e+00> : vector<8x128xf32>
      %35 = tpu.matmul %33, %34, %cst_22 {dimension_numbers = #tpu.dot_dimension_numbers<[1], [0], [0], [1], [0, 0, 1, 1], [], []>} : vector<8x128xbf16>, vector<128x128xbf16>, vector<8x128xf32> -> vector<8x128xf32>
      %c0_23 = arith.constant 0 : index
      %c0_24 = arith.constant 0 : index
      %36 = vector.load %arg8[%c0_23, %c0_24] : memref<1x128xf32, #tpu.memory_space<vmem>>, vector<1x128xf32>
      %37 = vector.broadcast %36 : vector<1x128xf32> to vector<8x128xf32>
      %38 = arith.addf %35, %37 : vector<8x128xf32>
      %39 = tpu.iota {dimensions = array<i32: 1>} : vector<8x128xi32>
      %c10_i32 = arith.constant 10 : i32
      %40 = vector.broadcast %c10_i32 : i32 to vector<8x128xi32>
      %41 = arith.cmpi slt, %39, %40 : vector<8x128xi32>
      %cst_25 = arith.constant -1.000000e+30 : f32
      %42 = vector.broadcast %cst_25 : f32 to vector<8x128xf32>
      %43 = arith.select %41, %38, %42 : vector<8x128xi1>, vector<8x128xf32>
      %cst_26 = arith.constant dense<0xFF800000> : vector<8xf32>
      %44 = vector.multi_reduction <maximumf>, %43, %cst_26 [1] : vector<8x128xf32> to vector<8xf32>
      %45 = vector.shape_cast %44 : vector<8xf32> to vector<8x1xf32>
      %46 = vector.broadcast %45 : vector<8x1xf32> to vector<8x128xf32>
      %47 = arith.subf %43, %46 : vector<8x128xf32>
      %48 = math.exp %47 : vector<8x128xf32>
      %cst_27 = arith.constant dense<0.000000e+00> : vector<8xf32>
      %49 = vector.multi_reduction <add>, %48, %cst_27 [1] : vector<8x128xf32> to vector<8xf32>
      %50 = vector.shape_cast %49 : vector<8xf32> to vector<8x1xf32>
      %51 = math.log %50 : vector<8x1xf32>
      %52 = arith.addf %45, %51 : vector<8x1xf32>
      %53 = vector.broadcast %52 : vector<8x1xf32> to vector<8x128xf32>
      %54 = arith.subf %38, %53 : vector<8x128xf32>
      %c0_28 = arith.constant 0 : index
      %c0_29 = arith.constant 0 : index
      %55 = vector.load %arg9[%c0_28, %c0_29] : memref<8x128xf32, #tpu.memory_space<vmem>>, vector<8x128xf32>
      tpu.vector_store %arg9[%c0_28, %c0_29], %54 {strides = array<i32>} : memref<8x128xf32, #tpu.memory_space<vmem>>, vector<8x128xf32>,
    } else {
    }
    return
  }
  func.func @transform_0(%arg0: i32) -> (i32, i32) {
    %c0_i32 = arith.constant 0 : i32
    %c0_i32_0 = arith.constant 0 : i32
    %c0_i32_1 = arith.constant 0 : i32
    return %c0_i32, %c0_i32_0 : i32, i32
  }
  func.func @transform_1(%arg0: i32) -> (i32, i32) {
    %c0_i32 = arith.constant 0 : i32
    %c0_i32_0 = arith.constant 0 : i32
    %c0_i32_1 = arith.constant 0 : i32
    return %c0_i32, %c0_i32_0 : i32, i32
  }
  func.func @transform_2(%arg0: i32) -> (i32, i32) {
    %c0_i32 = arith.constant 0 : i32
    %c0_i32_0 = arith.constant 0 : i32
    return %c0_i32, %arg0 : i32, i32
  }
  func.func @transform_3(%arg0: i32) -> (i32, i32) {
    %c0_i32 = arith.constant 0 : i32
    %c0_i32_0 = arith.constant 0 : i32
    return %c0_i32, %arg0 : i32, i32
  }
  func.func @transform_4(%arg0: i32) -> (i32, i32) {
    %c0_i32 = arith.constant 0 : i32
    %c0_i32_0 = arith.constant 0 : i32
    return %arg0, %c0_i32 : i32, i32
  }
  func.func @transform_5(%arg0: i32) -> (i32, i32) {
    %c0_i32 = arith.constant 0 : i32
    %c0_i32_0 = arith.constant 0 : i32
    %c0_i32_1 = arith.constant 0 : i32
    return %c0_i32, %c0_i32_0 : i32, i32
  }
  func.func @transform_6(%arg0: i32) -> (i32, i32) {
    %c0_i32 = arith.constant 0 : i32
    %c0_i32_0 = arith.constant 0 : i32
    %c0_i32_1 = arith.constant 0 : i32
    return %c0_i32, %c0_i32_0 : i32, i32
  }
  func.func @transform_7(%arg0: i32) -> (i32, i32) {
    %c0_i32 = arith.constant 0 : i32
    %c0_i32_0 = arith.constant 0 : i32
    %c0_i32_1 = arith.constant 0 : i32
    return %c0_i32, %c0_i32_0 : i32, i32
  }
  func.func @transform_8(%arg0: i32) -> (i32, i32) {
    %c0_i32 = arith.constant 0 : i32
    %c0_i32_0 = arith.constant 0 : i32
    %c0_i32_1 = arith.constant 0 : i32
    return %c0_i32, %c0_i32_0 : i32, i32
  }
}

</mosaic_0001>

<bundles_post_ra>
// kernel: cnn_forward.1
= control target key start
LH: loop header
LB: loop body
LE: loop exit
PB: predicated region body
PF: predicated region fallthrough
CT: control target
= control target key end

     0   :  { %s6797_s27 = smov 0   ;;  %s6799_s28 = smov 0   ;;  %s8375_s0 = inlined_call_operand.vmem [shape: bf16[32,2048], index: 0, kind: input, shape index: {}]   ;;  %s8376_s1 = inlined_call_operand.vmem [shape: bf16[16,32], index: 1, kind: input, shape index: {}]   ;;  %s8377_s2 = inlined_call_operand.vmem [shape: bf16[2560,768], index: 2, kind: input, shape index: {}]   ;;  %s8378_s3 = inlined_call_operand.vmem [shape: f32[1,768], index: 3, kind: input, shape index: {}]   ;;  %s8379_s4 = inlined_call_operand.vmem [shape: bf16[768,128], index: 4, kind: input, shape index: {}]   ;;  %s8380_s5 = inlined_call_operand.vmem [shape: f32[1,128], index: 5, kind: input, shape index: {}]   ;;  %s8381_s6 = inlined_call_operand.vmem [shape: bf16[128,128], index: 6, kind: input, shape index: {}]   ;;  %s8382_s7 = inlined_call_operand.vmem [shape: f32[1,128], index: 7, kind: input, shape index: {}]   ;;  %s8383_s8 = inlined_call_operand.vmem [shape: f32[8,128], index: 8, kind: output, shape index: {}]  }
   0x1   :  { %s6801_s29 = smov 0  }
   0x2 LB: > { %s6813_s30 = sadd.s32 4294967295, %s6742_s29   ;;  %s6816_s9 = sadd.s32 1, %s6742_s29   ;;  %s6742_s29 = sphi %s6801_s29, %s8386_s29   ;;  %s6738_s28 = sphi %s6799_s28, %s8385_s28   ;;  %s6734_s27 = sphi %s6797_s27, %s8384_s27  }
   0x3   : > { %s64_s10 = ssub.s32 %s6742_s29, %s6816_s9  ;;  %s67_s11 = sadd.s32 1, %s6738_s28 }
   0x4   : > { %p65_p0 = scmp.eq.s32.totalorder %s64_s10, 0  ;;  %p74_p1 = scmp.ne.s32.totalorder %s6738_s28, %s6734_s27 }
   0x5   : > { %p75_p2 = scmp.eq.s32.totalorder %s6742_s29, 0  ;;  %p5641_p4 = scmp.ge.s32.totalorder %s6742_s29, 3 }
   0x6   : > { %s6825_s12 = scalar_select %p65_p0, %s6738_s28, %s67_s11  }
   0x7   : > { %p76_p3 = por %p75_p2, %p74_p1  ;;  %251 = sbr.rel (%p5641_p4) target bundleno = 179 (0xb3), region = 36 }
   0xe   : > { %254 = sbr.rel (!%p76_p3) target bundleno = 179 (0xb3), region = 40  ;;  %s256_s13 = sand.u32 (%p76_p3), 1, %s6738_s28  }
   0xf   : > { %s6053_s14 = sshll.u32 (%p76_p3), %s6742_s29, 3  ;;  %s6177_s15 = smul.u32 (%p76_p3), 2560, %s256_s13 }
  0x10   : > { %s6833_s18 = scalar_lea.vmem (%p76_p3), %s8377_s2, %s6053_s14 }
  0x11   : > { %v927_v0 = vld [vmem:[%s6833_s18] sm:$0xff] (%p76_p3)  ;;  %v929_v1 = vld [vmem:[%s6833_s18 + $0x18] sm:$0xff] (%p76_p3)  ;;  %v931_v2 = vld [vmem:[%s6833_s18 + $0x30] sm:$0xff] (%p76_p3)  ;;  %s6841_s19 = scalar_lea.vmem (%p76_p3), [#allocation4], %s6177_s15 }
  0x12   : > { %v933_v3 = vld [vmem:[%s6833_s18 + $0x48] sm:$0xff] (%p76_p3)  ;;  %v935_v4 = vld [vmem:[%s6833_s18 + $0x60] sm:$0xff] (%p76_p3)  ;;  %v937_v5 = vld [vmem:[%s6833_s18 + $0x78] sm:$0xff] (%p76_p3)  ;;  %928 = vst [vmem:[%s6841_s19] sm:$0xff] (%p76_p3), %v927_v0 }
  0x13   : > { %930 = vst [vmem:[%s6841_s19 + $0x8] sm:$0xff] (%p76_p3), %v929_v1  ;;  %932 = vst [vmem:[%s6841_s19 + $0x10] sm:$0xff] (%p76_p3), %v931_v2  ;;  %v939_v6 = vld [vmem:[%s6833_s18 + $0x90] sm:$0xff] (%p76_p3)  ;;  %v941_v7 = vld [vmem:[%s6833_s18 + $0xa8] sm:$0xff] (%p76_p3) }
  0x14   : > { %934 = vst [vmem:[%s6841_s19 + $0x18] sm:$0xff] (%p76_p3), %v933_v3  ;;  %936 = vst [vmem:[%s6841_s19 + $0x20] sm:$0xff] (%p76_p3), %v935_v4  ;;  %v943_v8 = vld [vmem:[%s6833_s18 + $0xc0] sm:$0xff] (%p76_p3)  ;;  %v945_v9 = vld [vmem:[%s6833_s18 + $0xd8] sm:$0xff] (%p76_p3) }
  0x15   : > { %938 = vst [vmem:[%s6841_s19 + $0x28] sm:$0xff] %v937_v5  ;;  %940 = vst [vmem:[%s6841_s19 + $0x30] sm:$0xff] %v939_v6  ;;  %v947_v10 = vld [vmem:[%s6833_s18 + $0xf0] sm:$0xff]  ;;  %v949_v11 = vld [vmem:[%s6833_s18 + $0x108] sm:$0xff] }
  0x16   : > { %942 = vst [vmem:[%s6841_s19 + $0x38] sm:$0xff] %v941_v7  ;;  %944 = vst [vmem:[%s6841_s19 + $0x40] sm:$0xff] %v943_v8  ;;  %v951_v12 = vld [vmem:[%s6833_s18 + $0x120] sm:$0xff]  ;;  %v953_v13 = vld [vmem:[%s6833_s18 + $0x138] sm:$0xff] }
  0x17   : > { %946 = vst [vmem:[%s6841_s19 + $0x48] sm:$0xff] %v945_v9  ;;  %948 = vst [vmem:[%s6841_s19 + $0x50] sm:$0xff] %v947_v10  ;;  %v955_v14 = vld [vmem:[%s6833_s18 + $0x150] sm:$0xff]  ;;  %v957_v15 = vld [vmem:[%s6833_s18 + $0x168] sm:$0xff] }
  0x18   : > { %950 = vst [vmem:[%s6841_s19 + $0x58] sm:$0xff] %v949_v11  ;;  %952 = vst [vmem:[%s6841_s19 + $0x60] sm:$0xff] %v951_v12  ;;  %v959_v16 = vld [vmem:[%s6833_s18 + $0x180] sm:$0xff]  ;;  %v961_v17 = vld [vmem:[%s6833_s18 + $0x198] sm:$0xff] }
  0x19   : > { %954 = vst [vmem:[%s6841_s19 + $0x68] sm:$0xff] %v953_v13  ;;  %956 = vst [vmem:[%s6841_s19 + $0x70] sm:$0xff] %v955_v14  ;;  %v963_v18 = vld [vmem:[%s6833_s18 + $0x1b0] sm:$0xff]  ;;  %v965_v19 = vld [vmem:[%s6833_s18 + $0x1c8] sm:$0xff] }
  0x1a   : > { %958 = vst [vmem:[%s6841_s19 + $0x78] sm:$0xff] %v957_v15  ;;  %960 = vst [vmem:[%s6841_s19 + $0x80] sm:$0xff] %v959_v16  ;;  %v967_v20 = vld [vmem:[%s6833_s18 + $0x1e0] sm:$0xff]  ;;  %v969_v21 = vld [vmem:[%s6833_s18 + $0x1f8] sm:$0xff] }
  0x1b   : > { %962 = vst [vmem:[%s6841_s19 + $0x88] sm:$0xff] %v961_v17  ;;  %964 = vst [vmem:[%s6841_s19 + $0x90] sm:$0xff] %v963_v18  ;;  %v971_v22 = vld [vmem:[%s6833_s18 + $0x210] sm:$0xff]  ;;  %v973_v23 = vld [vmem:[%s6833_s18 + $0x228] sm:$0xff] }
  0x1c   : > { %966 = vst [vmem:[%s6841_s19 + $0x98] sm:$0xff] %v965_v19  ;;  %968 = vst [vmem:[%s6841_s19 + $0xa0] sm:$0xff] %v967_v20  ;;  %v975_v24 = vld [vmem:[%s6833_s18 + $0x240] sm:$0xff]  ;;  %v977_v25 = vld [vmem:[%s6833_s18 + $0x258] sm:$0xff] }
  0x1d   : > { %970 = vst [vmem:[%s6841_s19 + $0xa8] sm:$0xff] %v969_v21  ;;  %972 = vst [vmem:[%s6841_s19 + $0xb0] sm:$0xff] %v971_v22  ;;  %v979_v26 = vld [vmem:[%s6833_s18 + $0x270] sm:$0xff]  ;;  %v981_v27 = vld [vmem:[%s6833_s18 + $0x288] sm:$0xff] }
  0x1e   : > { %974 = vst [vmem:[%s6841_s19 + $0xb8] sm:$0xff] %v973_v23  ;;  %976 = vst [vmem:[%s6841_s19 + $0xc0] sm:$0xff] %v975_v24  ;;  %v983_v28 = vld [vmem:[%s6833_s18 + $0x2a0] sm:$0xff]  ;;  %v985_v29 = vld [vmem:[%s6833_s18 + $0x2b8] sm:$0xff] }
  0x1f   : > { %978 = vst [vmem:[%s6841_s19 + $0xc8] sm:$0xff] %v977_v25  ;;  %980 = vst [vmem:[%s6841_s19 + $0xd0] sm:$0xff] %v979_v26  ;;  %v987_v30 = vld [vmem:[%s6833_s18 + $0x2d0] sm:$0xff]  ;;  %v989_v31 = vld [vmem:[%s6833_s18 + $0x2e8] sm:$0xff] }
  0x20   : > { %982 = vst [vmem:[%s6841_s19 + $0xd8] sm:$0xff] %v981_v27  ;;  %984 = vst [vmem:[%s6841_s19 + $0xe0] sm:$0xff] %v983_v28  ;;  %v991_v32 = vld [vmem:[%s6833_s18 + $0x300] sm:$0xff]  ;;  %v993_v33 = vld [vmem:[%s6833_s18 + $0x318] sm:$0xff] }
  0x21   : > { %986 = vst [vmem:[%s6841_s19 + $0xe8] sm:$0xff] %v985_v29  ;;  %988 = vst [vmem:[%s6841_s19 + $0xf0] sm:$0xff] %v987_v30  ;;  %v995_v34 = vld [vmem:[%s6833_s18 + $0x330] sm:$0xff]  ;;  %v997_v35 = vld [vmem:[%s6833_s18 + $0x348] sm:$0xff] }
  0x22   : > { %990 = vst [vmem:[%s6841_s19 + $0xf8] sm:$0xff] %v989_v31  ;;  %992 = vst [vmem:[%s6841_s19 + $0x100] sm:$0xff] %v991_v32  ;;  %v999_v36 = vld [vmem:[%s6833_s18 + $0x360] sm:$0xff]  ;;  %v1001_v37 = vld [vmem:[%s6833_s18 + $0x378] sm:$0xff] }
  0x23   : > { %994 = vst [vmem:[%s6841_s19 + $0x108] sm:$0xff] %v993_v33  ;;  %996 = vst [vmem:[%s6841_s19 + $0x110] sm:$0xff] %v995_v34  ;;  %v1003_v38 = vld [vmem:[%s6833_s18 + $0x390] sm:$0xff]  ;;  %v1005_v39 = vld [vmem:[%s6833_s18 + $0x3a8] sm:$0xff] }
  0x24   : > { %998 = vst [vmem:[%s6841_s19 + $0x118] sm:$0xff] %v997_v35  ;;  %1000 = vst [vmem:[%s6841_s19 + $0x120] sm:$0xff] %v999_v36  ;;  %v1007_v40 = vld [vmem:[%s6833_s18 + $0x3c0] sm:$0xff]  ;;  %v1009_v41 = vld [vmem:[%s6833_s18 + $0x3d8] sm:$0xff] }
  0x25   : > { %1002 = vst [vmem:[%s6841_s19 + $0x128] sm:$0xff] %v1001_v37  ;;  %1004 = vst [vmem:[%s6841_s19 + $0x130] sm:$0xff] %v1003_v38  ;;  %v1011_v42 = vld [vmem:[%s6833_s18 + $0x3f0] sm:$0xff]  ;;  %v1013_v43 = vld [vmem:[%s6833_s18 + $0x408] sm:$0xff] }
  0x26   : > { %1006 = vst [vmem:[%s6841_s19 + $0x138] sm:$0xff] %v1005_v39  ;;  %1008 = vst [vmem:[%s6841_s19 + $0x140] sm:$0xff] %v1007_v40  ;;  %v1015_v44 = vld [vmem:[%s6833_s18 + $0x420] sm:$0xff]  ;;  %v1017_v45 = vld [vmem:[%s6833_s18 + $0x438] sm:$0xff] }
  0x27   : > { %1010 = vst [vmem:[%s6841_s19 + $0x148] sm:$0xff] %v1009_v41  ;;  %1012 = vst [vmem:[%s6841_s19 + $0x150] sm:$0xff] %v1011_v42  ;;  %v1019_v46 = vld [vmem:[%s6833_s18 + $0x450] sm:$0xff]  ;;  %v1021_v47 = vld [vmem:[%s6833_s18 + $0x468] sm:$0xff] }
  0x28   : > { %1014 = vst [vmem:[%s6841_s19 + $0x158] sm:$0xff] %v1013_v43  ;;  %1016 = vst [vmem:[%s6841_s19 + $0x160] sm:$0xff] %v1015_v44  ;;  %v1023_v48 = vld [vmem:[%s6833_s18 + $0x480] sm:$0xff]  ;;  %v1025_v49 = vld [vmem:[%s6833_s18 + $0x498] sm:$0xff] }
  0x29   : > { %1018 = vst [vmem:[%s6841_s19 + $0x168] sm:$0xff] %v1017_v45  ;;  %1020 = vst [vmem:[%s6841_s19 + $0x170] sm:$0xff] %v1019_v46  ;;  %v1027_v50 = vld [vmem:[%s6833_s18 + $0x4b0] sm:$0xff]  ;;  %v1029_v51 = vld [vmem:[%s6833_s18 + $0x4c8] sm:$0xff] }
  0x2a   : > { %1022 = vst [vmem:[%s6841_s19 + $0x178] sm:$0xff] %v1021_v47  ;;  %1024 = vst [vmem:[%s6841_s19 + $0x180] sm:$0xff] %v1023_v48  ;;  %v1031_v52 = vld [vmem:[%s6833_s18 + $0x4e0] sm:$0xff]  ;;  %v1033_v53 = vld [vmem:[%s6833_s18 + $0x4f8] sm:$0xff] }
  0x2b   : > { %1026 = vst [vmem:[%s6841_s19 + $0x188] sm:$0xff] %v1025_v49  ;;  %1028 = vst [vmem:[%s6841_s19 + $0x190] sm:$0xff] %v1027_v50  ;;  %v1035_v54 = vld [vmem:[%s6833_s18 + $0x510] sm:$0xff]  ;;  %v1037_v55 = vld [vmem:[%s6833_s18 + $0x528] sm:$0xff] }
  0x2c   : > { %1030 = vst [vmem:[%s6841_s19 + $0x198] sm:$0xff] %v1029_v51  ;;  %1032 = vst [vmem:[%s6841_s19 + $0x1a0] sm:$0xff] %v1031_v52  ;;  %v1039_v56 = vld [vmem:[%s6833_s18 + $0x540] sm:$0xff]  ;;  %v1041_v57 = vld [vmem:[%s6833_s18 + $0x558] sm:$0xff] }
  0x2d   : > { %1034 = vst [vmem:[%s6841_s19 + $0x1a8] sm:$0xff] %v1033_v53  ;;  %1036 = vst [vmem:[%s6841_s19 + $0x1b0] sm:$0xff] %v1035_v54  ;;  %v1043_v58 = vld [vmem:[%s6833_s18 + $0x570] sm:$0xff]  ;;  %v1045_v59 = vld [vmem:[%s6833_s18 + $0x588] sm:$0xff] }
  0x2e   : > { %1038 = vst [vmem:[%s6841_s19 + $0x1b8] sm:$0xff] %v1037_v55  ;;  %1040 = vst [vmem:[%s6841_s19 + $0x1c0] sm:$0xff] %v1039_v56  ;;  %v1047_v60 = vld [vmem:[%s6833_s18 + $0x5a0] sm:$0xff]  ;;  %v1049_v61 = vld [vmem:[%s6833_s18 + $0x5b8] sm:$0xff] }
  0x2f   : > { %1042 = vst [vmem:[%s6841_s19 + $0x1c8] sm:$0xff] %v1041_v57  ;;  %1044 = vst [vmem:[%s6841_s19 + $0x1d0] sm:$0xff] %v1043_v58  ;;  %v1051_v62 = vld [vmem:[%s6833_s18 + $0x5d0] sm:$0xff]  ;;  %v1053_v63 = vld [vmem:[%s6833_s18 + $0x5e8] sm:$0xff] }
  0x30   : > { %1046 = vst [vmem:[%s6841_s19 + $0x1d8] sm:$0xff] %v1045_v59  ;;  %1048 = vst [vmem:[%s6841_s19 + $0x1e0] sm:$0xff] %v1047_v60  ;;  %v1055_v0 = vld [vmem:[%s6833_s18 + $0x600] sm:$0xff]  ;;  %v1057_v1 = vld [vmem:[%s6833_s18 + $0x618] sm:$0xff] }
  0x31   : > { %1050 = vst [vmem:[%s6841_s19 + $0x1e8] sm:$0xff] %v1049_v61  ;;  %1052 = vst [vmem:[%s6841_s19 + $0x1f0] sm:$0xff] %v1051_v62  ;;  %v1059_v2 = vld [vmem:[%s6833_s18 + $0x630] sm:$0xff]  ;;  %v1061_v3 = vld [vmem:[%s6833_s18 + $0x648] sm:$0xff] }
  0x32   : > { %1054 = vst [vmem:[%s6841_s19 + $0x1f8] sm:$0xff] %v1053_v63  ;;  %1056 = vst [vmem:[%s6841_s19 + $0x200] sm:$0xff] %v1055_v0  ;;  %v1063_v4 = vld [vmem:[%s6833_s18 + $0x660] sm:$0xff]  ;;  %v1065_v5 = vld [vmem:[%s6833_s18 + $0x678] sm:$0xff] }
  0x33   : > { %1058 = vst [vmem:[%s6841_s19 + $0x208] sm:$0xff] %v1057_v1  ;;  %1060 = vst [vmem:[%s6841_s19 + $0x210] sm:$0xff] %v1059_v2  ;;  %v1067_v6 = vld [vmem:[%s6833_s18 + $0x690] sm:$0xff]  ;;  %v1069_v7 = vld [vmem:[%s6833_s18 + $0x6a8] sm:$0xff] }
  0x34   : > { %1062 = vst [vmem:[%s6841_s19 + $0x218] sm:$0xff] %v1061_v3  ;;  %1064 = vst [vmem:[%s6841_s19 + $0x220] sm:$0xff] %v1063_v4  ;;  %v1071_v8 = vld [vmem:[%s6833_s18 + $0x6c0] sm:$0xff]  ;;  %v1073_v9 = vld [vmem:[%s6833_s18 + $0x6d8] sm:$0xff] }
  0x35   : > { %1066 = vst [vmem:[%s6841_s19 + $0x228] sm:$0xff] %v1065_v5  ;;  %1068 = vst [vmem:[%s6841_s19 + $0x230] sm:$0xff] %v1067_v6  ;;  %v1075_v10 = vld [vmem:[%s6833_s18 + $0x6f0] sm:$0xff]  ;;  %v1077_v11 = vld [vmem:[%s6833_s18 + $0x708] sm:$0xff] }
  0x36   : > { %1070 = vst [vmem:[%s6841_s19 + $0x238] sm:$0xff] %v1069_v7  ;;  %1072 = vst [vmem:[%s6841_s19 + $0x240] sm:$0xff] %v1071_v8  ;;  %v1079_v12 = vld [vmem:[%s6833_s18 + $0x720] sm:$0xff]  ;;  %v1081_v13 = vld [vmem:[%s6833_s18 + $0x738] sm:$0xff] }
  0x37   : > { %1074 = vst [vmem:[%s6841_s19 + $0x248] sm:$0xff] %v1073_v9  ;;  %1076 = vst [vmem:[%s6841_s19 + $0x250] sm:$0xff] %v1075_v10  ;;  %v1083_v14 = vld [vmem:[%s6833_s18 + $0x750] sm:$0xff]  ;;  %v1085_v15 = vld [vmem:[%s6833_s18 + $0x768] sm:$0xff] }
  0x38   : > { %1078 = vst [vmem:[%s6841_s19 + $0x258] sm:$0xff] %v1077_v11  ;;  %1080 = vst [vmem:[%s6841_s19 + $0x260] sm:$0xff] %v1079_v12  ;;  %v1087_v16 = vld [vmem:[%s6833_s18 + $0x780] sm:$0xff]  ;;  %v1089_v17 = vld [vmem:[%s6833_s18 + $0x798] sm:$0xff] }
  0x39   : > { %1082 = vst [vmem:[%s6841_s19 + $0x268] sm:$0xff] %v1081_v13  ;;  %1084 = vst [vmem:[%s6841_s19 + $0x270] sm:$0xff] %v1083_v14  ;;  %v1091_v18 = vld [vmem:[%s6833_s18 + $0x7b0] sm:$0xff]  ;;  %v1093_v19 = vld [vmem:[%s6833_s18 + $0x7c8] sm:$0xff] }
  0x3a   : > { %1086 = vst [vmem:[%s6841_s19 + $0x278] sm:$0xff] %v1085_v15  ;;  %1088 = vst [vmem:[%s6841_s19 + $0x280] sm:$0xff] %v1087_v16  ;;  %v1095_v20 = vld [vmem:[%s6833_s18 + $0x7e0] sm:$0xff]  ;;  %v1097_v21 = vld [vmem:[%s6833_s18 + $0x7f8] sm:$0xff] }
  0x3b   : > { %1090 = vst [vmem:[%s6841_s19 + $0x288] sm:$0xff] %v1089_v17  ;;  %1092 = vst [vmem:[%s6841_s19 + $0x290] sm:$0xff] %v1091_v18  ;;  %v1099_v22 = vld [vmem:[%s6833_s18 + $0x810] sm:$0xff]  ;;  %v1101_v23 = vld [vmem:[%s6833_s18 + $0x828] sm:$0xff] }
  0x3c   : > { %1094 = vst [vmem:[%s6841_s19 + $0x298] sm:$0xff] %v1093_v19  ;;  %1096 = vst [vmem:[%s6841_s19 + $0x2a0] sm:$0xff] %v1095_v20  ;;  %v1103_v24 = vld [vmem:[%s6833_s18 + $0x840] sm:$0xff]  ;;  %v1105_v25 = vld [vmem:[%s6833_s18 + $0x858] sm:$0xff] }
  0x3d   : > { %1098 = vst [vmem:[%s6841_s19 + $0x2a8] sm:$0xff] %v1097_v21  ;;  %1100 = vst [vmem:[%s6841_s19 + $0x2b0] sm:$0xff] %v1099_v22  ;;  %v1107_v26 = vld [vmem:[%s6833_s18 + $0x870] sm:$0xff]  ;;  %v1109_v27 = vld [vmem:[%s6833_s18 + $0x888] sm:$0xff] }
  0x3e   : > { %1102 = vst [vmem:[%s6841_s19 + $0x2b8] sm:$0xff] %v1101_v23  ;;  %1104 = vst [vmem:[%s6841_s19 + $0x2c0] sm:$0xff] %v1103_v24  ;;  %v1111_v28 = vld [vmem:[%s6833_s18 + $0x8a0] sm:$0xff]  ;;  %v1113_v29 = vld [vmem:[%s6833_s18 + $0x8b8] sm:$0xff] }
  0x3f   : > { %1106 = vst [vmem:[%s6841_s19 + $0x2c8] sm:$0xff] %v1105_v25  ;;  %1108 = vst [vmem:[%s6841_s19 + $0x2d0] sm:$0xff] %v1107_v26  ;;  %v1115_v30 = vld [vmem:[%s6833_s18 + $0x8d0] sm:$0xff]  ;;  %v1117_v31 = vld [vmem:[%s6833_s18 + $0x8e8] sm:$0xff] }
  0x40   : > { %1110 = vst [vmem:[%s6841_s19 + $0x2d8] sm:$0xff] %v1109_v27  ;;  %1112 = vst [vmem:[%s6841_s19 + $0x2e0] sm:$0xff] %v1111_v28  ;;  %v1119_v32 = vld [vmem:[%s6833_s18 + $0x900] sm:$0xff]  ;;  %v1121_v33 = vld [vmem:[%s6833_s18 + $0x918] sm:$0xff] }
  0x41   : > { %1114 = vst [vmem:[%s6841_s19 + $0x2e8] sm:$0xff] %v1113_v29  ;;  %1116 = vst [vmem:[%s6841_s19 + $0x2f0] sm:$0xff] %v1115_v30  ;;  %v1123_v34 = vld [vmem:[%s6833_s18 + $0x930] sm:$0xff]  ;;  %v1125_v35 = vld [vmem:[%s6833_s18 + $0x948] sm:$0xff] }
  0x42   : > { %1118 = vst [vmem:[%s6841_s19 + $0x2f8] sm:$0xff] %v1117_v31  ;;  %1120 = vst [vmem:[%s6841_s19 + $0x300] sm:$0xff] %v1119_v32  ;;  %v1127_v36 = vld [vmem:[%s6833_s18 + $0x960] sm:$0xff]  ;;  %v1129_v37 = vld [vmem:[%s6833_s18 + $0x978] sm:$0xff] }
  0x43   : > { %1122 = vst [vmem:[%s6841_s19 + $0x308] sm:$0xff] %v1121_v33  ;;  %1124 = vst [vmem:[%s6841_s19 + $0x310] sm:$0xff] %v1123_v34  ;;  %v1131_v38 = vld [vmem:[%s6833_s18 + $0x990] sm:$0xff]  ;;  %v1133_v39 = vld [vmem:[%s6833_s18 + $0x9a8] sm:$0xff] }
  0x44   : > { %1126 = vst [vmem:[%s6841_s19 + $0x318] sm:$0xff] %v1125_v35  ;;  %1128 = vst [vmem:[%s6841_s19 + $0x320] sm:$0xff] %v1127_v36  ;;  %v1135_v40 = vld [vmem:[%s6833_s18 + $0x9c0] sm:$0xff]  ;;  %v1137_v41 = vld [vmem:[%s6833_s18 + $0x9d8] sm:$0xff] }
  0x45   : > { %1130 = vst [vmem:[%s6841_s19 + $0x328] sm:$0xff] %v1129_v37  ;;  %1132 = vst [vmem:[%s6841_s19 + $0x330] sm:$0xff] %v1131_v38  ;;  %v1139_v42 = vld [vmem:[%s6833_s18 + $0x9f0] sm:$0xff]  ;;  %v1141_v43 = vld [vmem:[%s6833_s18 + $0xa08] sm:$0xff] }
  0x46   : > { %1134 = vst [vmem:[%s6841_s19 + $0x338] sm:$0xff] %v1133_v39  ;;  %1136 = vst [vmem:[%s6841_s19 + $0x340] sm:$0xff] %v1135_v40  ;;  %v1143_v44 = vld [vmem:[%s6833_s18 + $0xa20] sm:$0xff]  ;;  %v1145_v45 = vld [vmem:[%s6833_s18 + $0xa38] sm:$0xff] }
  0x47   : > { %1138 = vst [vmem:[%s6841_s19 + $0x348] sm:$0xff] %v1137_v41  ;;  %1140 = vst [vmem:[%s6841_s19 + $0x350] sm:$0xff] %v1139_v42  ;;  %v1147_v46 = vld [vmem:[%s6833_s18 + $0xa50] sm:$0xff]  ;;  %v1149_v47 = vld [vmem:[%s6833_s18 + $0xa68] sm:$0xff] }
  0x48   : > { %1142 = vst [vmem:[%s6841_s19 + $0x358] sm:$0xff] %v1141_v43  ;;  %1144 = vst [vmem:[%s6841_s19 + $0x360] sm:$0xff] %v1143_v44  ;;  %v1151_v48 = vld [vmem:[%s6833_s18 + $0xa80] sm:$0xff]  ;;  %v1153_v49 = vld [vmem:[%s6833_s18 + $0xa98] sm:$0xff] }
  0x49   : > { %1146 = vst [vmem:[%s6841_s19 + $0x368] sm:$0xff] %v1145_v45  ;;  %1148 = vst [vmem:[%s6841_s19 + $0x370] sm:$0xff] %v1147_v46  ;;  %v1155_v50 = vld [vmem:[%s6833_s18 + $0xab0] sm:$0xff]  ;;  %v1157_v51 = vld [vmem:[%s6833_s18 + $0xac8] sm:$0xff] }
  0x4a   : > { %1150 = vst [vmem:[%s6841_s19 + $0x378] sm:$0xff] %v1149_v47  ;;  %1152 = vst [vmem:[%s6841_s19 + $0x380] sm:$0xff] %v1151_v48  ;;  %v1159_v52 = vld [vmem:[%s6833_s18 + $0xae0] sm:$0xff]  ;;  %v1161_v53 = vld [vmem:[%s6833_s18 + $0xaf8] sm:$0xff] }
  0x4b   : > { %1154 = vst [vmem:[%s6841_s19 + $0x388] sm:$0xff] %v1153_v49  ;;  %1156 = vst [vmem:[%s6841_s19 + $0x390] sm:$0xff] %v1155_v50  ;;  %v1163_v54 = vld [vmem:[%s6833_s18 + $0xb10] sm:$0xff]  ;;  %v1165_v55 = vld [vmem:[%s6833_s18 + $0xb28] sm:$0xff] }
  0x4c   : > { %1158 = vst [vmem:[%s6841_s19 + $0x398] sm:$0xff] %v1157_v51  ;;  %1160 = vst [vmem:[%s6841_s19 + $0x3a0] sm:$0xff] %v1159_v52  ;;  %v1167_v56 = vld [vmem:[%s6833_s18 + $0xb40] sm:$0xff]  ;;  %v1169_v57 = vld [vmem:[%s6833_s18 + $0xb58] sm:$0xff] }
  0x4d   : > { %1162 = vst [vmem:[%s6841_s19 + $0x3a8] sm:$0xff] %v1161_v53  ;;  %1164 = vst [vmem:[%s6841_s19 + $0x3b0] sm:$0xff] %v1163_v54  ;;  %v1171_v58 = vld [vmem:[%s6833_s18 + $0xb70] sm:$0xff]  ;;  %v1173_v59 = vld [vmem:[%s6833_s18 + $0xb88] sm:$0xff] }
  0x4e   : > { %1166 = vst [vmem:[%s6841_s19 + $0x3b8] sm:$0xff] %v1165_v55  ;;  %1168 = vst [vmem:[%s6841_s19 + $0x3c0] sm:$0xff] %v1167_v56  ;;  %v1175_v60 = vld [vmem:[%s6833_s18 + $0xba0] sm:$0xff]  ;;  %v1177_v61 = vld [vmem:[%s6833_s18 + $0xbb8] sm:$0xff] }
  0x4f   : > { %1170 = vst [vmem:[%s6841_s19 + $0x3c8] sm:$0xff] %v1169_v57  ;;  %1172 = vst [vmem:[%s6841_s19 + $0x3d0] sm:$0xff] %v1171_v58  ;;  %v1179_v62 = vld [vmem:[%s6833_s18 + $0xbd0] sm:$0xff]  ;;  %v1181_v63 = vld [vmem:[%s6833_s18 + $0xbe8] sm:$0xff] }
  0x50   : > { %1174 = vst [vmem:[%s6841_s19 + $0x3d8] sm:$0xff] %v1173_v59  ;;  %1176 = vst [vmem:[%s6841_s19 + $0x3e0] sm:$0xff] %v1175_v60  ;;  %v1183_v0 = vld [vmem:[%s6833_s18 + $0xc00] sm:$0xff]  ;;  %v1185_v1 = vld [vmem:[%s6833_s18 + $0xc18] sm:$0xff] }
  0x51   : > { %1178 = vst [vmem:[%s6841_s19 + $0x3e8] sm:$0xff] %v1177_v61  ;;  %1180 = vst [vmem:[%s6841_s19 + $0x3f0] sm:$0xff] %v1179_v62  ;;  %v1187_v2 = vld [vmem:[%s6833_s18 + $0xc30] sm:$0xff]  ;;  %v1189_v3 = vld [vmem:[%s6833_s18 + $0xc48] sm:$0xff] }
  0x52   : > { %1182 = vst [vmem:[%s6841_s19 + $0x3f8] sm:$0xff] %v1181_v63  ;;  %1184 = vst [vmem:[%s6841_s19 + $0x400] sm:$0xff] %v1183_v0  ;;  %v1191_v4 = vld [vmem:[%s6833_s18 + $0xc60] sm:$0xff]  ;;  %v1193_v5 = vld [vmem:[%s6833_s18 + $0xc78] sm:$0xff] }
  0x53   : > { %1186 = vst [vmem:[%s6841_s19 + $0x408] sm:$0xff] %v1185_v1  ;;  %1188 = vst [vmem:[%s6841_s19 + $0x410] sm:$0xff] %v1187_v2  ;;  %v1195_v6 = vld [vmem:[%s6833_s18 + $0xc90] sm:$0xff]  ;;  %v1197_v7 = vld [vmem:[%s6833_s18 + $0xca8] sm:$0xff] }
  0x54   : > { %1190 = vst [vmem:[%s6841_s19 + $0x418] sm:$0xff] %v1189_v3  ;;  %1192 = vst [vmem:[%s6841_s19 + $0x420] sm:$0xff] %v1191_v4  ;;  %v1199_v8 = vld [vmem:[%s6833_s18 + $0xcc0] sm:$0xff]  ;;  %v1201_v9 = vld [vmem:[%s6833_s18 + $0xcd8] sm:$0xff] }
  0x55   : > { %1194 = vst [vmem:[%s6841_s19 + $0x428] sm:$0xff] %v1193_v5  ;;  %1196 = vst [vmem:[%s6841_s19 + $0x430] sm:$0xff] %v1195_v6  ;;  %v1203_v10 = vld [vmem:[%s6833_s18 + $0xcf0] sm:$0xff]  ;;  %v1205_v11 = vld [vmem:[%s6833_s18 + $0xd08] sm:$0xff] }
  0x56   : > { %1198 = vst [vmem:[%s6841_s19 + $0x438] sm:$0xff] %v1197_v7  ;;  %1200 = vst [vmem:[%s6841_s19 + $0x440] sm:$0xff] %v1199_v8  ;;  %v1207_v12 = vld [vmem:[%s6833_s18 + $0xd20] sm:$0xff]  ;;  %v1209_v13 = vld [vmem:[%s6833_s18 + $0xd38] sm:$0xff] }
  0x57   : > { %1202 = vst [vmem:[%s6841_s19 + $0x448] sm:$0xff] %v1201_v9  ;;  %1204 = vst [vmem:[%s6841_s19 + $0x450] sm:$0xff] %v1203_v10  ;;  %v1211_v14 = vld [vmem:[%s6833_s18 + $0xd50] sm:$0xff]  ;;  %v1213_v15 = vld [vmem:[%s6833_s18 + $0xd68] sm:$0xff] }
  0x58   : > { %1206 = vst [vmem:[%s6841_s19 + $0x458] sm:$0xff] %v1205_v11  ;;  %1208 = vst [vmem:[%s6841_s19 + $0x460] sm:$0xff] %v1207_v12  ;;  %v1215_v16 = vld [vmem:[%s6833_s18 + $0xd80] sm:$0xff]  ;;  %v1217_v17 = vld [vmem:[%s6833_s18 + $0xd98] sm:$0xff] }
  0x59   : > { %1210 = vst [vmem:[%s6841_s19 + $0x468] sm:$0xff] %v1209_v13  ;;  %1212 = vst [vmem:[%s6841_s19 + $0x470] sm:$0xff] %v1211_v14  ;;  %v1219_v18 = vld [vmem:[%s6833_s18 + $0xdb0] sm:$0xff]  ;;  %v1221_v19 = vld [vmem:[%s6833_s18 + $0xdc8] sm:$0xff] }
  0x5a   : > { %1214 = vst [vmem:[%s6841_s19 + $0x478] sm:$0xff] %v1213_v15  ;;  %1216 = vst [vmem:[%s6841_s19 + $0x480] sm:$0xff] %v1215_v16  ;;  %v1223_v20 = vld [vmem:[%s6833_s18 + $0xde0] sm:$0xff]  ;;  %v1225_v21 = vld [vmem:[%s6833_s18 + $0xdf8] sm:$0xff] }
  0x5b   : > { %1218 = vst [vmem:[%s6841_s19 + $0x488] sm:$0xff] %v1217_v17  ;;  %1220 = vst [vmem:[%s6841_s19 + $0x490] sm:$0xff] %v1219_v18  ;;  %v1227_v22 = vld [vmem:[%s6833_s18 + $0xe10] sm:$0xff]  ;;  %v1229_v23 = vld [vmem:[%s6833_s18 + $0xe28] sm:$0xff] }
  0x5c   : > { %1222 = vst [vmem:[%s6841_s19 + $0x498] sm:$0xff] %v1221_v19  ;;  %1224 = vst [vmem:[%s6841_s19 + $0x4a0] sm:$0xff] %v1223_v20  ;;  %v1231_v24 = vld [vmem:[%s6833_s18 + $0xe40] sm:$0xff]  ;;  %v1233_v25 = vld [vmem:[%s6833_s18 + $0xe58] sm:$0xff] }
  0x5d   : > { %1226 = vst [vmem:[%s6841_s19 + $0x4a8] sm:$0xff] %v1225_v21  ;;  %1228 = vst [vmem:[%s6841_s19 + $0x4b0] sm:$0xff] %v1227_v22  ;;  %v1235_v26 = vld [vmem:[%s6833_s18 + $0xe70] sm:$0xff]  ;;  %v1237_v27 = vld [vmem:[%s6833_s18 + $0xe88] sm:$0xff] }
  0x5e   : > { %1230 = vst [vmem:[%s6841_s19 + $0x4b8] sm:$0xff] %v1229_v23  ;;  %1232 = vst [vmem:[%s6841_s19 + $0x4c0] sm:$0xff] %v1231_v24  ;;  %v1239_v28 = vld [vmem:[%s6833_s18 + $0xea0] sm:$0xff]  ;;  %v1241_v29 = vld [vmem:[%s6833_s18 + $0xeb8] sm:$0xff] }
  0x5f   : > { %1234 = vst [vmem:[%s6841_s19 + $0x4c8] sm:$0xff] %v1233_v25  ;;  %1236 = vst [vmem:[%s6841_s19 + $0x4d0] sm:$0xff] %v1235_v26  ;;  %v1243_v30 = vld [vmem:[%s6833_s18 + $0xed0] sm:$0xff]  ;;  %v1245_v31 = vld [vmem:[%s6833_s18 + $0xee8] sm:$0xff] }
  0x60   : > { %1238 = vst [vmem:[%s6841_s19 + $0x4d8] sm:$0xff] %v1237_v27  ;;  %1240 = vst [vmem:[%s6841_s19 + $0x4e0] sm:$0xff] %v1239_v28  ;;  %v1247_v32 = vld [vmem:[%s6833_s18 + $0xf00] sm:$0xff]  ;;  %v1249_v33 = vld [vmem:[%s6833_s18 + $0xf18] sm:$0xff] }
  0x61   : > { %1242 = vst [vmem:[%s6841_s19 + $0x4e8] sm:$0xff] %v1241_v29  ;;  %1244 = vst [vmem:[%s6841_s19 + $0x4f0] sm:$0xff] %v1243_v30  ;;  %v1251_v34 = vld [vmem:[%s6833_s18 + $0xf30] sm:$0xff]  ;;  %v1253_v35 = vld [vmem:[%s6833_s18 + $0xf48] sm:$0xff] }
  0x62   : > { %1246 = vst [vmem:[%s6841_s19 + $0x4f8] sm:$0xff] %v1245_v31  ;;  %1248 = vst [vmem:[%s6841_s19 + $0x500] sm:$0xff] %v1247_v32  ;;  %v1255_v36 = vld [vmem:[%s6833_s18 + $0xf60] sm:$0xff]  ;;  %v1257_v37 = vld [vmem:[%s6833_s18 + $0xf78] sm:$0xff] }
  0x63   : > { %1250 = vst [vmem:[%s6841_s19 + $0x508] sm:$0xff] %v1249_v33  ;;  %1252 = vst [vmem:[%s6841_s19 + $0x510] sm:$0xff] %v1251_v34  ;;  %v1259_v38 = vld [vmem:[%s6833_s18 + $0xf90] sm:$0xff]  ;;  %v1261_v39 = vld [vmem:[%s6833_s18 + $0xfa8] sm:$0xff] }
  0x64   : > { %1254 = vst [vmem:[%s6841_s19 + $0x518] sm:$0xff] %v1253_v35  ;;  %1256 = vst [vmem:[%s6841_s19 + $0x520] sm:$0xff] %v1255_v36  ;;  %v1263_v40 = vld [vmem:[%s6833_s18 + $0xfc0] sm:$0xff]  ;;  %v1265_v41 = vld [vmem:[%s6833_s18 + $0xfd8] sm:$0xff] }
  0x65   : > { %1258 = vst [vmem:[%s6841_s19 + $0x528] sm:$0xff] %v1257_v37  ;;  %1260 = vst [vmem:[%s6841_s19 + $0x530] sm:$0xff] %v1259_v38  ;;  %v1267_v42 = vld [vmem:[%s6833_s18 + $0xff0] sm:$0xff]  ;;  %v1269_v43 = vld [vmem:[%s6833_s18 + $0x1008] sm:$0xff] }
  0x66   : > { %1262 = vst [vmem:[%s6841_s19 + $0x538] sm:$0xff] %v1261_v39  ;;  %1264 = vst [vmem:[%s6841_s19 + $0x540] sm:$0xff] %v1263_v40  ;;  %v1271_v44 = vld [vmem:[%s6833_s18 + $0x1020] sm:$0xff]  ;;  %v1273_v45 = vld [vmem:[%s6833_s18 + $0x1038] sm:$0xff] }
  0x67   : > { %1266 = vst [vmem:[%s6841_s19 + $0x548] sm:$0xff] %v1265_v41  ;;  %1268 = vst [vmem:[%s6841_s19 + $0x550] sm:$0xff] %v1267_v42  ;;  %v1275_v46 = vld [vmem:[%s6833_s18 + $0x1050] sm:$0xff]  ;;  %v1277_v47 = vld [vmem:[%s6833_s18 + $0x1068] sm:$0xff] }
  0x68   : > { %1270 = vst [vmem:[%s6841_s19 + $0x558] sm:$0xff] %v1269_v43  ;;  %1272 = vst [vmem:[%s6841_s19 + $0x560] sm:$0xff] %v1271_v44  ;;  %v1279_v48 = vld [vmem:[%s6833_s18 + $0x1080] sm:$0xff]  ;;  %v1281_v49 = vld [vmem:[%s6833_s18 + $0x1098] sm:$0xff] }
  0x69   : > { %1274 = vst [vmem:[%s6841_s19 + $0x568] sm:$0xff] %v1273_v45  ;;  %1276 = vst [vmem:[%s6841_s19 + $0x570] sm:$0xff] %v1275_v46  ;;  %v1283_v50 = vld [vmem:[%s6833_s18 + $0x10b0] sm:$0xff]  ;;  %v1285_v51 = vld [vmem:[%s6833_s18 + $0x10c8] sm:$0xff] }
  0x6a   : > { %1278 = vst [vmem:[%s6841_s19 + $0x578] sm:$0xff] %v1277_v47  ;;  %1280 = vst [vmem:[%s6841_s19 + $0x580] sm:$0xff] %v1279_v48  ;;  %v1287_v52 = vld [vmem:[%s6833_s18 + $0x10e0] sm:$0xff]  ;;  %v1289_v53 = vld [vmem:[%s6833_s18 + $0x10f8] sm:$0xff] }
  0x6b   : > { %1282 = vst [vmem:[%s6841_s19 + $0x588] sm:$0xff] %v1281_v49  ;;  %1284 = vst [vmem:[%s6841_s19 + $0x590] sm:$0xff] %v1283_v50  ;;  %v1291_v54 = vld [vmem:[%s6833_s18 + $0x1110] sm:$0xff]  ;;  %v1293_v55 = vld [vmem:[%s6833_s18 + $0x1128] sm:$0xff] }
  0x6c   : > { %1286 = vst [vmem:[%s6841_s19 + $0x598] sm:$0xff] %v1285_v51  ;;  %1288 = vst [vmem:[%s6841_s19 + $0x5a0] sm:$0xff] %v1287_v52  ;;  %v1295_v56 = vld [vmem:[%s6833_s18 + $0x1140] sm:$0xff]  ;;  %v1297_v57 = vld [vmem:[%s6833_s18 + $0x1158] sm:$0xff] }
  0x6d   : > { %1290 = vst [vmem:[%s6841_s19 + $0x5a8] sm:$0xff] %v1289_v53  ;;  %1292 = vst [vmem:[%s6841_s19 + $0x5b0] sm:$0xff] %v1291_v54  ;;  %v1299_v58 = vld [vmem:[%s6833_s18 + $0x1170] sm:$0xff]  ;;  %v1301_v59 = vld [vmem:[%s6833_s18 + $0x1188] sm:$0xff] }
  0x6e   : > { %1294 = vst [vmem:[%s6841_s19 + $0x5b8] sm:$0xff] %v1293_v55  ;;  %1296 = vst [vmem:[%s6841_s19 + $0x5c0] sm:$0xff] %v1295_v56  ;;  %v1303_v60 = vld [vmem:[%s6833_s18 + $0x11a0] sm:$0xff]  ;;  %v1305_v61 = vld [vmem:[%s6833_s18 + $0x11b8] sm:$0xff] }
  0x6f   : > { %1298 = vst [vmem:[%s6841_s19 + $0x5c8] sm:$0xff] %v1297_v57  ;;  %1300 = vst [vmem:[%s6841_s19 + $0x5d0] sm:$0xff] %v1299_v58  ;;  %v1307_v62 = vld [vmem:[%s6833_s18 + $0x11d0] sm:$0xff]  ;;  %v1309_v63 = vld [vmem:[%s6833_s18 + $0x11e8] sm:$0xff] }
  0x70   : > { %1302 = vst [vmem:[%s6841_s19 + $0x5d8] sm:$0xff] %v1301_v59  ;;  %1304 = vst [vmem:[%s6841_s19 + $0x5e0] sm:$0xff] %v1303_v60  ;;  %v1311_v0 = vld [vmem:[%s6833_s18 + $0x1200] sm:$0xff]  ;;  %v1313_v1 = vld [vmem:[%s6833_s18 + $0x1218] sm:$0xff] }
  0x71   : > { %1306 = vst [vmem:[%s6841_s19 + $0x5e8] sm:$0xff] %v1305_v61  ;;  %1308 = vst [vmem:[%s6841_s19 + $0x5f0] sm:$0xff] %v1307_v62  ;;  %v1315_v2 = vld [vmem:[%s6833_s18 + $0x1230] sm:$0xff]  ;;  %v1317_v3 = vld [vmem:[%s6833_s18 + $0x1248] sm:$0xff] }
  0x72   : > { %1310 = vst [vmem:[%s6841_s19 + $0x5f8] sm:$0xff] %v1309_v63  ;;  %1312 = vst [vmem:[%s6841_s19 + $0x600] sm:$0xff] %v1311_v0  ;;  %v1319_v4 = vld [vmem:[%s6833_s18 + $0x1260] sm:$0xff]  ;;  %v1321_v5 = vld [vmem:[%s6833_s18 + $0x1278] sm:$0xff] }
  0x73   : > { %1314 = vst [vmem:[%s6841_s19 + $0x608] sm:$0xff] %v1313_v1  ;;  %1316 = vst [vmem:[%s6841_s19 + $0x610] sm:$0xff] %v1315_v2  ;;  %v1323_v6 = vld [vmem:[%s6833_s18 + $0x1290] sm:$0xff]  ;;  %v1325_v7 = vld [vmem:[%s6833_s18 + $0x12a8] sm:$0xff] }
  0x74   : > { %1318 = vst [vmem:[%s6841_s19 + $0x618] sm:$0xff] %v1317_v3  ;;  %1320 = vst [vmem:[%s6841_s19 + $0x620] sm:$0xff] %v1319_v4  ;;  %v1327_v8 = vld [vmem:[%s6833_s18 + $0x12c0] sm:$0xff]  ;;  %v1329_v9 = vld [vmem:[%s6833_s18 + $0x12d8] sm:$0xff] }
  0x75   : > { %1322 = vst [vmem:[%s6841_s19 + $0x628] sm:$0xff] %v1321_v5  ;;  %1324 = vst [vmem:[%s6841_s19 + $0x630] sm:$0xff] %v1323_v6  ;;  %v1331_v10 = vld [vmem:[%s6833_s18 + $0x12f0] sm:$0xff]  ;;  %v1333_v11 = vld [vmem:[%s6833_s18 + $0x1308] sm:$0xff] }
  0x76   : > { %1326 = vst [vmem:[%s6841_s19 + $0x638] sm:$0xff] %v1325_v7  ;;  %1328 = vst [vmem:[%s6841_s19 + $0x640] sm:$0xff] %v1327_v8  ;;  %v1335_v12 = vld [vmem:[%s6833_s18 + $0x1320] sm:$0xff]  ;;  %v1337_v13 = vld [vmem:[%s6833_s18 + $0x1338] sm:$0xff] }
  0x77   : > { %1330 = vst [vmem:[%s6841_s19 + $0x648] sm:$0xff] %v1329_v9  ;;  %1332 = vst [vmem:[%s6841_s19 + $0x650] sm:$0xff] %v1331_v10  ;;  %v1339_v14 = vld [vmem:[%s6833_s18 + $0x1350] sm:$0xff]  ;;  %v1341_v15 = vld [vmem:[%s6833_s18 + $0x1368] sm:$0xff] }
  0x78   : > { %1334 = vst [vmem:[%s6841_s19 + $0x658] sm:$0xff] %v1333_v11  ;;  %1336 = vst [vmem:[%s6841_s19 + $0x660] sm:$0xff] %v1335_v12  ;;  %v1343_v16 = vld [vmem:[%s6833_s18 + $0x1380] sm:$0xff]  ;;  %v1345_v17 = vld [vmem:[%s6833_s18 + $0x1398] sm:$0xff] }
  0x79   : > { %1338 = vst [vmem:[%s6841_s19 + $0x668] sm:$0xff] %v1337_v13  ;;  %1340 = vst [vmem:[%s6841_s19 + $0x670] sm:$0xff] %v1339_v14  ;;  %v1347_v18 = vld [vmem:[%s6833_s18 + $0x13b0] sm:$0xff]  ;;  %v1349_v19 = vld [vmem:[%s6833_s18 + $0x13c8] sm:$0xff] }
  0x7a   : > { %1342 = vst [vmem:[%s6841_s19 + $0x678] sm:$0xff] %v1341_v15  ;;  %1344 = vst [vmem:[%s6841_s19 + $0x680] sm:$0xff] %v1343_v16  ;;  %v1351_v20 = vld [vmem:[%s6833_s18 + $0x13e0] sm:$0xff]  ;;  %v1353_v21 = vld [vmem:[%s6833_s18 + $0x13f8] sm:$0xff] }
  0x7b   : > { %1346 = vst [vmem:[%s6841_s19 + $0x688] sm:$0xff] %v1345_v17  ;;  %1348 = vst [vmem:[%s6841_s19 + $0x690] sm:$0xff] %v1347_v18  ;;  %v1355_v22 = vld [vmem:[%s6833_s18 + $0x1410] sm:$0xff]  ;;  %v1357_v23 = vld [vmem:[%s6833_s18 + $0x1428] sm:$0xff] }
  0x7c   : > { %1350 = vst [vmem:[%s6841_s19 + $0x698] sm:$0xff] %v1349_v19  ;;  %1352 = vst [vmem:[%s6841_s19 + $0x6a0] sm:$0xff] %v1351_v20  ;;  %v1359_v24 = vld [vmem:[%s6833_s18 + $0x1440] sm:$0xff]  ;;  %v1361_v25 = vld [vmem:[%s6833_s18 + $0x1458] sm:$0xff] }
  0x7d   : > { %1354 = vst [vmem:[%s6841_s19 + $0x6a8] sm:$0xff] %v1353_v21  ;;  %1356 = vst [vmem:[%s6841_s19 + $0x6b0] sm:$0xff] %v1355_v22  ;;  %v1363_v26 = vld [vmem:[%s6833_s18 + $0x1470] sm:$0xff]  ;;  %v1365_v27 = vld [vmem:[%s6833_s18 + $0x1488] sm:$0xff] }
  0x7e   : > { %1358 = vst [vmem:[%s6841_s19 + $0x6b8] sm:$0xff] %v1357_v23  ;;  %1360 = vst [vmem:[%s6841_s19 + $0x6c0] sm:$0xff] %v1359_v24  ;;  %v1367_v28 = vld [vmem:[%s6833_s18 + $0x14a0] sm:$0xff]  ;;  %v1369_v29 = vld [vmem:[%s6833_s18 + $0x14b8] sm:$0xff] }
  0x7f   : > { %1362 = vst [vmem:[%s6841_s19 + $0x6c8] sm:$0xff] %v1361_v25  ;;  %1364 = vst [vmem:[%s6841_s19 + $0x6d0] sm:$0xff] %v1363_v26  ;;  %v1371_v30 = vld [vmem:[%s6833_s18 + $0x14d0] sm:$0xff]  ;;  %v1373_v31 = vld [vmem:[%s6833_s18 + $0x14e8] sm:$0xff] }
  0x80   : > { %1366 = vst [vmem:[%s6841_s19 + $0x6d8] sm:$0xff] %v1365_v27  ;;  %1368 = vst [vmem:[%s6841_s19 + $0x6e0] sm:$0xff] %v1367_v28  ;;  %v1375_v32 = vld [vmem:[%s6833_s18 + $0x1500] sm:$0xff]  ;;  %v1377_v33 = vld [vmem:[%s6833_s18 + $0x1518] sm:$0xff] }
  0x81   : > { %1370 = vst [vmem:[%s6841_s19 + $0x6e8] sm:$0xff] %v1369_v29  ;;  %1372 = vst [vmem:[%s6841_s19 + $0x6f0] sm:$0xff] %v1371_v30  ;;  %v1379_v34 = vld [vmem:[%s6833_s18 + $0x1530] sm:$0xff]  ;;  %v1381_v35 = vld [vmem:[%s6833_s18 + $0x1548] sm:$0xff] }
  0x82   : > { %1374 = vst [vmem:[%s6841_s19 + $0x6f8] sm:$0xff] %v1373_v31  ;;  %1376 = vst [vmem:[%s6841_s19 + $0x700] sm:$0xff] %v1375_v32  ;;  %v1383_v36 = vld [vmem:[%s6833_s18 + $0x1560] sm:$0xff]  ;;  %v1385_v37 = vld [vmem:[%s6833_s18 + $0x1578] sm:$0xff] }
  0x83   : > { %1378 = vst [vmem:[%s6841_s19 + $0x708] sm:$0xff] %v1377_v33  ;;  %1380 = vst [vmem:[%s6841_s19 + $0x710] sm:$0xff] %v1379_v34  ;;  %v1387_v38 = vld [vmem:[%s6833_s18 + $0x1590] sm:$0xff]  ;;  %v1389_v39 = vld [vmem:[%s6833_s18 + $0x15a8] sm:$0xff] }
  0x84   : > { %1382 = vst [vmem:[%s6841_s19 + $0x718] sm:$0xff] %v1381_v35  ;;  %1384 = vst [vmem:[%s6841_s19 + $0x720] sm:$0xff] %v1383_v36  ;;  %v1391_v40 = vld [vmem:[%s6833_s18 + $0x15c0] sm:$0xff]  ;;  %v1393_v41 = vld [vmem:[%s6833_s18 + $0x15d8] sm:$0xff] }
  0x85   : > { %1386 = vst [vmem:[%s6841_s19 + $0x728] sm:$0xff] %v1385_v37  ;;  %1388 = vst [vmem:[%s6841_s19 + $0x730] sm:$0xff] %v1387_v38  ;;  %v1395_v42 = vld [vmem:[%s6833_s18 + $0x15f0] sm:$0xff]  ;;  %v1397_v43 = vld [vmem:[%s6833_s18 + $0x1608] sm:$0xff] }
  0x86   : > { %1390 = vst [vmem:[%s6841_s19 + $0x738] sm:$0xff] %v1389_v39  ;;  %1392 = vst [vmem:[%s6841_s19 + $0x740] sm:$0xff] %v1391_v40  ;;  %v1399_v44 = vld [vmem:[%s6833_s18 + $0x1620] sm:$0xff]  ;;  %v1401_v45 = vld [vmem:[%s6833_s18 + $0x1638] sm:$0xff] }
  0x87   : > { %1394 = vst [vmem:[%s6841_s19 + $0x748] sm:$0xff] %v1393_v41  ;;  %1396 = vst [vmem:[%s6841_s19 + $0x750] sm:$0xff] %v1395_v42  ;;  %v1403_v46 = vld [vmem:[%s6833_s18 + $0x1650] sm:$0xff]  ;;  %v1405_v47 = vld [vmem:[%s6833_s18 + $0x1668] sm:$0xff] }
  0x88   : > { %1398 = vst [vmem:[%s6841_s19 + $0x758] sm:$0xff] %v1397_v43  ;;  %1400 = vst [vmem:[%s6841_s19 + $0x760] sm:$0xff] %v1399_v44  ;;  %v1407_v48 = vld [vmem:[%s6833_s18 + $0x1680] sm:$0xff]  ;;  %v1409_v49 = vld [vmem:[%s6833_s18 + $0x1698] sm:$0xff] }
  0x89   : > { %1402 = vst [vmem:[%s6841_s19 + $0x768] sm:$0xff] %v1401_v45  ;;  %1404 = vst [vmem:[%s6841_s19 + $0x770] sm:$0xff] %v1403_v46  ;;  %v1411_v50 = vld [vmem:[%s6833_s18 + $0x16b0] sm:$0xff]  ;;  %v1413_v51 = vld [vmem:[%s6833_s18 + $0x16c8] sm:$0xff] }
  0x8a   : > { %1406 = vst [vmem:[%s6841_s19 + $0x778] sm:$0xff] %v1405_v47  ;;  %1408 = vst [vmem:[%s6841_s19 + $0x780] sm:$0xff] %v1407_v48  ;;  %v1415_v52 = vld [vmem:[%s6833_s18 + $0x16e0] sm:$0xff]  ;;  %v1417_v53 = vld [vmem:[%s6833_s18 + $0x16f8] sm:$0xff] }
  0x8b   : > { %1410 = vst [vmem:[%s6841_s19 + $0x788] sm:$0xff] %v1409_v49  ;;  %1412 = vst [vmem:[%s6841_s19 + $0x790] sm:$0xff] %v1411_v50  ;;  %v1419_v54 = vld [vmem:[%s6833_s18 + $0x1710] sm:$0xff]  ;;  %v1421_v55 = vld [vmem:[%s6833_s18 + $0x1728] sm:$0xff] }
  0x8c   : > { %1414 = vst [vmem:[%s6841_s19 + $0x798] sm:$0xff] %v1413_v51  ;;  %1416 = vst [vmem:[%s6841_s19 + $0x7a0] sm:$0xff] %v1415_v52  ;;  %v1423_v56 = vld [vmem:[%s6833_s18 + $0x1740] sm:$0xff]  ;;  %v1425_v57 = vld [vmem:[%s6833_s18 + $0x1758] sm:$0xff] }
  0x8d   : > { %1418 = vst [vmem:[%s6841_s19 + $0x7a8] sm:$0xff] %v1417_v53  ;;  %1420 = vst [vmem:[%s6841_s19 + $0x7b0] sm:$0xff] %v1419_v54  ;;  %v1427_v58 = vld [vmem:[%s6833_s18 + $0x1770] sm:$0xff]  ;;  %v1429_v59 = vld [vmem:[%s6833_s18 + $0x1788] sm:$0xff] }
  0x8e   : > { %1422 = vst [vmem:[%s6841_s19 + $0x7b8] sm:$0xff] %v1421_v55  ;;  %1424 = vst [vmem:[%s6841_s19 + $0x7c0] sm:$0xff] %v1423_v56  ;;  %v1431_v60 = vld [vmem:[%s6833_s18 + $0x17a0] sm:$0xff]  ;;  %v1433_v61 = vld [vmem:[%s6833_s18 + $0x17b8] sm:$0xff] }
  0x8f   : > { %1426 = vst [vmem:[%s6841_s19 + $0x7c8] sm:$0xff] %v1425_v57  ;;  %1428 = vst [vmem:[%s6841_s19 + $0x7d0] sm:$0xff] %v1427_v58  ;;  %v1435_v62 = vld [vmem:[%s6833_s18 + $0x17d0] sm:$0xff]  ;;  %v1437_v63 = vld [vmem:[%s6833_s18 + $0x17e8] sm:$0xff] }
  0x90   : > { %1430 = vst [vmem:[%s6841_s19 + $0x7d8] sm:$0xff] %v1429_v59  ;;  %1432 = vst [vmem:[%s6841_s19 + $0x7e0] sm:$0xff] %v1431_v60  ;;  %v1439_v0 = vld [vmem:[%s6833_s18 + $0x1800] sm:$0xff]  ;;  %v1441_v1 = vld [vmem:[%s6833_s18 + $0x1818] sm:$0xff] }
  0x91   : > { %1434 = vst [vmem:[%s6841_s19 + $0x7e8] sm:$0xff] %v1433_v61  ;;  %1436 = vst [vmem:[%s6841_s19 + $0x7f0] sm:$0xff] %v1435_v62  ;;  %v1443_v2 = vld [vmem:[%s6833_s18 + $0x1830] sm:$0xff]  ;;  %v1445_v3 = vld [vmem:[%s6833_s18 + $0x1848] sm:$0xff] }
  0x92   : > { %1438 = vst [vmem:[%s6841_s19 + $0x7f8] sm:$0xff] %v1437_v63  ;;  %1440 = vst [vmem:[%s6841_s19 + $0x800] sm:$0xff] %v1439_v0  ;;  %v1447_v4 = vld [vmem:[%s6833_s18 + $0x1860] sm:$0xff]  ;;  %v1449_v5 = vld [vmem:[%s6833_s18 + $0x1878] sm:$0xff] }
  0x93   : > { %1442 = vst [vmem:[%s6841_s19 + $0x808] sm:$0xff] %v1441_v1  ;;  %1444 = vst [vmem:[%s6841_s19 + $0x810] sm:$0xff] %v1443_v2  ;;  %v1451_v6 = vld [vmem:[%s6833_s18 + $0x1890] sm:$0xff]  ;;  %v1453_v7 = vld [vmem:[%s6833_s18 + $0x18a8] sm:$0xff] }
  0x94   : > { %1446 = vst [vmem:[%s6841_s19 + $0x818] sm:$0xff] %v1445_v3  ;;  %1448 = vst [vmem:[%s6841_s19 + $0x820] sm:$0xff] %v1447_v4  ;;  %v1455_v8 = vld [vmem:[%s6833_s18 + $0x18c0] sm:$0xff]  ;;  %v1457_v9 = vld [vmem:[%s6833_s18 + $0x18d8] sm:$0xff] }
  0x95   : > { %1450 = vst [vmem:[%s6841_s19 + $0x828] sm:$0xff] %v1449_v5  ;;  %1452 = vst [vmem:[%s6841_s19 + $0x830] sm:$0xff] %v1451_v6  ;;  %v1459_v10 = vld [vmem:[%s6833_s18 + $0x18f0] sm:$0xff]  ;;  %v1461_v11 = vld [vmem:[%s6833_s18 + $0x1908] sm:$0xff] }
  0x96   : > { %1454 = vst [vmem:[%s6841_s19 + $0x838] sm:$0xff] %v1453_v7  ;;  %1456 = vst [vmem:[%s6841_s19 + $0x840] sm:$0xff] %v1455_v8  ;;  %v1463_v12 = vld [vmem:[%s6833_s18 + $0x1920] sm:$0xff]  ;;  %v1465_v13 = vld [vmem:[%s6833_s18 + $0x1938] sm:$0xff] }
  0x97   : > { %1458 = vst [vmem:[%s6841_s19 + $0x848] sm:$0xff] %v1457_v9  ;;  %1460 = vst [vmem:[%s6841_s19 + $0x850] sm:$0xff] %v1459_v10  ;;  %v1467_v14 = vld [vmem:[%s6833_s18 + $0x1950] sm:$0xff]  ;;  %v1469_v15 = vld [vmem:[%s6833_s18 + $0x1968] sm:$0xff] }
  0x98   : > { %1462 = vst [vmem:[%s6841_s19 + $0x858] sm:$0xff] %v1461_v11  ;;  %1464 = vst [vmem:[%s6841_s19 + $0x860] sm:$0xff] %v1463_v12  ;;  %v1471_v16 = vld [vmem:[%s6833_s18 + $0x1980] sm:$0xff]  ;;  %v1473_v17 = vld [vmem:[%s6833_s18 + $0x1998] sm:$0xff] }
  0x99   : > { %1466 = vst [vmem:[%s6841_s19 + $0x868] sm:$0xff] %v1465_v13  ;;  %1468 = vst [vmem:[%s6841_s19 + $0x870] sm:$0xff] %v1467_v14  ;;  %v1475_v18 = vld [vmem:[%s6833_s18 + $0x19b0] sm:$0xff]  ;;  %v1477_v19 = vld [vmem:[%s6833_s18 + $0x19c8] sm:$0xff] }
  0x9a   : > { %1470 = vst [vmem:[%s6841_s19 + $0x878] sm:$0xff] %v1469_v15  ;;  %1472 = vst [vmem:[%s6841_s19 + $0x880] sm:$0xff] %v1471_v16  ;;  %v1479_v20 = vld [vmem:[%s6833_s18 + $0x19e0] sm:$0xff]  ;;  %v1481_v21 = vld [vmem:[%s6833_s18 + $0x19f8] sm:$0xff] }
  0x9b   : > { %1474 = vst [vmem:[%s6841_s19 + $0x888] sm:$0xff] %v1473_v17  ;;  %1476 = vst [vmem:[%s6841_s19 + $0x890] sm:$0xff] %v1475_v18  ;;  %v1483_v22 = vld [vmem:[%s6833_s18 + $0x1a10] sm:$0xff]  ;;  %v1485_v23 = vld [vmem:[%s6833_s18 + $0x1a28] sm:$0xff] }
  0x9c   : > { %1478 = vst [vmem:[%s6841_s19 + $0x898] sm:$0xff] %v1477_v19  ;;  %1480 = vst [vmem:[%s6841_s19 + $0x8a0] sm:$0xff] %v1479_v20  ;;  %v1487_v24 = vld [vmem:[%s6833_s18 + $0x1a40] sm:$0xff]  ;;  %v1489_v25 = vld [vmem:[%s6833_s18 + $0x1a58] sm:$0xff] }
  0x9d   : > { %1482 = vst [vmem:[%s6841_s19 + $0x8a8] sm:$0xff] %v1481_v21  ;;  %1484 = vst [vmem:[%s6841_s19 + $0x8b0] sm:$0xff] %v1483_v22  ;;  %v1491_v26 = vld [vmem:[%s6833_s18 + $0x1a70] sm:$0xff]  ;;  %v1493_v27 = vld [vmem:[%s6833_s18 + $0x1a88] sm:$0xff] }
  0x9e   : > { %1486 = vst [vmem:[%s6841_s19 + $0x8b8] sm:$0xff] %v1485_v23  ;;  %1488 = vst [vmem:[%s6841_s19 + $0x8c0] sm:$0xff] %v1487_v24  ;;  %v1495_v28 = vld [vmem:[%s6833_s18 + $0x1aa0] sm:$0xff]  ;;  %v1497_v29 = vld [vmem:[%s6833_s18 + $0x1ab8] sm:$0xff] }
  0x9f   : > { %1490 = vst [vmem:[%s6841_s19 + $0x8c8] sm:$0xff] %v1489_v25  ;;  %1492 = vst [vmem:[%s6841_s19 + $0x8d0] sm:$0xff] %v1491_v26  ;;  %v1499_v30 = vld [vmem:[%s6833_s18 + $0x1ad0] sm:$0xff]  ;;  %v1501_v31 = vld [vmem:[%s6833_s18 + $0x1ae8] sm:$0xff] }
  0xa0   : > { %1494 = vst [vmem:[%s6841_s19 + $0x8d8] sm:$0xff] %v1493_v27  ;;  %1496 = vst [vmem:[%s6841_s19 + $0x8e0] sm:$0xff] %v1495_v28  ;;  %v1503_v32 = vld [vmem:[%s6833_s18 + $0x1b00] sm:$0xff]  ;;  %v1505_v33 = vld [vmem:[%s6833_s18 + $0x1b18] sm:$0xff] }
  0xa1   : > { %1498 = vst [vmem:[%s6841_s19 + $0x8e8] sm:$0xff] %v1497_v29  ;;  %1500 = vst [vmem:[%s6841_s19 + $0x8f0] sm:$0xff] %v1499_v30  ;;  %v1507_v34 = vld [vmem:[%s6833_s18 + $0x1b30] sm:$0xff]  ;;  %v1509_v35 = vld [vmem:[%s6833_s18 + $0x1b48] sm:$0xff] }
  0xa2   : > { %1502 = vst [vmem:[%s6841_s19 + $0x8f8] sm:$0xff] %v1501_v31  ;;  %1504 = vst [vmem:[%s6841_s19 + $0x900] sm:$0xff] %v1503_v32  ;;  %v1511_v36 = vld [vmem:[%s6833_s18 + $0x1b60] sm:$0xff]  ;;  %v1513_v37 = vld [vmem:[%s6833_s18 + $0x1b78] sm:$0xff] }
  0xa3   : > { %1506 = vst [vmem:[%s6841_s19 + $0x908] sm:$0xff] %v1505_v33  ;;  %1508 = vst [vmem:[%s6841_s19 + $0x910] sm:$0xff] %v1507_v34  ;;  %v1515_v38 = vld [vmem:[%s6833_s18 + $0x1b90] sm:$0xff]  ;;  %v1517_v39 = vld [vmem:[%s6833_s18 + $0x1ba8] sm:$0xff] }
  0xa4   : > { %1510 = vst [vmem:[%s6841_s19 + $0x918] sm:$0xff] %v1509_v35  ;;  %1512 = vst [vmem:[%s6841_s19 + $0x920] sm:$0xff] %v1511_v36  ;;  %v1519_v40 = vld [vmem:[%s6833_s18 + $0x1bc0] sm:$0xff]  ;;  %v1521_v41 = vld [vmem:[%s6833_s18 + $0x1bd8] sm:$0xff] }
  0xa5   : > { %1514 = vst [vmem:[%s6841_s19 + $0x928] sm:$0xff] %v1513_v37  ;;  %1516 = vst [vmem:[%s6841_s19 + $0x930] sm:$0xff] %v1515_v38  ;;  %v1523_v42 = vld [vmem:[%s6833_s18 + $0x1bf0] sm:$0xff]  ;;  %v1525_v43 = vld [vmem:[%s6833_s18 + $0x1c08] sm:$0xff] }
  0xa6   : > { %1518 = vst [vmem:[%s6841_s19 + $0x938] sm:$0xff] %v1517_v39  ;;  %1520 = vst [vmem:[%s6841_s19 + $0x940] sm:$0xff] %v1519_v40  ;;  %v1527_v44 = vld [vmem:[%s6833_s18 + $0x1c20] sm:$0xff]  ;;  %v1529_v45 = vld [vmem:[%s6833_s18 + $0x1c38] sm:$0xff] }
  0xa7   : > { %1522 = vst [vmem:[%s6841_s19 + $0x948] sm:$0xff] %v1521_v41  ;;  %1524 = vst [vmem:[%s6841_s19 + $0x950] sm:$0xff] %v1523_v42  ;;  %v1531_v46 = vld [vmem:[%s6833_s18 + $0x1c50] sm:$0xff]  ;;  %v1533_v47 = vld [vmem:[%s6833_s18 + $0x1c68] sm:$0xff] }
  0xa8   : > { %1526 = vst [vmem:[%s6841_s19 + $0x958] sm:$0xff] %v1525_v43  ;;  %1528 = vst [vmem:[%s6841_s19 + $0x960] sm:$0xff] %v1527_v44  ;;  %v1535_v48 = vld [vmem:[%s6833_s18 + $0x1c80] sm:$0xff]  ;;  %v1537_v49 = vld [vmem:[%s6833_s18 + $0x1c98] sm:$0xff] }
  0xa9   : > { %1530 = vst [vmem:[%s6841_s19 + $0x968] sm:$0xff] %v1529_v45  ;;  %1532 = vst [vmem:[%s6841_s19 + $0x970] sm:$0xff] %v1531_v46  ;;  %v1539_v50 = vld [vmem:[%s6833_s18 + $0x1cb0] sm:$0xff]  ;;  %v1541_v51 = vld [vmem:[%s6833_s18 + $0x1cc8] sm:$0xff] }
  0xaa   : > { %1534 = vst [vmem:[%s6841_s19 + $0x978] sm:$0xff] %v1533_v47  ;;  %1536 = vst [vmem:[%s6841_s19 + $0x980] sm:$0xff] %v1535_v48  ;;  %v1543_v52 = vld [vmem:[%s6833_s18 + $0x1ce0] sm:$0xff]  ;;  %v1545_v53 = vld [vmem:[%s6833_s18 + $0x1cf8] sm:$0xff] }
  0xab   : > { %1538 = vst [vmem:[%s6841_s19 + $0x988] sm:$0xff] %v1537_v49  ;;  %1540 = vst [vmem:[%s6841_s19 + $0x990] sm:$0xff] %v1539_v50  ;;  %v1547_v54 = vld [vmem:[%s6833_s18 + $0x1d10] sm:$0xff]  ;;  %v1549_v55 = vld [vmem:[%s6833_s18 + $0x1d28] sm:$0xff] }
  0xac   : > { %1542 = vst [vmem:[%s6841_s19 + $0x998] sm:$0xff] %v1541_v51  ;;  %1544 = vst [vmem:[%s6841_s19 + $0x9a0] sm:$0xff] %v1543_v52  ;;  %v1551_v56 = vld [vmem:[%s6833_s18 + $0x1d40] sm:$0xff]  ;;  %v1553_v57 = vld [vmem:[%s6833_s18 + $0x1d58] sm:$0xff] }
  0xad   : > { %1546 = vst [vmem:[%s6841_s19 + $0x9a8] sm:$0xff] %v1545_v53  ;;  %1548 = vst [vmem:[%s6841_s19 + $0x9b0] sm:$0xff] %v1547_v54  ;;  %v1555_v58 = vld [vmem:[%s6833_s18 + $0x1d70] sm:$0xff]  ;;  %v1557_v59 = vld [vmem:[%s6833_s18 + $0x1d88] sm:$0xff] }
  0xae   : > { %1550 = vst [vmem:[%s6841_s19 + $0x9b8] sm:$0xff] %v1549_v55  ;;  %1552 = vst [vmem:[%s6841_s19 + $0x9c0] sm:$0xff] %v1551_v56  ;;  %v1559_v60 = vld [vmem:[%s6833_s18 + $0x1da0] sm:$0xff]  ;;  %v1561_v61 = vld [vmem:[%s6833_s18 + $0x1db8] sm:$0xff] }
  0xaf   : > { %1554 = vst [vmem:[%s6841_s19 + $0x9c8] sm:$0xff] %v1553_v57  ;;  %1556 = vst [vmem:[%s6841_s19 + $0x9d0] sm:$0xff] %v1555_v58  ;;  %v1563_v62 = vld [vmem:[%s6833_s18 + $0x1dd0] sm:$0xff]  ;;  %v1565_v63 = vld [vmem:[%s6833_s18 + $0x1de8] sm:$0xff] }
  0xb0   : > { %1558 = vst [vmem:[%s6841_s19 + $0x9d8] sm:$0xff] %v1557_v59  ;;  %1560 = vst [vmem:[%s6841_s19 + $0x9e0] sm:$0xff] %v1559_v60 }
  0xb1   : > { %1562 = vst [vmem:[%s6841_s19 + $0x9e8] sm:$0xff] %v1561_v61  ;;  %1564 = vst [vmem:[%s6841_s19 + $0x9f0] sm:$0xff] %v1563_v62 }
  0xb2   : > { %1566 = vst [vmem:[%s6841_s19 + $0x9f8] sm:$0xff] %v1565_v63 }
  0xb3 PF: > { %p5644_p5 = scmp.ge.s32.totalorder %s6742_s29, 1  ;;  %p1588_p6 = scmp.lt.s32.totalorder %s6742_s29, 4 }
  0xb5   : > { %p1589_p7 = pnand %p5644_p5, %p1588_p6 }
  0xb6   : > { %s1595_s20 = sand.u32 (!%p1589_p7), 1, %s6734_s27   ;;  %s5645_s21 = sshll.u32 (!%p1589_p7), %s6813_s30, 1 }
  0xb7   : > { %1592 = sbr.rel (%p1589_p7) target bundleno = 2008 (0x7d8), region = 86  ;;  %p1634_p8 = scmp.lt.s32.totalorder (!%p1589_p7), %s5645_s21, 5 }
  0xb8   : > { %s6178_s22 = smul.u32 (!%p1589_p7), 2560, %s1595_s20  ;;  %s5646_s23 = sshll.u32 (!%p1589_p7), %s6813_s30, 5 }
  0xb9   : > { %p1639_p9 = scmp.lt.s32.totalorder (!%p1589_p7), %s5646_s23, 95  ;;  %p5648_p10 = scmp.ne.s32.totalorder (!%p1589_p7), %s6813_s30, 0 }
  0xba   : > { %s7493_s27 = scalar_lea.vmem (!%p1589_p7), [#allocation4], %s6178_s22 }
  0xbe   : > { %s8388_s21 = smov (!%p1634_p8, %s5645_s21), 5  ;;  %s8390_s23 = smov (!%p1639_p9, %s5646_s23), 95 }
  0xbf   : > { %s1636_s26 = scalar_lea.vmem %s8378_s3, %s8388_s21  ;;  %s5647_s29 = sshll.u32 %s8390_s23, 2  ;;  %v1651_v0 = vld [vmem:[%s8375_s0] sm:$0xff] (!%p5648_p10)  ;;  %v1652_v2 = vld [vmem:[%s8375_s0 + $0x8] sm:$0xff] (!%p5648_p10)  ;;  %v6744_v8 = vmov (!%p5648_p10), 0   ;;  %v1653_v15 = vld [vmem:[%s8375_s0 + $0x10] sm:$0xff] (!%p5648_p10)  ;;  %vm1848_vm0 = vcmask (!%p5648_p10), 261120  }
  0xc0   : > { %s7491_s13 = scalar_lea.vmem %s8379_s4, %s5647_s29  ;;  %1648 = sbr.rel (%p5648_p10) target bundleno = 687 (0x2af), region = 94  ;;  %v1659_v1 = vld [vmem:[%s8375_s0 + $0x40] sm:$0xff] (!%p5648_p10)  ;;  %v1660_v4 = vld [vmem:[%s8375_s0 + $0x48] sm:$0xff] (!%p5648_p10)  ;;  %1884 = vmatprep.mubr.bf16.mxu0 (!%p5648_p10), %v6744_v8  ;;  %1927 = vmatprep.mubr.bf16.mxu1 (!%p5648_p10), %v6744_v8  ;;  %v1661_v17 = vld [vmem:[%s8375_s0 + $0x50] sm:$0xff] (!%p5648_p10)  ;;  %vm2322_vm1 = vcmask (!%p5648_p10), 1040384   ;;  %vm2343_vm2 = vcmask (!%p5648_p10), 1041408  }
  0xc1   : > { %v5651_v3 = vcombine.high (!%p5648_p10), %v1651_v0, %v1659_v1  ;;  %v5650_v5 = vcombine.low (!%p5648_p10), %v1651_v0, %v1659_v1  ;;  %v1667_v6 = vld [vmem:[%s8375_s0 + $0x80] sm:$0xff] (!%p5648_p10)  ;;  %v5653_v9 = vcombine.high (!%p5648_p10), %v1652_v2, %v1660_v4  ;;  %v5652_v10 = vcombine.low (!%p5648_p10), %v1652_v2, %v1660_v4  ;;  %v1668_v12 = vld [vmem:[%s8375_s0 + $0x88] sm:$0xff] (!%p5648_p10)  ;;  %v1654_v18 = vld [vmem:[%s8375_s0 + $0x18] sm:$0xff] (!%p5648_p10)  ;;  %s6746_s25 = smov (!%p5648_p10), 114   ;;  %s6747_s29 = smov (!%p5648_p10), 127  }
  0xc2   : > { %v1675_v7 = vld [vmem:[%s8375_s0 + $0xc0] sm:$0xff] (!%p5648_p10)  ;;  %v1676_v13 = vld [vmem:[%s8375_s0 + $0xc8] sm:$0xff] (!%p5648_p10)  ;;  %v1662_v19 = vld [vmem:[%s8375_s0 + $0x58] sm:$0xff] (!%p5648_p10)  ;;  %v5655_v21 = vcombine.high (!%p5648_p10), %v1653_v15, %v1661_v17  ;;  %v5654_v28 = vcombine.low (!%p5648_p10), %v1653_v15, %v1661_v17  ;;  %v6745_v2 = vmov (!%p5648_p10), 0.0|0.0   ;;  %s6748_s10 = smov (!%p5648_p10), 113   ;;  %vm2592_vm3 = vcmask (!%p5648_p10), 932864  }
  0xc3   : > { %v5667_v11 = vcombine.high (!%p5648_p10), %v1667_v6, %v1675_v7  ;;  %1852 = vmatprep.subr.bf16.mxu0 (!%p5648_p10), %v5651_v3  ;;  %v5669_v14 = vcombine.high (!%p5648_p10), %v1668_v12, %v1676_v13  ;;  %1895 = vmatprep.subr.bf16.mxu1 (!%p5648_p10), %v5653_v9  ;;  %v5666_v16 = vcombine.low (!%p5648_p10), %v1667_v6, %v1675_v7  ;;  %v1669_v23 = vld [vmem:[%s8375_s0 + $0x90] sm:$0xff] (!%p5648_p10)  ;;  %v7543_v25 = vld [vmem:[%s8376_s1] sm:$0xff] (!%p5648_p10)   ;;  %v1670_v26 = vld [vmem:[%s8375_s0 + $0x98] sm:$0xff] (!%p5648_p10)  ;;  %v7621_v3 = vrot.slane (!%p5648_p10), %v6745_v2, 4 }
  0xc4   : > { %1853 = vmatpush1.bf16.msra.mxu0 (!%p5648_p10), %v5650_v5  ;;  %1896 = vmatpush1.bf16.msra.mxu1 (!%p5648_p10), %v5652_v10  ;;  %v5668_v20 = vcombine.low (!%p5648_p10), %v1668_v12, %v1676_v13  ;;  %v5657_v22 = vcombine.high (!%p5648_p10), %v1654_v18, %v1662_v19  ;;  %v1677_v24 = vld [vmem:[%s8375_s0 + $0xd0] sm:$0xff] (!%p5648_p10)  ;;  %v1678_v27 = vld [vmem:[%s8375_s0 + $0xd8] sm:$0xff] (!%p5648_p10)  ;;  %v5656_v29 = vcombine.low (!%p5648_p10), %v1654_v18, %v1662_v19  ;;  %v1655_v32 = vld [vmem:[%s8375_s0 + $0x20] sm:$0xff] (!%p5648_p10)  ;;  %vm2489_vm4 = vcmask (!%p5648_p10), 1039360  }
  0xc5   : > { %1854 = vmatprep.subr.bf16.mxu0 (!%p5648_p10), %v5667_v11  ;;  %1897 = vmatprep.subr.bf16.mxu1 (!%p5648_p10), %v5669_v14  ;;  %v5671_v30 = vcombine.high (!%p5648_p10), %v1669_v23, %v1677_v24  ;;  %v5673_v31 = vcombine.high (!%p5648_p10), %v1670_v26, %v1678_v27  ;;  %v1663_v33 = vld [vmem:[%s8375_s0 + $0x60] sm:$0xff] (!%p5648_p10)  ;;  %v1656_v34 = vld [vmem:[%s8375_s0 + $0x28] sm:$0xff] (!%p5648_p10)  ;;  %v5670_v36 = vcombine.low (!%p5648_p10), %v1669_v23, %v1677_v24  ;;  %v1657_v48 = vld [vmem:[%s8375_s0 + $0x30] sm:$0xff] (!%p5648_p10)  ;;  %vm2695_vm5 = vcmask (!%p5648_p10), 924672  }
  0xc6   : > { %v1664_v35 = vld [vmem:[%s8375_s0 + $0x68] sm:$0xff] (!%p5648_p10)  ;;  %v5672_v37 = vcombine.low (!%p5648_p10), %v1670_v26, %v1678_v27  ;;  %v5659_v38 = vcombine.high (!%p5648_p10), %v1655_v32, %v1663_v33  ;;  %v1671_v40 = vld [vmem:[%s8375_s0 + $0xa0] sm:$0xff] (!%p5648_p10)  ;;  %v5658_v44 = vcombine.low (!%p5648_p10), %v1655_v32, %v1663_v33  ;;  %v1665_v49 = vld [vmem:[%s8375_s0 + $0x70] sm:$0xff] (!%p5648_p10)  ;;  %2590 = vrot.lane.b32.xlu1 (!%p5648_p10), %v6745_v2, %s6746_s25 }
  0xc7   : > { %v5661_v39 = vcombine.high %v1656_v34, %v1664_v35  ;;  %v1679_v41 = vld [vmem:[%s8375_s0 + $0xe0] sm:$0xff]  ;;  %v1672_v42 = vld [vmem:[%s8375_s0 + $0xa8] sm:$0xff]  ;;  %v5660_v45 = vcombine.low %v1656_v34, %v1664_v35  ;;  %v1658_v50 = vld [vmem:[%s8375_s0 + $0x38] sm:$0xff]  ;;  %v5663_v54 = vcombine.high %v1657_v48, %v1665_v49  ;;  %v5662_v60 = vcombine.low %v1657_v48, %v1665_v49  ;;  %2487 = vrot.lane.b32.xlu0 %v7621_v3, %s6747_s29 }
  0xc8   : > { %1855 = vmatpush1.bf16.msra.mxu0 %v5666_v16  ;;  %1898 = vmatpush1.bf16.msra.mxu1 %v5668_v20  ;;  %v1680_v43 = vld [vmem:[%s8375_s0 + $0xe8] sm:$0xff]  ;;  %v5675_v46 = vcombine.high %v1671_v40, %v1679_v41  ;;  %v1666_v51 = vld [vmem:[%s8375_s0 + $0x78] sm:$0xff]  ;;  %v5674_v52 = vcombine.low %v1671_v40, %v1679_v41  ;;  %v1673_v56 = vld [vmem:[%s8375_s0 + $0xb0] sm:$0xff] }
  0xc9   : > { %1938 = vmatprep.subr.bf16.mxu0 %v5655_v21  ;;  %1981 = vmatprep.subr.bf16.mxu1 %v5657_v22  ;;  %v5677_v47 = vcombine.high %v1672_v42, %v1680_v43  ;;  %v5676_v53 = vcombine.low %v1672_v42, %v1680_v43  ;;  %v5665_v55 = vcombine.high %v1658_v50, %v1666_v51  ;;  %v1681_v57 = vld [vmem:[%s8375_s0 + $0xf0] sm:$0xff]  ;;  %v1674_v58 = vld [vmem:[%s8375_s0 + $0xb8] sm:$0xff] }
  0xca   : > { %v1682_v59 = vld [vmem:[%s8375_s0 + $0xf8] sm:$0xff]  ;;  %v5664_v61 = vcombine.low %v1658_v50, %v1666_v51  ;;  %v5679_v62 = vcombine.high %v1673_v56, %v1681_v57  ;;  %v5678_v0 = vcombine.low %v1673_v56, %v1681_v57 }
  0xcb   : > { %5682 = vmatmul.mubr.msk.bf16.vlgmr.msra.gmra.mrb[0].mxu0 %vm1848_vm0, %v7543_v25  ;;  %5683 = vmatmul.mubr.msk.bf16.vlgmr.msra.gmra.mrb[0].mxu1 %vm1848_vm0, %v7543_v25  ;;  %v5681_v63 = vcombine.high %v1674_v58, %v1682_v59  ;;  %v5680_v1 = vcombine.low %v1674_v58, %v1682_v59 }
  0xcc   : > { %1939 = vmatpush1.bf16.msra.mxu0 %v5654_v28  ;;  %1982 = vmatpush1.bf16.msra.mxu1 %v5656_v29 }
  0xcd   : > { %1940 = vmatprep.subr.bf16.mxu0 %v5671_v30  ;;  %1983 = vmatprep.subr.bf16.mxu1 %v5673_v31 }
  0xce   : > { %1970 = vmatprep.mubr.bf16.mxu0 %v6744_v8  ;;  %2013 = vmatprep.mubr.bf16.mxu1 %v6744_v8 }
  0xd0   : > { %1941 = vmatpush1.bf16.msra.mxu0 %v5670_v36  ;;  %1984 = vmatpush1.bf16.msra.mxu1 %v5672_v37 }
  0xd1   : > { %2024 = vmatprep.subr.bf16.mxu0 %v5659_v38  ;;  %2067 = vmatprep.subr.bf16.mxu1 %v5661_v39 }
  0xd3   : > { %5684 = vmatmul.mubr.msk.bf16.vlgmr.msra.gmra.mrb[4].mxu0 %vm1848_vm0, %v7543_v25  ;;  %5685 = vmatmul.mubr.msk.bf16.vlgmr.msra.gmra.mrb[4].mxu1 %vm1848_vm0, %v7543_v25 }
  0xd4   : > { %2025 = vmatpush1.bf16.msra.mxu0 %v5658_v44  ;;  %2068 = vmatpush1.bf16.msra.mxu1 %v5660_v45 }
  0xd5   : > { %2026 = vmatprep.subr.bf16.mxu0 %v5675_v46  ;;  %2069 = vmatprep.subr.bf16.mxu1 %v5677_v47 }
  0xd6   : > { %2056 = vmatprep.mubr.bf16.mxu0 %v6744_v8  ;;  %2099 = vmatprep.mubr.bf16.mxu1 %v6744_v8 }
  0xd8   : > { %2027 = vmatpush1.bf16.msra.mxu0 %v5674_v52  ;;  %2070 = vmatpush1.bf16.msra.mxu1 %v5676_v53 }
  0xd9   : > { %2110 = vmatprep.subr.bf16.mxu0 %v5663_v54  ;;  %2153 = vmatprep.subr.bf16.mxu1 %v5665_v55 }
  0xdb   : > { %5686 = vmatmul.mubr.msk.bf16.vlgmr.msra.gmra.mrb[8].mxu0 %vm1848_vm0, %v7543_v25  ;;  %5687 = vmatmul.mubr.msk.bf16.vlgmr.msra.gmra.mrb[8].mxu1 %vm1848_vm0, %v7543_v25 }
  0xdc   : > { %2111 = vmatpush1.bf16.msra.mxu0 %v5662_v60  ;;  %2154 = vmatpush1.bf16.msra.mxu1 %v5664_v61 }
  0xdd   : > { %2112 = vmatprep.subr.bf16.mxu0 %v5679_v62  ;;  %2155 = vmatprep.subr.bf16.mxu1 %v5681_v63 }
  0xde   : > { %2142 = vmatprep.mubr.bf16.mxu0 %v6744_v8  ;;  %2185 = vmatprep.mubr.bf16.mxu1 %v6744_v8 }
  0xe0   : > { %2113 = vmatpush1.bf16.msra.mxu0 %v5678_v0  ;;  %2156 = vmatpush1.bf16.msra.mxu1 %v5680_v1 }
  0xe3   : > { %5688 = vmatmul.mubr.msk.bf16.vlgmr.msra.gmra.mrb[12].mxu0 %vm1848_vm0, %v7543_v25  ;;  %5689 = vmatmul.mubr.msk.bf16.vlgmr.msra.gmra.mrb[12].mxu1 %vm1848_vm0, %v7543_v25 }
 0x19e   : > { %v1886_v4 = vpop.f32.mrb[0].mxu0  ;;  %v1929_v5 = vpop.f32.mrb[0].mxu1 }
 0x19f   : > { %v1888_v6 = vpop.f32.mrb[1].mxu0  ;;  %v1931_v7 = vpop.f32.mrb[1].mxu1 }
 0x1a0   : > { %v1890_v8 = vpop.f32.mrb[2].mxu0  ;;  %v1933_v9 = vpop.f32.mrb[2].mxu1 }
 0x1a1   : > { %v1892_v10 = vpop.f32.mrb[3].mxu0  ;;  %v1935_v11 = vpop.f32.mrb[3].mxu1 }
 0x1a6   : > { %v1972_v12 = vpop.f32.mrb[4].mxu0  ;;  %v2015_v14 = vpop.f32.mrb[4].mxu1 }
 0x1a7   : > { %v2196_v13 = vmax.f32 %v1886_v4, %v1972_v12  ;;  %v1974_v15 = vpop.f32.mrb[5].mxu0  ;;  %v2198_v16 = vmax.f32 %v1929_v5, %v2015_v14  ;;  %v2017_v18 = vpop.f32.mrb[5].mxu1 }
 0x1a8   : > { %v2197_v17 = vmax.f32 %v1888_v6, %v1974_v15  ;;  %v1976_v19 = vpop.f32.mrb[6].mxu0  ;;  %v2199_v20 = vmax.f32 %v1931_v7, %v2017_v18  ;;  %v2019_v22 = vpop.f32.mrb[6].mxu1 }
 0x1a9   : > { %v2200_v21 = vmax.f32 %v1890_v8, %v1976_v19  ;;  %v1978_v23 = vpop.f32.mrb[7].mxu0  ;;  %v2202_v24 = vmax.f32 %v1933_v9, %v2019_v22  ;;  %v2021_v26 = vpop.f32.mrb[7].mxu1 }
 0x1aa   : > { %v2201_v25 = vmax.f32 %v1892_v10, %v1978_v23  ;;  %v2203_v27 = vmax.f32 %v1935_v11, %v2021_v26 }
 0x1ae   : > { %v2058_v28 = vpop.f32.mrb[8].mxu0  ;;  %v2101_v30 = vpop.f32.mrb[8].mxu1 }
 0x1af   : > { %v2204_v29 = vmax.f32 %v2196_v13, %v2058_v28  ;;  %v2060_v31 = vpop.f32.mrb[9].mxu0  ;;  %v2206_v32 = vmax.f32 %v2198_v16, %v2101_v30  ;;  %v2103_v34 = vpop.f32.mrb[9].mxu1 }
 0x1b0   : > { %v2205_v33 = vmax.f32 %v2197_v17, %v2060_v31  ;;  %v2062_v35 = vpop.f32.mrb[10].mxu0  ;;  %v2207_v36 = vmax.f32 %v2199_v20, %v2103_v34  ;;  %v2105_v38 = vpop.f32.mrb[10].mxu1 }
 0x1b1   : > { %v2208_v37 = vmax.f32 %v2200_v21, %v2062_v35  ;;  %v2064_v39 = vpop.f32.mrb[11].mxu0  ;;  %v2210_v40 = vmax.f32 %v2202_v24, %v2105_v38  ;;  %v2107_v42 = vpop.f32.mrb[11].mxu1 }
 0x1b2   : > { %v7626_v41 = vmax.f32 %v2201_v25, %v2064_v39  ;;  %v2211_v43 = vmax.f32 %v2203_v27, %v2107_v42 }
 0x1b6   : > { %v2144_v44 = vpop.f32.mrb[12].mxu0  ;;  %v2187_v46 = vpop.f32.mrb[12].mxu1 }
 0x1b7   : > { %v2212_v45 = vmax.f32 %v2204_v29, %v2144_v44  ;;  %v2146_v47 = vpop.f32.mrb[13].mxu0  ;;  %v2214_v48 = vmax.f32 %v2206_v32, %v2187_v46  ;;  %v2189_v50 = vpop.f32.mrb[13].mxu1 }
 0x1b8   : > { %v2213_v49 = vmax.f32 %v2205_v33, %v2146_v47  ;;  %v2148_v51 = vpop.f32.mrb[14].mxu0  ;;  %v2215_v53 = vmax.f32 %v2207_v36, %v2189_v50  ;;  %v2191_v55 = vpop.f32.mrb[14].mxu1 }
 0x1b9   : > { %v7628_v52 = vmax.f32 %v2212_v45, 0.0  ;;  %v2216_v54 = vmax.f32 %v2208_v37, %v2148_v51  ;;  %v7630_v56 = vpop.f32.mrb[15].mxu0  ;;  %v7632_v57 = vmax.f32 %v2214_v48, 0.0  ;;  %v2218_v59 = vmax.f32 %v2210_v40, %v2191_v55  ;;  %v2193_v61 = vpop.f32.mrb[15].mxu1 }
 0x1ba   : > { %v7634_v58 = vmax.f32 %v2213_v49, 0.0  ;;  %v2217_v60 = vmax.f32 %v7626_v41, %v7630_v56  ;;  %v7638_v62 = vmax.f32 %v2215_v53, 0.0  ;;  %v2219_v0 = vmax.f32 %v2211_v43, %v2193_v61 }
 0x1bb   : > { %v7640_v63 = vmax.f32 %v2216_v54, 0.0  ;;  %v2230_v1 = vrot.slane %v7628_v52, 1  ;;  %v7643_v2 = vmax.f32 %v2218_v59, 0.0  ;;  %v2278_v4 = vrot.slane %v7632_v57, 7 }
 0x1bc   : > { %v2231_v5 = vrot.slane %v7634_v58, 1  ;;  %v2279_v6 = vrot.slane %v7638_v62, 7  ;;  %v7651_v9 = vmax.f32 %v2219_v0, 0.0  ;;  %v2234_v19 = vrot.slane %v7628_v52, 2 }
 0x1bd   : > { %v2325_v7 = vsel %vm2322_vm1, %v2230_v1, %v7632_v57  ;;  %v2260_v8 = vrot.slane %v7640_v63, 1  ;;  %v2323_v10 = vsel %vm2322_vm1, %v7628_v52, %v2278_v4  ;;  %v2298_v12 = vrot.slane %v7643_v2, 7 }
 0x1be   : > { %v2346_v11 = vsel %vm2343_vm2, %v2325_v7, 0.0  ;;  %v2344_v13 = vsel %vm2343_vm2, %v2323_v10, 0.0  ;;  %v2324_v14 = vsel %vm2322_vm1, %v7634_v58, %v2279_v6  ;;  %v2326_v18 = vsel %vm2322_vm1, %v2231_v5, %v7638_v62 }
 0x1bf   : > { %v7664_v15 = vpack.c.bf16 %v2346_v11, %v2346_v11  ;;  %v7666_v16 = vpack.c.bf16 %v2344_v13, %v2344_v13  ;;  %v2345_v17 = vsel %vm2343_vm2, %v2324_v14, 0.0  ;;  %v2347_v21 = vsel %vm2343_vm2, %v2326_v18, 0.0 }
 0x1c0   : > { %v7672_v20 = vpack.c.bf16 %v2345_v17, %v2345_v17  ;;  %v5692_v22 = vrot.slane %v7632_v57, 9  ;;  %v2235_v23 = vrot.slane %v7634_v58, 2  ;;  %v7681_v24 = vpack.c.bf16 %v2347_v21, %v2347_v21 }
 0x1c1   : > { %2386 = vst [vmem:[#allocation2 + $0x10] sm:$0xf] %v7664_v15  ;;  %2550 = vrot.lane.b32.xlu1 %v7666_v16, %s6746_s25  ;;  %2384 = vst [vmem:[#allocation2] sm:$0xf] %v7666_v16  ;;  %v5693_v25 = vrot.slane %v7638_v62, 9  ;;  %v2238_v26 = vrot.slane %v7628_v52, 3  ;;  %v2339_v56 = vsel %vm2322_vm1, %v7640_v63, %v2298_v12 }
 0x1c2   : > { %v5694_v27 = vrot.slane %v7632_v57, 10  ;;  %2552 = vrot.lane.b32.xlu0 %v7672_v20, %s6746_s25  ;;  %2385 = vst [vmem:[#allocation2 + $0x8] sm:$0xf] %v7672_v20  ;;  %v2327_v28 = vsel %vm2322_vm1, %v2234_v19, %v5692_v22  ;;  %v2239_v29 = vrot.slane %v7634_v58, 3  ;;  %v5695_v30 = vrot.slane %v7638_v62, 10 }
 0x1c3   : > { %v2242_v31 = vrot.slane %v7628_v52, 4  ;;  %2387 = vst [vmem:[#allocation2 + $0x18] sm:$0xf] %v7681_v24  ;;  %v2348_v32 = vsel %vm2343_vm2, %v2327_v28, 0.0  ;;  %v2328_v33 = vsel %vm2322_vm1, %v2235_v23, %v5693_v25  ;;  %v5696_v35 = vrot.slane %v7632_v57, 11 }
 0x1c4   : > { %v2329_v34 = vsel %vm2322_vm1, %v2238_v26, %v5694_v27  ;;  %v7698_v36 = vpack.c.bf16 %v2348_v32, %v2348_v32  ;;  %v2349_v37 = vsel %vm2343_vm2, %v2328_v33, 0.0  ;;  %v2330_v39 = vsel %vm2322_vm1, %v2239_v29, %v5695_v30 }
 0x1c5   : > { %v2350_v38 = vsel %vm2343_vm2, %v2329_v34, 0.0  ;;  %2554 = vrot.lane.b32.xlu1 %v7664_v15, %s6746_s25  ;;  %v7705_v40 = vpack.c.bf16 %v2349_v37, %v2349_v37  ;;  %v2351_v43 = vsel %vm2343_vm2, %v2330_v39, 0.0  ;;  %v2331_v44 = vsel %vm2322_vm1, %v2242_v31, %v5696_v35 }
 0x1c6   : > { %v7707_v42 = vpack.c.bf16 %v2350_v38, %v2350_v38  ;;  %2556 = vrot.lane.b32.xlu0 %v7681_v24, %s6746_s25  ;;  %2388 = vst [vmem:[#allocation2 + $0x20] sm:$0xf] %v7698_v36  ;;  %v7714_v45 = vpack.c.bf16 %v2351_v43, %v2351_v43  ;;  %v2352_v46 = vsel %vm2343_vm2, %v2331_v44, 0.0  ;;  %v2243_v47 = vrot.slane %v7634_v58, 4 }
 0x1c7   : > { %v5697_v48 = vrot.slane %v7638_v62, 11  ;;  %2389 = vst [vmem:[#allocation2 + $0x28] sm:$0xf] %v7705_v40  ;;  %v7721_v49 = vpack.c.bf16 %v2352_v46, %v2352_v46  ;;  %v2246_v50 = vrot.slane %v7628_v52, 5  ;;  %v5698_v51 = vrot.slane %v7632_v57, 12 }
 0x1c8   : > { %2390 = vst [vmem:[#allocation2 + $0x30] sm:$0xf] %v7707_v42  ;;  %v2247_v53 = vrot.slane %v7634_v58, 5  ;;  %2391 = vst [vmem:[#allocation2 + $0x38] sm:$0xf] %v7714_v45  ;;  %v5699_v55 = vrot.slane %v7638_v62, 12 }
 0x1c9   : > { %v2332_v54 = vsel %vm2322_vm1, %v2243_v47, %v5697_v48  ;;  %v2250_v59 = vrot.slane %v7628_v52, 6  ;;  %v5700_v61 = vrot.slane %v7632_v57, 13  ;;  %2558 = vrot.lane.b32.xlu1 %v7698_v36, %s6746_s25  ;;  %2392 = vst [vmem:[#allocation2 + $0x40] sm:$0xf] %v7721_v49  ;;  %v2333_v1 = vsel %vm2322_vm1, %v2246_v50, %v5698_v51 }
 0x1ca   : > { %v2353_v0 = vsel %vm2343_vm2, %v2332_v54, 0.0  ;;  %v2251_v5 = vrot.slane %v7634_v58, 6  ;;  %v5701_v7 = vrot.slane %v7638_v62, 13  ;;  %2560 = vrot.lane.b32.xlu0 %v7705_v40, %s6746_s25  ;;  %v2354_v11 = vsel %vm2343_vm2, %v2333_v1, 0.0 }
 0x1cb   : > { %v7740_v10 = vpack.c.bf16 %v2353_v0, %v2353_v0  ;;  %v2334_v13 = vsel %vm2322_vm1, %v2247_v53, %v5699_v55  ;;  %v2335_v14 = vsel %vm2322_vm1, %v2250_v59, %v5700_v61  ;;  %v7745_v17 = vpack.c.bf16 %v2354_v11, %v2354_v11  ;;  %v7892_v59 = vpop.permute.xlu1 %2590  ;;  %v7895_v61 = vpop.permute.xlu0 %2487 }
 0x1cc   : > { %v2355_v18 = vsel %vm2343_vm2, %v2334_v13, 0.0  ;;  %v2356_v19 = vsel %vm2343_vm2, %v2335_v14, 0.0  ;;  %v2336_v21 = vsel %vm2322_vm1, %v2251_v5, %v5701_v7  ;;  %v2225_v22 = vmax.f32 %v2217_v60, 0.0 }
 0x1cd   : > { %2393 = vst [vmem:[#allocation2 + $0x48] sm:$0xf] %v7740_v10  ;;  %v7754_v23 = vpack.c.bf16 %v2355_v18, %v2355_v18  ;;  %v7756_v25 = vpack.c.bf16 %v2356_v19, %v2356_v19  ;;  %v2357_v26 = vsel %vm2343_vm2, %v2336_v21, 0.0  ;;  %2562 = vrot.lane.b32.xlu1 %v7707_v42, %s6746_s25  ;;  %2394 = vst [vmem:[#allocation2 + $0x50] sm:$0xf] %v7745_v17  ;;  %v2254_v28 = vrot.slane %v7628_v52, 7 }
 0x1ce   : > { %v7762_v27 = vpack.c.bf16 %v2357_v26, %v2357_v26  ;;  %v2296_v41 = vrot.slane %v2278_v4, 7  ;;  %2564 = vrot.lane.b32.xlu0 %v7714_v45, %s6746_s25  ;;  %v2341_v52 = vsel %vm2322_vm1, %v2260_v8, %v7643_v2  ;;  %v2299_v57 = vrot.slane %v7651_v9, 7 }
 0x1cf   : > { %2395 = vst [vmem:[#allocation2 + $0x58] sm:$0xf] %v7754_v23  ;;  %2396 = vst [vmem:[#allocation2 + $0x60] sm:$0xf] %v7756_v25  ;;  %v2360_v4 = vsel %vm2343_vm2, %v2339_v56, 0.0  ;;  %v2362_v29 = vsel %vm2343_vm2, %v2341_v52, 0.0 }
 0x1d0   : > { %2397 = vst [vmem:[#allocation2 + $0x68] sm:$0xf] %v7762_v27  ;;  %v2337_v60 = vsel %vm2322_vm1, %v2254_v28, %v2296_v41  ;;  %v2261_v30 = vrot.slane %v2225_v22, 1  ;;  %v7785_v32 = vpack.c.bf16 %v2360_v4, %v2360_v4  ;;  %v7787_v12 = vpack.c.bf16 %v2362_v29, %v2362_v29 }
 0x1d1   : > { %v2358_v31 = vsel %vm2343_vm2, %v2337_v60, 0.0  ;;  %2566 = vrot.lane.b32.xlu1 %v7721_v49, %s6746_s25  ;;  %v2255_v2 = vrot.slane %v7634_v58, 7  ;;  %v2297_v8 = vrot.slane %v2279_v6, 7  ;;  %v2340_v33 = vsel %vm2322_vm1, %v2225_v22, %v2299_v57 }
 0x1d2   : > { %v7791_v63 = vpack.c.bf16 %v2358_v31, %v2358_v31  ;;  %2568 = vrot.lane.b32.xlu0 %v7740_v10, %s6746_s25  ;;  %2400 = vst [vmem:[#allocation2 + $0x80] sm:$0xf] %v7785_v32  ;;  %2402 = vst [vmem:[#allocation2 + $0x90] sm:$0xf] %v7787_v12  ;;  %v2361_v34 = vsel %vm2343_vm2, %v2340_v33, 0.0  ;;  %v2342_v35 = vsel %vm2322_vm1, %v2261_v30, %v7651_v9  ;;  %v2428_v9 = vrot.slane %v7664_v15, 4 }
 0x1d3   : > { %v2338_v37 = vsel %vm2322_vm1, %v2255_v2, %v2297_v8  ;;  %v7808_v38 = vpack.c.bf16 %v2361_v34, %v2361_v34  ;;  %v2363_v39 = vsel %vm2343_vm2, %v2342_v35, 0.0  ;;  %v2426_v43 = vrot.slane %v7666_v16, 4 }
 0x1d4   : > { %2398 = vst [vmem:[#allocation2 + $0x70] sm:$0xf] %v7791_v63  ;;  %v2359_v58 = vsel %vm2343_vm2, %v2338_v37, 0.0  ;;  %v7814_v62 = vpack.c.bf16 %v2363_v39, %v2363_v39  ;;  %v2430_v44 = vrot.slane %v7698_v36, 4  ;;  %v2432_v46 = vrot.slane %v7707_v42, 4 }
 0x1d5   : > { %2570 = vrot.lane.b32.xlu1 %v7745_v17, %s6746_s25  ;;  %v7816_v6 = vpack.c.bf16 %v2359_v58, %v2359_v58  ;;  %2401 = vst [vmem:[#allocation2 + $0x88] sm:$0xf] %v7808_v38  ;;  %v2434_v15 = vrot.slane %v7721_v49, 4  ;;  %v2429_v16 = vrot.slane %v7681_v24, 4  ;;  %v2436_v36 = vrot.slane %v7745_v17, 4 }
 0x1d6   : > { %2572 = vrot.lane.b32.xlu0 %v7754_v23, %s6746_s25  ;;  %2403 = vst [vmem:[#allocation2 + $0x98] sm:$0xf] %v7814_v62  ;;  %v2431_v42 = vrot.slane %v7705_v40, 4  ;;  %v2438_v47 = vrot.slane %v7756_v25, 4  ;;  %v2433_v48 = vrot.slane %v7714_v45, 4  ;;  %v2435_v24 = vrot.slane %v7740_v10, 4 }
 0x1d7   : > { %2399 = vst [vmem:[#allocation2 + $0x78] sm:$0xf] %v7816_v6  ;;  %v2437_v40 = vrot.slane %v7754_v23, 4  ;;  %v2439_v49 = vrot.slane %v7762_v27, 4  ;;  %v2427_v45 = vrot.slane %v7672_v20, 4  ;;  %v2441_v20 = vrot.slane %v7816_v6, 4 }
 0x1d8   : > { %v2440_v50 = vrot.slane %v7791_v63, 4  ;;  %v2443_v51 = vrot.slane %v7808_v38, 4  ;;  %v2442_v53 = vrot.slane %v7785_v32, 4  ;;  %v2445_v54 = vrot.slane %v7814_v62, 4 }
 0x1d9   : > { %2574 = vrot.lane.b32.xlu1 %v7756_v25, %s6746_s25  ;;  %v2444_v55 = vrot.slane %v7787_v12, 4  ;;  %v6749_v0 = vmov 0.0  }
 0x1da   : > { %2576 = vrot.lane.b32.xlu0 %v7762_v27, %s6746_s25  ;;  %2756 = vst [vmem:[#allocation3] sm:$0xff] %v6749_v0 }
 0x1dd   : > { %2451 = vrot.lane.b32.xlu1 %v2428_v9, %s6747_s29 }
 0x1de   : > { %2447 = vrot.lane.b32.xlu0 %v2426_v43, %s6747_s29 }
 0x1e1   : > { %2578 = vrot.lane.b32.xlu1 %v7791_v63, %s6746_s25 }
 0x1e2   : > { %2455 = vrot.lane.b32.xlu0 %v2430_v44, %s6747_s29 }
 0x1e5   : > { %2582 = vrot.lane.b32.xlu1 %v7785_v32, %s6746_s25 }
 0x1e6   : > { %2459 = vrot.lane.b32.xlu0 %v2432_v46, %s6747_s29 }
 0x1e9   : > { %2586 = vrot.lane.b32.xlu1 %v7787_v12, %s6746_s25 }
 0x1ea   : > { %2463 = vrot.lane.b32.xlu0 %v2434_v15, %s6747_s29 }
 0x1ed   : > { %2453 = vrot.lane.b32.xlu1 %v2429_v16, %s6747_s29 }
 0x1ee   : > { %2467 = vrot.lane.b32.xlu0 %v2436_v36, %s6747_s29 }
 0x1f1   : > { %2457 = vrot.lane.b32.xlu1 %v2431_v42, %s6747_s29 }
 0x1f2   : > { %2471 = vrot.lane.b32.xlu0 %v2438_v47, %s6747_s29 }
 0x1f5   : > { %2461 = vrot.lane.b32.xlu1 %v2433_v48, %s6747_s29 }
 0x1f6   : > { %2653 = vrot.lane.b32.xlu0 %v2426_v43, %s6748_s10 }
 0x1f9   : > { %2465 = vrot.lane.b32.xlu1 %v2435_v24, %s6747_s29 }
 0x1fa   : > { %2657 = vrot.lane.b32.xlu0 %v2428_v9, %s6748_s10 }
 0x1fd   : > { %2469 = vrot.lane.b32.xlu1 %v2437_v40, %s6747_s29 }
 0x1fe   : > { %2661 = vrot.lane.b32.xlu0 %v2430_v44, %s6748_s10 }
 0x201   : > { %2473 = vrot.lane.b32.xlu1 %v2439_v49, %s6747_s29 }
 0x202   : > { %2665 = vrot.lane.b32.xlu0 %v2432_v46, %s6748_s10 }
 0x205   : > { %2655 = vrot.lane.b32.xlu1 %v2427_v45, %s6748_s10 }
 0x206   : > { %2669 = vrot.lane.b32.xlu0 %v2434_v15, %s6748_s10 }
 0x209   : > { %2659 = vrot.lane.b32.xlu1 %v2429_v16, %s6748_s10 }
 0x20a   : > { %2673 = vrot.lane.b32.xlu0 %v2436_v36, %s6748_s10 }
 0x20d   : > { %2663 = vrot.lane.b32.xlu1 %v2431_v42, %s6748_s10 }
 0x20e   : > { %2677 = vrot.lane.b32.xlu0 %v2438_v47, %s6748_s10 }
 0x211   : > { %2667 = vrot.lane.b32.xlu1 %v2433_v48, %s6748_s10 }
 0x212   : > { %2449 = vrot.lane.b32.xlu0 %v2427_v45, %s6747_s29 }
 0x215   : > { %2671 = vrot.lane.b32.xlu1 %v2435_v24, %s6748_s10 }
 0x216   : > { %2580 = vrot.lane.b32.xlu0 %v7816_v6, %s6746_s25 }
 0x219   : > { %2675 = vrot.lane.b32.xlu1 %v2437_v40, %s6748_s10 }
 0x21a   : > { %2584 = vrot.lane.b32.xlu0 %v7808_v38, %s6746_s25 }
 0x21d   : > { %2679 = vrot.lane.b32.xlu1 %v2439_v49, %s6748_s10 }
 0x21e   : > { %2588 = vrot.lane.b32.xlu0 %v7814_v62, %s6746_s25 }
 0x221   : > { %2477 = vrot.lane.b32.xlu1 %v2441_v20, %s6747_s29 }
 0x222   : > { %2475 = vrot.lane.b32.xlu0 %v2440_v50, %s6747_s29 }
 0x225   : > { %2481 = vrot.lane.b32.xlu1 %v2443_v51, %s6747_s29 }
 0x226   : > { %2479 = vrot.lane.b32.xlu0 %v2442_v53, %s6747_s29 }
 0x229   : > { %2485 = vrot.lane.b32.xlu1 %v2445_v54, %s6747_s29 }
 0x22a   : > { %2483 = vrot.lane.b32.xlu0 %v2444_v55, %s6747_s29 }
 0x22d   : > { %2683 = vrot.lane.b32.xlu1 %v2441_v20, %s6748_s10 }
 0x22e   : > { %2681 = vrot.lane.b32.xlu0 %v2440_v50, %s6748_s10 }
 0x231   : > { %2687 = vrot.lane.b32.xlu1 %v2443_v51, %s6748_s10 }
 0x232   : > { %2685 = vrot.lane.b32.xlu0 %v2442_v53, %s6748_s10 }
 0x233   : > { %v2551_v1 = vpop.permute.xlu1 %2550 }
 0x234   : > { %v2553_v5 = vpop.permute.xlu0 %2552 }
 0x235   : > { %v2593_v7 = vsel %vm2592_vm3, %v2551_v1, %v2553_v5  ;;  %2691 = vrot.lane.b32.xlu1 %v2445_v54, %s6748_s10 }
 0x236   : > { %2633 = vst [vmem:[#allocation2 + $0xa0] sm:$0xf] %v2593_v7  ;;  %2689 = vrot.lane.b32.xlu0 %v2444_v55, %s6748_s10 }
 0x237   : > { %v2555_v10 = vpop.permute.xlu1 %2554 }
 0x238   : > { %v2594_v11 = vsel %vm2592_vm3, %v2553_v5, %v2555_v10  ;;  %v2557_v13 = vpop.permute.xlu0 %2556 }
 0x239   : > { %2634 = vst [vmem:[#allocation2 + $0xa8] sm:$0xf] %v2594_v11  ;;  %v2595_v14 = vsel %vm2592_vm3, %v2555_v10, %v2557_v13 }
 0x23a   : > { %2635 = vst [vmem:[#allocation2 + $0xb0] sm:$0xf] %v2595_v14  ;;  %2693 = vrot.lane.b32.xlu0 %v7621_v3, %s6748_s10 }
 0x23b   : > { %v2559_v17 = vpop.permute.xlu1 %2558 }
 0x23c   : > { %v2596_v18 = vsel %vm2592_vm3, %v2557_v13, %v2559_v17  ;;  %v2561_v19 = vpop.permute.xlu0 %2560 }
 0x23d   : > { %2636 = vst [vmem:[#allocation2 + $0xb8] sm:$0xf] %v2596_v18  ;;  %v2597_v21 = vsel %vm2592_vm3, %v2559_v17, %v2561_v19 }
 0x23e   : > { %2637 = vst [vmem:[#allocation2 + $0xc0] sm:$0xf] %v2597_v21 }
 0x23f   : > { %v2563_v22 = vpop.permute.xlu1 %2562 }
 0x240   : > { %v2598_v23 = vsel %vm2592_vm3, %v2561_v19, %v2563_v22  ;;  %v2565_v25 = vpop.permute.xlu0 %2564 }
 0x241   : > { %2638 = vst [vmem:[#allocation2 + $0xc8] sm:$0xf] %v2598_v23  ;;  %v2599_v26 = vsel %vm2592_vm3, %v2563_v22, %v2565_v25 }
 0x242   : > { %2639 = vst [vmem:[#allocation2 + $0xd0] sm:$0xf] %v2599_v26 }
 0x243   : > { %v2567_v27 = vpop.permute.xlu1 %2566 }
 0x244   : > { %v2600_v28 = vsel %vm2592_vm3, %v2565_v25, %v2567_v27  ;;  %v2569_v3 = vpop.permute.xlu0 %2568 }
 0x245   : > { %2640 = vst [vmem:[#allocation2 + $0xd8] sm:$0xf] %v2600_v28  ;;  %v2601_v41 = vsel %vm2592_vm3, %v2567_v27, %v2569_v3 }
 0x246   : > { %2641 = vst [vmem:[#allocation2 + $0xe0] sm:$0xf] %v2601_v41 }
 0x247   : > { %v2571_v56 = vpop.permute.xlu1 %2570 }
 0x248   : > { %v2602_v52 = vsel %vm2592_vm3, %v2569_v3, %v2571_v56  ;;  %v2573_v57 = vpop.permute.xlu0 %2572 }
 0x249   : > { %2642 = vst [vmem:[#allocation2 + $0xe8] sm:$0xf] %v2602_v52  ;;  %v2603_v60 = vsel %vm2592_vm3, %v2571_v56, %v2573_v57 }
 0x24a   : > { %2643 = vst [vmem:[#allocation2 + $0xf0] sm:$0xf] %v2603_v60 }
 0x24b   : > { %v2575_v4 = vpop.permute.xlu1 %2574 }
 0x24c   : > { %v2604_v29 = vsel %vm2592_vm3, %v2573_v57, %v2575_v4  ;;  %v2577_v30 = vpop.permute.xlu0 %2576 }
 0x24d   : > { %2644 = vst [vmem:[#allocation2 + $0xf8] sm:$0xf] %v2604_v29  ;;  %v2605_v31 = vsel %vm2592_vm3, %v2575_v4, %v2577_v30 }
 0x24e   : > { %2645 = vst [vmem:[#allocation2 + $0x100] sm:$0xf] %v2605_v31 }
 0x24f   : > { %v7916_v32 = vpop.permute.xlu1 %2451 }
 0x250   : > { %v7918_v12 = vpop.permute.xlu0 %2447 }
 0x253   : > { %v7920_v63 = vpop.permute.xlu1 %2578 }
 0x254   : > { %v2606_v2 = vsel %vm2592_vm3, %v2577_v30, %v7920_v63  ;;  %v2456_v8 = vpop.permute.xlu0 %2455 }
 0x255   : > { %2646 = vst [vmem:[#allocation2 + $0x108] sm:$0xf] %v2606_v2 }
 0x257   : > { %v7924_v33 = vpop.permute.xlu1 %2582 }
 0x258   : > { %v2460_v34 = vpop.permute.xlu0 %2459 }
 0x25b   : > { %v7926_v35 = vpop.permute.xlu1 %2586 }
 0x25c   : > { %v2464_v37 = vpop.permute.xlu0 %2463 }
 0x25f   : > { %v2454_v38 = vpop.permute.xlu1 %2453 }
 0x260   : > { %v2492_v39 = vsel %vm2489_vm4, %v7916_v32, %v2454_v38  ;;  %v2493_v58 = vsel %vm2489_vm4, %v2454_v38, %v2456_v8  ;;  %v2468_v62 = vpop.permute.xlu0 %2467 }
 0x261   : > { %2532 = vst [vmem:[#allocation2 + $0x10] sm:$0xf0] %v2492_v39  ;;  %2533 = vst [vmem:[#allocation2 + $0x18] sm:$0xf0] %v2493_v58 }
 0x263   : > { %v2458_v6 = vpop.permute.xlu1 %2457 }
 0x264   : > { %v2494_v9 = vsel %vm2489_vm4, %v2456_v8, %v2458_v6  ;;  %v2495_v43 = vsel %vm2489_vm4, %v2458_v6, %v2460_v34  ;;  %v2472_v44 = vpop.permute.xlu0 %2471 }
 0x265   : > { %2534 = vst [vmem:[#allocation2 + $0x20] sm:$0xf0] %v2494_v9  ;;  %2535 = vst [vmem:[#allocation2 + $0x28] sm:$0xf0] %v2495_v43 }
 0x267   : > { %v2462_v46 = vpop.permute.xlu1 %2461 }
 0x268   : > { %v2496_v15 = vsel %vm2489_vm4, %v2460_v34, %v2462_v46  ;;  %v2497_v16 = vsel %vm2489_vm4, %v2462_v46, %v2464_v37  ;;  %v2654_v36 = vpop.permute.xlu0 %2653 }
 0x269   : > { %2536 = vst [vmem:[#allocation2 + $0x30] sm:$0xf0] %v2496_v15  ;;  %2537 = vst [vmem:[#allocation2 + $0x38] sm:$0xf0] %v2497_v16 }
 0x26b   : > { %v2466_v42 = vpop.permute.xlu1 %2465 }
 0x26c   : > { %v2498_v47 = vsel %vm2489_vm4, %v2464_v37, %v2466_v42  ;;  %v2499_v48 = vsel %vm2489_vm4, %v2466_v42, %v2468_v62  ;;  %v2658_v24 = vpop.permute.xlu0 %2657 }
 0x26d   : > { %2538 = vst [vmem:[#allocation2 + $0x40] sm:$0xf0] %v2498_v47  ;;  %2539 = vst [vmem:[#allocation2 + $0x48] sm:$0xf0] %v2499_v48 }
 0x26f   : > { %v2470_v40 = vpop.permute.xlu1 %2469 }
 0x270   : > { %v2500_v49 = vsel %vm2489_vm4, %v2468_v62, %v2470_v40  ;;  %v2501_v45 = vsel %vm2489_vm4, %v2470_v40, %v2472_v44  ;;  %v2662_v20 = vpop.permute.xlu0 %2661 }
 0x271   : > { %2540 = vst [vmem:[#allocation2 + $0x50] sm:$0xf0] %v2500_v49  ;;  %2541 = vst [vmem:[#allocation2 + $0x58] sm:$0xf0] %v2501_v45 }
 0x273   : > { %v7939_v50 = vpop.permute.xlu1 %2473 }
 0x274   : > { %v2502_v51 = vsel %vm2489_vm4, %v2472_v44, %v7939_v50  ;;  %v2666_v53 = vpop.permute.xlu0 %2665 }
 0x275   : > { %2542 = vst [vmem:[#allocation2 + $0x60] sm:$0xf0] %v2502_v51 }
 0x277   : > { %v2656_v54 = vpop.permute.xlu1 %2655 }
 0x278   : > { %v2696_v55 = vsel %vm2695_vm5, %v2654_v36, %v2656_v54  ;;  %v2697_v0 = vsel %vm2695_vm5, %v2656_v54, %v2658_v24  ;;  %v2670_v1 = vpop.permute.xlu0 %2669 }
 0x279   : > { %2736 = vst [vmem:[#allocation2 + $0xa0] sm:$0xf0] %v2696_v55  ;;  %2737 = vst [vmem:[#allocation2 + $0xa8] sm:$0xf0] %v2697_v0 }
 0x27b   : > { %v2660_v5 = vpop.permute.xlu1 %2659 }
 0x27c   : > { %v2698_v7 = vsel %vm2695_vm5, %v2658_v24, %v2660_v5  ;;  %v2699_v10 = vsel %vm2695_vm5, %v2660_v5, %v2662_v20  ;;  %v2674_v11 = vpop.permute.xlu0 %2673 }
 0x27d   : > { %2738 = vst [vmem:[#allocation2 + $0xb0] sm:$0xf0] %v2698_v7  ;;  %2739 = vst [vmem:[#allocation2 + $0xb8] sm:$0xf0] %v2699_v10 }
 0x27f   : > { %v2664_v13 = vpop.permute.xlu1 %2663 }
 0x280   : > { %v2700_v14 = vsel %vm2695_vm5, %v2662_v20, %v2664_v13  ;;  %v2701_v17 = vsel %vm2695_vm5, %v2664_v13, %v2666_v53  ;;  %v2678_v18 = vpop.permute.xlu0 %2677 }
 0x281   : > { %2740 = vst [vmem:[#allocation2 + $0xc0] sm:$0xf0] %v2700_v14  ;;  %2741 = vst [vmem:[#allocation2 + $0xc8] sm:$0xf0] %v2701_v17 }
 0x283   : > { %v2668_v19 = vpop.permute.xlu1 %2667 }
 0x284   : > { %v2702_v21 = vsel %vm2695_vm5, %v2666_v53, %v2668_v19  ;;  %v2703_v22 = vsel %vm2695_vm5, %v2668_v19, %v2670_v1  ;;  %v2450_v23 = vpop.permute.xlu0 %2449 }
 0x285   : > { %2742 = vst [vmem:[#allocation2 + $0xd0] sm:$0xf0] %v2702_v21  ;;  %2743 = vst [vmem:[#allocation2 + $0xd8] sm:$0xf0] %v2703_v22  ;;  %v2490_v25 = vsel %vm2489_vm4, %v7918_v12, %v2450_v23  ;;  %v2491_v26 = vsel %vm2489_vm4, %v2450_v23, %v7916_v32 }
 0x286   : > { %2530 = vst [vmem:[#allocation2] sm:$0xf0] %v2490_v25  ;;  %2531 = vst [vmem:[#allocation2 + $0x8] sm:$0xf0] %v2491_v26 }
 0x287   : > { %v2672_v27 = vpop.permute.xlu1 %2671 }
 0x288   : > { %v2704_v28 = vsel %vm2695_vm5, %v2670_v1, %v2672_v27  ;;  %v2705_v3 = vsel %vm2695_vm5, %v2672_v27, %v2674_v11  ;;  %v2581_v41 = vpop.permute.xlu0 %2580 }
 0x289   : > { %2744 = vst [vmem:[#allocation2 + $0xe0] sm:$0xf0] %v2704_v28  ;;  %2745 = vst [vmem:[#allocation2 + $0xe8] sm:$0xf0] %v2705_v3  ;;  %v2607_v56 = vsel %vm2592_vm3, %v7920_v63, %v2581_v41  ;;  %v2608_v52 = vsel %vm2592_vm3, %v2581_v41, %v7924_v33 }
 0x28a   : > { %2647 = vst [vmem:[#allocation2 + $0x110] sm:$0xf] %v2607_v56  ;;  %2648 = vst [vmem:[#allocation2 + $0x118] sm:$0xf] %v2608_v52 }
 0x28b   : > { %v2676_v57 = vpop.permute.xlu1 %2675 }
 0x28c   : > { %v2706_v60 = vsel %vm2695_vm5, %v2674_v11, %v2676_v57  ;;  %v2707_v4 = vsel %vm2695_vm5, %v2676_v57, %v2678_v18  ;;  %v2585_v29 = vpop.permute.xlu0 %2584 }
 0x28d   : > { %2746 = vst [vmem:[#allocation2 + $0xf0] sm:$0xf0] %v2706_v60  ;;  %2747 = vst [vmem:[#allocation2 + $0xf8] sm:$0xf0] %v2707_v4  ;;  %v2609_v30 = vsel %vm2592_vm3, %v7924_v33, %v2585_v29  ;;  %v2610_v31 = vsel %vm2592_vm3, %v2585_v29, %v7926_v35 }
 0x28e   : > { %2649 = vst [vmem:[#allocation2 + $0x120] sm:$0xf] %v2609_v30  ;;  %2650 = vst [vmem:[#allocation2 + $0x128] sm:$0xf] %v2610_v31 }
 0x28f   : > { %v2680_v32 = vpop.permute.xlu1 %2679 }
 0x290   : > { %v2708_v12 = vsel %vm2695_vm5, %v2678_v18, %v2680_v32  ;;  %v2589_v63 = vpop.permute.xlu0 %2588 }
 0x291   : > { %2748 = vst [vmem:[#allocation2 + $0x100] sm:$0xf0] %v2708_v12  ;;  %v2611_v2 = vsel %vm2592_vm3, %v7926_v35, %v2589_v63  ;;  %v2612_v8 = vsel %vm2592_vm3, %v2589_v63, %v7892_v59 }
 0x292   : > { %2651 = vst [vmem:[#allocation2 + $0x130] sm:$0xf] %v2611_v2  ;;  %2652 = vst [vmem:[#allocation2 + $0x138] sm:$0xf] %v2612_v8 }
 0x293   : > { %v2478_v34 = vpop.permute.xlu1 %2477 }
 0x294   : > { %v2476_v33 = vpop.permute.xlu0 %2475 }
 0x295   : > { %v2503_v37 = vsel %vm2489_vm4, %v7939_v50, %v2476_v33  ;;  %v2504_v38 = vsel %vm2489_vm4, %v2476_v33, %v2478_v34 }
 0x296   : > { %2543 = vst [vmem:[#allocation2 + $0x68] sm:$0xf0] %v2503_v37  ;;  %2544 = vst [vmem:[#allocation2 + $0x70] sm:$0xf0] %v2504_v38 }
 0x297   : > { %v2482_v39 = vpop.permute.xlu1 %2481 }
 0x298   : > { %v2480_v58 = vpop.permute.xlu0 %2479 }
 0x299   : > { %v2505_v62 = vsel %vm2489_vm4, %v2478_v34, %v2480_v58  ;;  %v2506_v35 = vsel %vm2489_vm4, %v2480_v58, %v2482_v39 }
 0x29a   : > { %2545 = vst [vmem:[#allocation2 + $0x78] sm:$0xf0] %v2505_v62  ;;  %2546 = vst [vmem:[#allocation2 + $0x80] sm:$0xf0] %v2506_v35 }
 0x29b   : > { %v2486_v59 = vpop.permute.xlu1 %2485 }
 0x29c   : > { %v2509_v6 = vsel %vm2489_vm4, %v2486_v59, %v7895_v61  ;;  %v2484_v9 = vpop.permute.xlu0 %2483 }
 0x29d   : > { %2549 = vst [vmem:[#allocation2 + $0x98] sm:$0xf0] %v2509_v6  ;;  %v2507_v43 = vsel %vm2489_vm4, %v2482_v39, %v2484_v9  ;;  %v2508_v44 = vsel %vm2489_vm4, %v2484_v9, %v2486_v59 }
 0x29e   : > { %2547 = vst [vmem:[#allocation2 + $0x88] sm:$0xf0] %v2507_v43  ;;  %2548 = vst [vmem:[#allocation2 + $0x90] sm:$0xf0] %v2508_v44 }
 0x29f   : > { %v2684_v46 = vpop.permute.xlu1 %2683 }
 0x2a0   : > { %v2682_v15 = vpop.permute.xlu0 %2681 }
 0x2a1   : > { %v2709_v16 = vsel %vm2695_vm5, %v2680_v32, %v2682_v15  ;;  %v2710_v36 = vsel %vm2695_vm5, %v2682_v15, %v2684_v46 }
 0x2a2   : > { %2749 = vst [vmem:[#allocation2 + $0x108] sm:$0xf0] %v2709_v16  ;;  %2750 = vst [vmem:[#allocation2 + $0x110] sm:$0xf0] %v2710_v36 }
 0x2a3   : > { %v2688_v42 = vpop.permute.xlu1 %2687 }
 0x2a4   : > { %v2686_v47 = vpop.permute.xlu0 %2685 }
 0x2a5   : > { %v2711_v61 = vsel %vm2695_vm5, %v2684_v46, %v2686_v47  ;;  %v2712_v48 = vsel %vm2695_vm5, %v2686_v47, %v2688_v42 }
 0x2a6   : > { %2751 = vst [vmem:[#allocation2 + $0x118] sm:$0xf0] %v2711_v61  ;;  %2752 = vst [vmem:[#allocation2 + $0x120] sm:$0xf0] %v2712_v48 }
 0x2a7   : > { %v2692_v24 = vpop.permute.xlu1 %2691 }
 0x2a8   : > { %v2690_v40 = vpop.permute.xlu0 %2689 }
 0x2a9   : > { %v2713_v49 = vsel %vm2695_vm5, %v2688_v42, %v2690_v40  ;;  %v2714_v45 = vsel %vm2695_vm5, %v2690_v40, %v2692_v24 }
 0x2aa   : > { %2753 = vst [vmem:[#allocation2 + $0x128] sm:$0xf0] %v2713_v49  ;;  %2754 = vst [vmem:[#allocation2 + $0x130] sm:$0xf0] %v2714_v45 }
 0x2ac   : > { %v2694_v20 = vpop.permute.xlu0 %2693 }
 0x2ad   : > { %v2715_v50 = vsel %vm2695_vm5, %v2692_v24, %v2694_v20 }
 0x2ae   : > { %2755 = vst [vmem:[#allocation2 + $0x138] sm:$0xf0] %v2715_v50 }
 0x2af PF: > { %v6212_v51 = vld [vmem:[%s7493_s27 + $0x4] ss:$8 sps:$4 sm:$0xff]   ;;  %v6216_v54 = vld [vmem:[%s7493_s27] ss:$8 sps:$4 sm:$0xff]   ;;  %v6218_v0 = vld [vmem:[%s7493_s27 + $0x14] ss:$8 sps:$4 sm:$0xff]  }
 0x2b0   : > { %v6214_v53 = vld [vmem:[%s7493_s27 + $0x504] ss:$8 sps:$4 sm:$0xff]   ;;  %4717 = vmatprep.subr.bf16.mxu1 %v6212_v51  ;;  %v6217_v55 = vld [vmem:[%s7493_s27 + $0x500] ss:$8 sps:$4 sm:$0xff]   ;;  %v6220_v1 = vld [vmem:[%s7493_s27 + $0x514] ss:$8 sps:$4 sm:$0xff]  }
 0x2b1   : > { %4982 = vmatprep.subr.bf16.mxu0 %v6214_v53  ;;  %4718 = vmatpush1.bf16.msra.mxu1 %v6216_v54  ;;  %v6222_v5 = vld [vmem:[%s7493_s27 + $0x10] ss:$8 sps:$4 sm:$0xff]   ;;  %v6224_v10 = vld [vmem:[%s7493_s27 + $0x24] ss:$8 sps:$4 sm:$0xff]   ;;  %v6228_v13 = vld [vmem:[%s7493_s27 + $0x20] ss:$8 sps:$4 sm:$0xff]  }
 0x2b2   : > { %4983 = vmatpush1.bf16.msra.mxu0 %v6217_v55  ;;  %4719 = vmatprep.subr.bf16.mxu1 %v6218_v0  ;;  %v6223_v7 = vld [vmem:[%s7493_s27 + $0x510] ss:$8 sps:$4 sm:$0xff]   ;;  %v6226_v11 = vld [vmem:[%s7493_s27 + $0x524] ss:$8 sps:$4 sm:$0xff]   ;;  %v6229_v14 = vld [vmem:[%s7493_s27 + $0x520] ss:$8 sps:$4 sm:$0xff]  }
 0x2b3   : > { %4984 = vmatprep.subr.bf16.mxu0 %v6220_v1  ;;  %v6230_v17 = vld [vmem:[%s7493_s27 + $0x34] ss:$8 sps:$4 sm:$0xff]   ;;  %v6234_v19 = vld [vmem:[%s7493_s27 + $0x30] ss:$8 sps:$4 sm:$0xff]   ;;  %v6236_v22 = vld [vmem:[%s7493_s27 + $0x44] ss:$8 sps:$4 sm:$0xff]  }
 0x2b4   : > { %v6232_v18 = vld [vmem:[%s7493_s27 + $0x534] ss:$8 sps:$4 sm:$0xff]   ;;  %v6235_v21 = vld [vmem:[%s7493_s27 + $0x530] ss:$8 sps:$4 sm:$0xff]   ;;  %v6238_v23 = vld [vmem:[%s7493_s27 + $0x544] ss:$8 sps:$4 sm:$0xff]  }
 0x2b5   : > { %4720 = vmatpush1.bf16.msra.mxu1 %v6222_v5  ;;  %v6240_v25 = vld [vmem:[%s7493_s27 + $0x40] ss:$8 sps:$4 sm:$0xff]   ;;  %v6242_v27 = vld [vmem:[%s7493_s27 + $0x54] ss:$8 sps:$4 sm:$0xff]   ;;  %v6246_v3 = vld [vmem:[%s7493_s27 + $0x50] ss:$8 sps:$4 sm:$0xff]  }
 0x2b6   : > { %4985 = vmatpush1.bf16.msra.mxu0 %v6223_v7  ;;  %4721 = vmatprep.subr.bf16.mxu1 %v6224_v10  ;;  %v6241_v26 = vld [vmem:[%s7493_s27 + $0x540] ss:$8 sps:$4 sm:$0xff]   ;;  %v6244_v28 = vld [vmem:[%s7493_s27 + $0x554] ss:$8 sps:$4 sm:$0xff]   ;;  %v6247_v41 = vld [vmem:[%s7493_s27 + $0x550] ss:$8 sps:$4 sm:$0xff]  }
 0x2b7   : > { %4986 = vmatprep.subr.bf16.mxu0 %v6226_v11  ;;  %v6248_v56 = vld [vmem:[%s7493_s27 + $0x64] ss:$8 sps:$4 sm:$0xff]   ;;  %v6252_v57 = vld [vmem:[%s7493_s27 + $0x60] ss:$8 sps:$4 sm:$0xff]   ;;  %v6254_v4 = vld [vmem:[%s7493_s27 + $0x74] ss:$8 sps:$4 sm:$0xff]  }
 0x2b8   : > { %v6250_v52 = vld [vmem:[%s7493_s27 + $0x564] ss:$8 sps:$4 sm:$0xff]   ;;  %v6253_v60 = vld [vmem:[%s7493_s27 + $0x560] ss:$8 sps:$4 sm:$0xff]   ;;  %v6256_v29 = vld [vmem:[%s7493_s27 + $0x574] ss:$8 sps:$4 sm:$0xff]  }
 0x2b9   : > { %4722 = vmatpush1.bf16.msra.mxu1 %v6228_v13  ;;  %v6258_v30 = vld [vmem:[%s7493_s27 + $0x70] ss:$8 sps:$4 sm:$0xff]   ;;  %v6260_v32 = vld [vmem:[%s7493_s27 + $0x84] ss:$8 sps:$4 sm:$0xff]   ;;  %v6264_v63 = vld [vmem:[%s7493_s27 + $0x80] ss:$8 sps:$4 sm:$0xff]  }
 0x2ba   : > { %4987 = vmatpush1.bf16.msra.mxu0 %v6229_v14  ;;  %4723 = vmatprep.subr.bf16.mxu1 %v6230_v17  ;;  %v6259_v31 = vld [vmem:[%s7493_s27 + $0x570] ss:$8 sps:$4 sm:$0xff]   ;;  %v6262_v12 = vld [vmem:[%s7493_s27 + $0x584] ss:$8 sps:$4 sm:$0xff]   ;;  %v6265_v2 = vld [vmem:[%s7493_s27 + $0x580] ss:$8 sps:$4 sm:$0xff]  }
 0x2bb   : > { %4988 = vmatprep.subr.bf16.mxu0 %v6232_v18  ;;  %v6266_v8 = vld [vmem:[%s7493_s27 + $0x94] ss:$8 sps:$4 sm:$0xff]   ;;  %v6270_v33 = vld [vmem:[%s7493_s27 + $0x90] ss:$8 sps:$4 sm:$0xff]   ;;  %v6272_v38 = vld [vmem:[%s7493_s27 + $0xa4] ss:$8 sps:$4 sm:$0xff]  }
 0x2bc   : > { %v6268_v34 = vld [vmem:[%s7493_s27 + $0x594] ss:$8 sps:$4 sm:$0xff]   ;;  %v6271_v37 = vld [vmem:[%s7493_s27 + $0x590] ss:$8 sps:$4 sm:$0xff]   ;;  %v6274_v39 = vld [vmem:[%s7493_s27 + $0x5a4] ss:$8 sps:$4 sm:$0xff]  }
 0x2bd   : > { %4724 = vmatpush1.bf16.msra.mxu1 %v6234_v19  ;;  %v6276_v58 = vld [vmem:[%s7493_s27 + $0xa0] ss:$8 sps:$4 sm:$0xff]   ;;  %v6278_v35 = vld [vmem:[%s7493_s27 + $0xb4] ss:$8 sps:$4 sm:$0xff]   ;;  %v6282_v9 = vld [vmem:[%s7493_s27 + $0xb0] ss:$8 sps:$4 sm:$0xff]  }
 0x2be   : > { %4989 = vmatpush1.bf16.msra.mxu0 %v6235_v21  ;;  %4725 = vmatprep.subr.bf16.mxu1 %v6236_v22  ;;  %v6277_v62 = vld [vmem:[%s7493_s27 + $0x5a0] ss:$8 sps:$4 sm:$0xff]   ;;  %v6280_v59 = vld [vmem:[%s7493_s27 + $0x5b4] ss:$8 sps:$4 sm:$0xff]   ;;  %v6283_v43 = vld [vmem:[%s7493_s27 + $0x5b0] ss:$8 sps:$4 sm:$0xff]  }
 0x2bf   : > { %4990 = vmatprep.subr.bf16.mxu0 %v6238_v23  ;;  %v2758_v6 = vld [vmem:[#allocation2 + $0x8] sm:$0xff]  ;;  %v2768_v44 = vld [vmem:[#allocation2 + $0x58] sm:$0xff]  ;;  %v2757_v5 = vld [vmem:[#allocation2] sm:$0xff]  ;;  %p6040_p11 = scmp.ne.s32.totalorder %s6813_s30, 2 }
 0x2c0   : > { %4749 = vmatprep.mubr.bf16.mxu1 %v2758_v6  ;;  %v6284_v46 = vld [vmem:[%s7493_s27 + $0xc4] ss:$8 sps:$4 sm:$0xff]   ;;  %5014 = vmatprep.mubr.bf16.mxu0 %v2768_v44  ;;  %v6288_v16 = vld [vmem:[%s7493_s27 + $0xc0] ss:$8 sps:$4 sm:$0xff]   ;;  %v6290_v42 = vld [vmem:[%s7493_s27 + $0xd4] ss:$8 sps:$4 sm:$0xff]  }
 0x2c1   : > { %4726 = vmatpush1.bf16.msra.mxu1 %v6240_v25  ;;  %v6286_v15 = vld [vmem:[%s7493_s27 + $0x5c4] ss:$8 sps:$4 sm:$0xff]   ;;  %v6289_v36 = vld [vmem:[%s7493_s27 + $0x5c0] ss:$8 sps:$4 sm:$0xff]   ;;  %v6292_v47 = vld [vmem:[%s7493_s27 + $0x5d4] ss:$8 sps:$4 sm:$0xff]  }
 0x2c2   : > { %4991 = vmatpush1.bf16.msra.mxu0 %v6241_v26  ;;  %4727 = vmatprep.subr.bf16.mxu1 %v6242_v27  ;;  %v6294_v61 = vld [vmem:[%s7493_s27 + $0xd0] ss:$8 sps:$4 sm:$0xff]   ;;  %v6296_v24 = vld [vmem:[%s7493_s27 + $0xe4] ss:$8 sps:$4 sm:$0xff]   ;;  %v6300_v49 = vld [vmem:[%s7493_s27 + $0xe0] ss:$8 sps:$4 sm:$0xff]  }
 0x2c3   : > { %4992 = vmatprep.subr.bf16.mxu0 %v6244_v28  ;;  %v6295_v48 = vld [vmem:[%s7493_s27 + $0x5d0] ss:$8 sps:$4 sm:$0xff]   ;;  %v6298_v40 = vld [vmem:[%s7493_s27 + $0x5e4] ss:$8 sps:$4 sm:$0xff]   ;;  %v6301_v45 = vld [vmem:[%s7493_s27 + $0x5e0] ss:$8 sps:$4 sm:$0xff]  }
 0x2c4   : > { %v6302_v20 = vld [vmem:[%s7493_s27 + $0xf4] ss:$8 sps:$4 sm:$0xff]   ;;  %v6306_v51 = vld [vmem:[%s7493_s27 + $0xf0] ss:$8 sps:$4 sm:$0xff]   ;;  %v6310_v54 = vld [vmem:[%s7493_s27 + $0x104] ss:$8 sps:$4 sm:$0xff]  }
 0x2c5   : > { %4728 = vmatpush1.bf16.msra.mxu1 %v6246_v3  ;;  %v6304_v50 = vld [vmem:[%s7493_s27 + $0x5f4] ss:$8 sps:$4 sm:$0xff]   ;;  %v6307_v53 = vld [vmem:[%s7493_s27 + $0x5f0] ss:$8 sps:$4 sm:$0xff]   ;;  %v6313_v55 = vld [vmem:[%s7493_s27 + $0x604] ss:$8 sps:$4 sm:$0xff]  }
 0x2c6   : > { %4993 = vmatpush1.bf16.msra.mxu0 %v6247_v41  ;;  %4729 = vmatprep.subr.bf16.mxu1 %v6248_v56  ;;  %v6308_v0 = vld [vmem:[%s7493_s27 + $0x100] ss:$8 sps:$4 sm:$0xff]   ;;  %v6316_v10 = vld [vmem:[%s7493_s27 + $0x114] ss:$8 sps:$4 sm:$0xff]   ;;  %v6314_v13 = vld [vmem:[%s7493_s27 + $0x110] ss:$8 sps:$4 sm:$0xff]  }
 0x2c7   : > { %4994 = vmatprep.subr.bf16.mxu0 %v6250_v52  ;;  %v6311_v1 = vld [vmem:[%s7493_s27 + $0x600] ss:$8 sps:$4 sm:$0xff]   ;;  %v6319_v11 = vld [vmem:[%s7493_s27 + $0x614] ss:$8 sps:$4 sm:$0xff]   ;;  %v6317_v14 = vld [vmem:[%s7493_s27 + $0x610] ss:$8 sps:$4 sm:$0xff]  }
 0x2c8   : > { %v2767_v7 = vld [vmem:[#allocation2 + $0x50] sm:$0xff]  ;;  %v6328_v22 = vld [vmem:[%s7493_s27 + $0x134] ss:$8 sps:$4 sm:$0xff]   ;;  %v6326_v25 = vld [vmem:[%s7493_s27 + $0x130] ss:$8 sps:$4 sm:$0xff]   ;;  %vm6751_vm6 = vmmov (!%p6040_p11), 0  }
 0x2c9   : > { %4730 = vmatpush1.bf16.msra.mxu1 %v6252_v57  ;;  %v6322_v17 = vld [vmem:[%s7493_s27 + $0x124] ss:$8 sps:$4 sm:$0xff]   ;;  %v6320_v19 = vld [vmem:[%s7493_s27 + $0x120] ss:$8 sps:$4 sm:$0xff]   ;;  %v6331_v23 = vld [vmem:[%s7493_s27 + $0x634] ss:$8 sps:$4 sm:$0xff]  }
 0x2ca   : > { %4995 = vmatpush1.bf16.msra.mxu0 %v6253_v60  ;;  %4731 = vmatprep.subr.bf16.mxu1 %v6254_v4  ;;  %v6325_v18 = vld [vmem:[%s7493_s27 + $0x624] ss:$8 sps:$4 sm:$0xff]   ;;  %v6323_v21 = vld [vmem:[%s7493_s27 + $0x620] ss:$8 sps:$4 sm:$0xff]   ;;  %v6329_v26 = vld [vmem:[%s7493_s27 + $0x630] ss:$8 sps:$4 sm:$0xff]  }
 0x2cb   : > { %4996 = vmatprep.subr.bf16.mxu0 %v6256_v29  ;;  %v6334_v27 = vld [vmem:[%s7493_s27 + $0x144] ss:$8 sps:$4 sm:$0xff]   ;;  %v6332_v3 = vld [vmem:[%s7493_s27 + $0x140] ss:$8 sps:$4 sm:$0xff]   ;;  %v6340_v56 = vld [vmem:[%s7493_s27 + $0x154] ss:$8 sps:$4 sm:$0xff]  }
 0x2cc   : > { %v6337_v28 = vld [vmem:[%s7493_s27 + $0x644] ss:$8 sps:$4 sm:$0xff]   ;;  %v6335_v41 = vld [vmem:[%s7493_s27 + $0x640] ss:$8 sps:$4 sm:$0xff]   ;;  %v6343_v52 = vld [vmem:[%s7493_s27 + $0x654] ss:$8 sps:$4 sm:$0xff]  }
 0x2cd   : > { %4732 = vmatpush1.bf16.msra.mxu1 %v6258_v30  ;;  %v2778_v57 = vld [vmem:[#allocation2 + $0xa8] sm:$0xff]  ;;  %v6338_v60 = vld [vmem:[%s7493_s27 + $0x150] ss:$8 sps:$4 sm:$0xff]   ;;  %v6364_v6 = vld [vmem:[%s7493_s27 + $0x194] ss:$8 sps:$4 sm:$0xff]  }
 0x2ce   : > { %4997 = vmatpush1.bf16.msra.mxu0 %v6259_v31  ;;  %4733 = vmatprep.subr.bf16.mxu1 %v6260_v32  ;;  %v6341_v4 = vld [vmem:[%s7493_s27 + $0x650] ss:$8 sps:$4 sm:$0xff]   ;;  %v6346_v30 = vld [vmem:[%s7493_s27 + $0x164] ss:$8 sps:$4 sm:$0xff]  }
 0x2cf   : > { %4998 = vmatprep.subr.bf16.mxu0 %v6262_v12  ;;  %v2788_v29 = vld [vmem:[#allocation2 + $0xf8] sm:$0xff]  ;;  %v6349_v31 = vld [vmem:[%s7493_s27 + $0x664] ss:$8 sps:$4 sm:$0xff]   ;;  %v2777_v32 = vld [vmem:[#allocation2 + $0xa0] sm:$0xff] }
 0x2d0   : > { %v2787_v12 = vld [vmem:[#allocation2 + $0xf0] sm:$0xff]  ;;  %v6365_v44 = vld [vmem:[%s7493_s27 + $0x690] ss:$8 sps:$4 sm:$0xff]  }
 0x2d1   : > { %4734 = vmatpush1.bf16.msra.mxu1 %v6264_v63  ;;  %v6344_v63 = vld [vmem:[%s7493_s27 + $0x160] ss:$8 sps:$4 sm:$0xff]  }
 0x2d2   : > { %4999 = vmatpush1.bf16.msra.mxu0 %v6265_v2  ;;  %4735 = vmatprep.subr.bf16.mxu1 %v6266_v8  ;;  %v6347_v2 = vld [vmem:[%s7493_s27 + $0x660] ss:$8 sps:$4 sm:$0xff]   ;;  %v2760_v8 = vld [vmem:[#allocation2 + $0x18] sm:$0xff] }
 0x2d3   : > { %5000 = vmatprep.subr.bf16.mxu0 %v6268_v34  ;;  %v6352_v34 = vld [vmem:[%s7493_s27 + $0x174] ss:$8 sps:$4 sm:$0xff]  }
 0x2d5   : > { %4736 = vmatpush1.bf16.msra.mxu1 %v6270_v33  ;;  %v6355_v33 = vld [vmem:[%s7493_s27 + $0x674] ss:$8 sps:$4 sm:$0xff]  }
 0x2d6   : > { %5001 = vmatpush1.bf16.msra.mxu0 %v6271_v37  ;;  %4737 = vmatprep.subr.bf16.mxu1 %v6272_v38  ;;  %v2770_v37 = vld [vmem:[#allocation2 + $0x68] sm:$0xff]  ;;  %v6350_v38 = vld [vmem:[%s7493_s27 + $0x170] ss:$8 sps:$4 sm:$0xff]  }
 0x2d7   : > { %5002 = vmatprep.subr.bf16.mxu0 %v6274_v39  ;;  %v6353_v39 = vld [vmem:[%s7493_s27 + $0x670] ss:$8 sps:$4 sm:$0xff]  }
 0x2d9   : > { %4738 = vmatpush1.bf16.msra.mxu1 %v6276_v58  ;;  %v6358_v58 = vld [vmem:[%s7493_s27 + $0x184] ss:$8 sps:$4 sm:$0xff]  }
 0x2da   : > { %5003 = vmatpush1.bf16.msra.mxu0 %v6277_v62  ;;  %4739 = vmatprep.subr.bf16.mxu1 %v6278_v35  ;;  %v6361_v62 = vld [vmem:[%s7493_s27 + $0x684] ss:$8 sps:$4 sm:$0xff]   ;;  %v6356_v35 = vld [vmem:[%s7493_s27 + $0x180] ss:$8 sps:$4 sm:$0xff]  }
 0x2db   : > { %5004 = vmatprep.subr.bf16.mxu0 %v6280_v59  ;;  %v6359_v59 = vld [vmem:[%s7493_s27 + $0x680] ss:$8 sps:$4 sm:$0xff]  }
 0x2dd   : > { %4740 = vmatpush1.bf16.msra.mxu1 %v6282_v9  ;;  %v6367_v9 = vld [vmem:[%s7493_s27 + $0x694] ss:$8 sps:$4 sm:$0xff]  }
 0x2de   : > { %5005 = vmatpush1.bf16.msra.mxu0 %v6283_v43  ;;  %4741 = vmatprep.subr.bf16.mxu1 %v6284_v46  ;;  %v6362_v43 = vld [vmem:[%s7493_s27 + $0x190] ss:$8 sps:$4 sm:$0xff]   ;;  %v6370_v46 = vld [vmem:[%s7493_s27 + $0x1a4] ss:$8 sps:$4 sm:$0xff]  }
 0x2df   : > { %5006 = vmatprep.subr.bf16.mxu0 %v6286_v15  ;;  %v6373_v15 = vld [vmem:[%s7493_s27 + $0x6a4] ss:$8 sps:$4 sm:$0xff]  }
 0x2e1   : > { %4742 = vmatpush1.bf16.msra.mxu1 %v6288_v16  ;;  %v6368_v16 = vld [vmem:[%s7493_s27 + $0x1a0] ss:$8 sps:$4 sm:$0xff]  }
 0x2e2   : > { %5007 = vmatpush1.bf16.msra.mxu0 %v6289_v36  ;;  %4743 = vmatprep.subr.bf16.mxu1 %v6290_v42  ;;  %v6371_v36 = vld [vmem:[%s7493_s27 + $0x6a0] ss:$8 sps:$4 sm:$0xff]   ;;  %v6376_v42 = vld [vmem:[%s7493_s27 + $0x1b4] ss:$8 sps:$4 sm:$0xff]  }
 0x2e3   : > { %5008 = vmatprep.subr.bf16.mxu0 %v6292_v47  ;;  %v6379_v47 = vld [vmem:[%s7493_s27 + $0x6b4] ss:$8 sps:$4 sm:$0xff]  }
 0x2e5   : > { %4744 = vmatpush1.bf16.msra.mxu1 %v6294_v61  ;;  %v6374_v61 = vld [vmem:[%s7493_s27 + $0x1b0] ss:$8 sps:$4 sm:$0xff]  }
 0x2e6   : > { %5009 = vmatpush1.bf16.msra.mxu0 %v6295_v48  ;;  %4745 = vmatprep.subr.bf16.mxu1 %v6296_v24  ;;  %v6377_v48 = vld [vmem:[%s7493_s27 + $0x6b0] ss:$8 sps:$4 sm:$0xff]   ;;  %v6382_v24 = vld [vmem:[%s7493_s27 + $0x1c4] ss:$8 sps:$4 sm:$0xff]  }
 0x2e7   : > { %5010 = vmatprep.subr.bf16.mxu0 %v6298_v40  ;;  %v6385_v40 = vld [vmem:[%s7493_s27 + $0x6c4] ss:$8 sps:$4 sm:$0xff]  }
 0x2e9   : > { %4746 = vmatpush1.bf16.msra.mxu1 %v6300_v49  ;;  %v6380_v49 = vld [vmem:[%s7493_s27 + $0x1c0] ss:$8 sps:$4 sm:$0xff]  }
 0x2ea   : > { %5011 = vmatpush1.bf16.msra.mxu0 %v6301_v45  ;;  %4747 = vmatprep.subr.bf16.mxu1 %v6302_v20  ;;  %v6383_v45 = vld [vmem:[%s7493_s27 + $0x6c0] ss:$8 sps:$4 sm:$0xff]   ;;  %v6388_v20 = vld [vmem:[%s7493_s27 + $0x1d4] ss:$8 sps:$4 sm:$0xff]  }
 0x2eb   : > { %5012 = vmatprep.subr.bf16.mxu0 %v6304_v50  ;;  %v6391_v50 = vld [vmem:[%s7493_s27 + $0x6d4] ss:$8 sps:$4 sm:$0xff]  }
 0x2ed   : > { %4748 = vmatpush1.bf16.msra.mxu1 %v6306_v51  ;;  %v6386_v51 = vld [vmem:[%s7493_s27 + $0x1d0] ss:$8 sps:$4 sm:$0xff]  }
 0x2ee   : > { %5013 = vmatpush1.bf16.msra.mxu0 %v6307_v53  ;;  %4770 = vmatprep.subr.bf16.mxu1 %v6310_v54  ;;  %v6389_v53 = vld [vmem:[%s7493_s27 + $0x6d0] ss:$8 sps:$4 sm:$0xff]   ;;  %v6394_v54 = vld [vmem:[%s7493_s27 + $0x1e4] ss:$8 sps:$4 sm:$0xff]  }
 0x2ef   : > { %5035 = vmatprep.subr.bf16.mxu0 %v6313_v55  ;;  %v6397_v55 = vld [vmem:[%s7493_s27 + $0x6e4] ss:$8 sps:$4 sm:$0xff]  }
 0x2f0   : > { %4750 = vmatmul.mubr.bf16.vlgmr.msra.gmra.mrb[0].mxu1 %v2757_v5  ;;  %v6400_v5 = vld [vmem:[%s7493_s27 + $0x1f4] ss:$8 sps:$4 sm:$0xff]  }
 0x2f1   : > { %5015 = vmatmul.mubr.bf16.vlgmr.msra.gmra.mrb[0].mxu0 %v2767_v7  ;;  %4771 = vmatpush1.bf16.msra.mxu1 %v6308_v0  ;;  %v6392_v0 = vld [vmem:[%s7493_s27 + $0x1e0] ss:$8 sps:$4 sm:$0xff]   ;;  %v6403_v7 = vld [vmem:[%s7493_s27 + $0x6f4] ss:$8 sps:$4 sm:$0xff]  }
 0x2f2   : > { %5036 = vmatpush1.bf16.msra.mxu0 %v6311_v1  ;;  %4772 = vmatprep.subr.bf16.mxu1 %v6316_v10  ;;  %v6395_v1 = vld [vmem:[%s7493_s27 + $0x6e0] ss:$8 sps:$4 sm:$0xff]   ;;  %v6398_v10 = vld [vmem:[%s7493_s27 + $0x1f0] ss:$8 sps:$4 sm:$0xff]  }
 0x2f3   : > { %5037 = vmatprep.subr.bf16.mxu0 %v6319_v11  ;;  %4759 = vmatprep.mubr.bf16.mxu1 %v2778_v57  ;;  %v6401_v11 = vld [vmem:[%s7493_s27 + $0x6f0] ss:$8 sps:$4 sm:$0xff]   ;;  %v6424_v57 = vld [vmem:[%s7493_s27 + $0x234] ss:$8 sps:$4 sm:$0xff]  }
 0x2f4   : > { %5024 = vmatprep.mubr.bf16.mxu0 %v2788_v29  ;;  %v6427_v29 = vld [vmem:[%s7493_s27 + $0x734] ss:$8 sps:$4 sm:$0xff]  }
 0x2f5   : > { %4773 = vmatpush1.bf16.msra.mxu1 %v6314_v13  ;;  %v6406_v13 = vld [vmem:[%s7493_s27 + $0x204] ss:$8 sps:$4 sm:$0xff]  }
 0x2f6   : > { %5038 = vmatpush1.bf16.msra.mxu0 %v6317_v14  ;;  %4774 = vmatprep.subr.bf16.mxu1 %v6322_v17  ;;  %v6409_v14 = vld [vmem:[%s7493_s27 + $0x704] ss:$8 sps:$4 sm:$0xff]   ;;  %v6404_v17 = vld [vmem:[%s7493_s27 + $0x200] ss:$8 sps:$4 sm:$0xff]  }
 0x2f7   : > { %5039 = vmatprep.subr.bf16.mxu0 %v6325_v18  ;;  %v6407_v18 = vld [vmem:[%s7493_s27 + $0x700] ss:$8 sps:$4 sm:$0xff]  }
 0x2f8   : > { %4760 = vmatmul.mubr.bf16.gmra.mrb[4].mxu1 %v2777_v32  ;;  %v2762_v32 = vld [vmem:[#allocation2 + $0x28] sm:$0xff] }
 0x2f9   : > { %4775 = vmatpush1.bf16.msra.mxu1 %v6320_v19  ;;  %5025 = vmatmul.mubr.bf16.gmra.mrb[4].mxu0 %v2787_v12  ;;  %v2759_v19 = vld [vmem:[#allocation2 + $0x10] sm:$0xff]  ;;  %v2772_v12 = vld [vmem:[#allocation2 + $0x78] sm:$0xff] }
 0x2fa   : > { %5040 = vmatpush1.bf16.msra.mxu0 %v6323_v21  ;;  %4776 = vmatprep.subr.bf16.mxu1 %v6328_v22  ;;  %v2769_v21 = vld [vmem:[#allocation2 + $0x60] sm:$0xff] }
 0x2fb   : > { %5041 = vmatprep.subr.bf16.mxu0 %v6331_v23  ;;  %4802 = vmatprep.mubr.bf16.mxu1 %v2760_v8  ;;  %v6412_v22 = vld [vmem:[%s7493_s27 + $0x214] ss:$8 sps:$4 sm:$0xff]   ;;  %v6428_v8 = vld [vmem:[%s7493_s27 + $0x240] ss:$8 sps:$4 sm:$0xff]  }
 0x2fc   : > { %5067 = vmatprep.mubr.bf16.mxu0 %v2770_v37  ;;  %v6415_v23 = vld [vmem:[%s7493_s27 + $0x714] ss:$8 sps:$4 sm:$0xff]  }
 0x2fd   : > { %4777 = vmatpush1.bf16.msra.mxu1 %v6326_v25  ;;  %v6410_v25 = vld [vmem:[%s7493_s27 + $0x210] ss:$8 sps:$4 sm:$0xff]   ;;  %v6439_v37 = vld [vmem:[%s7493_s27 + $0x754] ss:$8 sps:$4 sm:$0xff]  }
 0x2fe   : > { %5042 = vmatpush1.bf16.msra.mxu0 %v6329_v26  ;;  %4778 = vmatprep.subr.bf16.mxu1 %v6334_v27  ;;  %v2780_v26 = vld [vmem:[#allocation2 + $0xb8] sm:$0xff]  ;;  %v2790_v27 = vld [vmem:[#allocation2 + $0x108] sm:$0xff] }
 0x2ff   : > { %5043 = vmatprep.subr.bf16.mxu0 %v6337_v28  ;;  %v6413_v28 = vld [vmem:[%s7493_s27 + $0x710] ss:$8 sps:$4 sm:$0xff]  }
 0x301   : > { %4779 = vmatpush1.bf16.msra.mxu1 %v6332_v3  ;;  %v6418_v3 = vld [vmem:[%s7493_s27 + $0x224] ss:$8 sps:$4 sm:$0xff]  }
 0x302   : > { %5044 = vmatpush1.bf16.msra.mxu0 %v6335_v41  ;;  %4780 = vmatprep.subr.bf16.mxu1 %v6340_v56  ;;  %v6421_v41 = vld [vmem:[%s7493_s27 + $0x724] ss:$8 sps:$4 sm:$0xff]   ;;  %v6416_v56 = vld [vmem:[%s7493_s27 + $0x220] ss:$8 sps:$4 sm:$0xff]  }
 0x303   : > { %5045 = vmatprep.subr.bf16.mxu0 %v6343_v52  ;;  %v6419_v52 = vld [vmem:[%s7493_s27 + $0x720] ss:$8 sps:$4 sm:$0xff]  }
 0x305   : > { %4781 = vmatpush1.bf16.msra.mxu1 %v6338_v60  ;;  %v2779_v60 = vld [vmem:[#allocation2 + $0xb0] sm:$0xff] }
 0x306   : > { %5046 = vmatpush1.bf16.msra.mxu0 %v6341_v4  ;;  %4782 = vmatprep.subr.bf16.mxu1 %v6346_v30  ;;  %v2789_v4 = vld [vmem:[#allocation2 + $0x100] sm:$0xff] }
 0x307   : > { %5047 = vmatprep.subr.bf16.mxu0 %v6349_v31  ;;  %v6422_v30 = vld [vmem:[%s7493_s27 + $0x230] ss:$8 sps:$4 sm:$0xff]  }
 0x308   : > { %v6425_v31 = vld [vmem:[%s7493_s27 + $0x730] ss:$8 sps:$4 sm:$0xff]  }
 0x309   : > { %4783 = vmatpush1.bf16.msra.mxu1 %v6344_v63  ;;  %v6430_v63 = vld [vmem:[%s7493_s27 + $0x244] ss:$8 sps:$4 sm:$0xff]  }
 0x30a   : > { %5048 = vmatpush1.bf16.msra.mxu0 %v6347_v2  ;;  %4784 = vmatprep.subr.bf16.mxu1 %v6352_v34  ;;  %v6433_v2 = vld [vmem:[%s7493_s27 + $0x744] ss:$8 sps:$4 sm:$0xff]   ;;  %v6431_v34 = vld [vmem:[%s7493_s27 + $0x740] ss:$8 sps:$4 sm:$0xff]  }
 0x30b   : > { %5049 = vmatprep.subr.bf16.mxu0 %v6355_v33  ;;  %v6436_v33 = vld [vmem:[%s7493_s27 + $0x254] ss:$8 sps:$4 sm:$0xff]  }
 0x30d   : > { %4785 = vmatpush1.bf16.msra.mxu1 %v6350_v38  ;;  %v6434_v38 = vld [vmem:[%s7493_s27 + $0x250] ss:$8 sps:$4 sm:$0xff]  }
 0x30e   : > { %5050 = vmatpush1.bf16.msra.mxu0 %v6353_v39  ;;  %4786 = vmatprep.subr.bf16.mxu1 %v6358_v58  ;;  %v6437_v39 = vld [vmem:[%s7493_s27 + $0x750] ss:$8 sps:$4 sm:$0xff]   ;;  %v6442_v58 = vld [vmem:[%s7493_s27 + $0x264] ss:$8 sps:$4 sm:$0xff]  }
 0x30f   : > { %5051 = vmatprep.subr.bf16.mxu0 %v6361_v62  ;;  %v6445_v62 = vld [vmem:[%s7493_s27 + $0x764] ss:$8 sps:$4 sm:$0xff]  }
 0x311   : > { %4787 = vmatpush1.bf16.msra.mxu1 %v6356_v35  ;;  %v6440_v35 = vld [vmem:[%s7493_s27 + $0x260] ss:$8 sps:$4 sm:$0xff]  }
 0x312   : > { %5052 = vmatpush1.bf16.msra.mxu0 %v6359_v59  ;;  %4788 = vmatprep.subr.bf16.mxu1 %v6364_v6  ;;  %v6443_v59 = vld [vmem:[%s7493_s27 + $0x760] ss:$8 sps:$4 sm:$0xff]   ;;  %v6448_v6 = vld [vmem:[%s7493_s27 + $0x274] ss:$8 sps:$4 sm:$0xff]  }
 0x313   : > { %5053 = vmatprep.subr.bf16.mxu0 %v6367_v9  ;;  %v6451_v9 = vld [vmem:[%s7493_s27 + $0x774] ss:$8 sps:$4 sm:$0xff]  }
 0x315   : > { %4789 = vmatpush1.bf16.msra.mxu1 %v6362_v43  ;;  %v6446_v43 = vld [vmem:[%s7493_s27 + $0x270] ss:$8 sps:$4 sm:$0xff]  }
 0x316   : > { %5054 = vmatpush1.bf16.msra.mxu0 %v6365_v44  ;;  %4790 = vmatprep.subr.bf16.mxu1 %v6370_v46  ;;  %v6449_v44 = vld [vmem:[%s7493_s27 + $0x770] ss:$8 sps:$4 sm:$0xff]   ;;  %v6454_v46 = vld [vmem:[%s7493_s27 + $0x284] ss:$8 sps:$4 sm:$0xff]  }
 0x317   : > { %5055 = vmatprep.subr.bf16.mxu0 %v6373_v15  ;;  %v6457_v15 = vld [vmem:[%s7493_s27 + $0x784] ss:$8 sps:$4 sm:$0xff]  }
 0x319   : > { %4791 = vmatpush1.bf16.msra.mxu1 %v6368_v16  ;;  %v6452_v16 = vld [vmem:[%s7493_s27 + $0x280] ss:$8 sps:$4 sm:$0xff]  }
 0x31a   : > { %5056 = vmatpush1.bf16.msra.mxu0 %v6371_v36  ;;  %4792 = vmatprep.subr.bf16.mxu1 %v6376_v42  ;;  %v6455_v36 = vld [vmem:[%s7493_s27 + $0x780] ss:$8 sps:$4 sm:$0xff]   ;;  %v6460_v42 = vld [vmem:[%s7493_s27 + $0x294] ss:$8 sps:$4 sm:$0xff]  }
 0x31b   : > { %5057 = vmatprep.subr.bf16.mxu0 %v6379_v47  ;;  %v6463_v47 = vld [vmem:[%s7493_s27 + $0x794] ss:$8 sps:$4 sm:$0xff]  }
 0x31d   : > { %4793 = vmatpush1.bf16.msra.mxu1 %v6374_v61  ;;  %v6458_v61 = vld [vmem:[%s7493_s27 + $0x290] ss:$8 sps:$4 sm:$0xff]  }
 0x31e   : > { %5058 = vmatpush1.bf16.msra.mxu0 %v6377_v48  ;;  %4794 = vmatprep.subr.bf16.mxu1 %v6382_v24  ;;  %v6461_v48 = vld [vmem:[%s7493_s27 + $0x790] ss:$8 sps:$4 sm:$0xff]   ;;  %v6466_v24 = vld [vmem:[%s7493_s27 + $0x2a4] ss:$8 sps:$4 sm:$0xff]  }
 0x31f   : > { %5059 = vmatprep.subr.bf16.mxu0 %v6385_v40  ;;  %v6469_v40 = vld [vmem:[%s7493_s27 + $0x7a4] ss:$8 sps:$4 sm:$0xff]  }
 0x321   : > { %4795 = vmatpush1.bf16.msra.mxu1 %v6380_v49  ;;  %v6464_v49 = vld [vmem:[%s7493_s27 + $0x2a0] ss:$8 sps:$4 sm:$0xff]  }
 0x322   : > { %5060 = vmatpush1.bf16.msra.mxu0 %v6383_v45  ;;  %4796 = vmatprep.subr.bf16.mxu1 %v6388_v20  ;;  %v6467_v45 = vld [vmem:[%s7493_s27 + $0x7a0] ss:$8 sps:$4 sm:$0xff]   ;;  %v6472_v20 = vld [vmem:[%s7493_s27 + $0x2b4] ss:$8 sps:$4 sm:$0xff]  }
 0x323   : > { %5061 = vmatprep.subr.bf16.mxu0 %v6391_v50  ;;  %v6475_v50 = vld [vmem:[%s7493_s27 + $0x7b4] ss:$8 sps:$4 sm:$0xff]  }
 0x325   : > { %4797 = vmatpush1.bf16.msra.mxu1 %v6386_v51  ;;  %v6470_v51 = vld [vmem:[%s7493_s27 + $0x2b0] ss:$8 sps:$4 sm:$0xff]  }
 0x326   : > { %5062 = vmatpush1.bf16.msra.mxu0 %v6389_v53  ;;  %4798 = vmatprep.subr.bf16.mxu1 %v6394_v54  ;;  %v6473_v53 = vld [vmem:[%s7493_s27 + $0x7b0] ss:$8 sps:$4 sm:$0xff]   ;;  %v6478_v54 = vld [vmem:[%s7493_s27 + $0x2c4] ss:$8 sps:$4 sm:$0xff]  }
 0x327   : > { %5063 = vmatprep.subr.bf16.mxu0 %v6397_v55  ;;  %v6481_v55 = vld [vmem:[%s7493_s27 + $0x7c4] ss:$8 sps:$4 sm:$0xff]  }
 0x329   : > { %4799 = vmatpush1.bf16.msra.mxu1 %v6392_v0  ;;  %v6476_v0 = vld [vmem:[%s7493_s27 + $0x2c0] ss:$8 sps:$4 sm:$0xff]  }
 0x32a   : > { %5064 = vmatpush1.bf16.msra.mxu0 %v6395_v1  ;;  %4800 = vmatprep.subr.bf16.mxu1 %v6400_v5  ;;  %v6479_v1 = vld [vmem:[%s7493_s27 + $0x7c0] ss:$8 sps:$4 sm:$0xff]   ;;  %v6484_v5 = vld [vmem:[%s7493_s27 + $0x2d4] ss:$8 sps:$4 sm:$0xff]  }
 0x32b   : > { %5065 = vmatprep.subr.bf16.mxu0 %v6403_v7  ;;  %v6487_v7 = vld [vmem:[%s7493_s27 + $0x7d4] ss:$8 sps:$4 sm:$0xff]  }
 0x32d   : > { %4801 = vmatpush1.bf16.msra.mxu1 %v6398_v10  ;;  %v6482_v10 = vld [vmem:[%s7493_s27 + $0x2d0] ss:$8 sps:$4 sm:$0xff]  }
 0x32e   : > { %5066 = vmatpush1.bf16.msra.mxu0 %v6401_v11  ;;  %4823 = vmatprep.subr.bf16.mxu1 %v6406_v13  ;;  %v6485_v11 = vld [vmem:[%s7493_s27 + $0x7d0] ss:$8 sps:$4 sm:$0xff]   ;;  %v6490_v13 = vld [vmem:[%s7493_s27 + $0x2e4] ss:$8 sps:$4 sm:$0xff]  }
 0x32f   : > { %5088 = vmatprep.subr.bf16.mxu0 %v6409_v14  ;;  %v6493_v14 = vld [vmem:[%s7493_s27 + $0x7e4] ss:$8 sps:$4 sm:$0xff]  }
 0x330   : > { %4803 = vmatmul.mubr.bf16.vlgmr.msra.gmra.mrb[0].mxu1 %v2759_v19  ;;  %v6496_v19 = vld [vmem:[%s7493_s27 + $0x2f4] ss:$8 sps:$4 sm:$0xff]  }
 0x331   : > { %5068 = vmatmul.mubr.bf16.vlgmr.msra.gmra.mrb[0].mxu0 %v2769_v21  ;;  %4824 = vmatpush1.bf16.msra.mxu1 %v6404_v17  ;;  %v6488_v17 = vld [vmem:[%s7493_s27 + $0x2e0] ss:$8 sps:$4 sm:$0xff]   ;;  %v6499_v21 = vld [vmem:[%s7493_s27 + $0x7f4] ss:$8 sps:$4 sm:$0xff]  }
 0x332   : > { %5089 = vmatpush1.bf16.msra.mxu0 %v6407_v18  ;;  %4825 = vmatprep.subr.bf16.mxu1 %v6412_v22  ;;  %v6491_v18 = vld [vmem:[%s7493_s27 + $0x7e0] ss:$8 sps:$4 sm:$0xff]   ;;  %v6494_v22 = vld [vmem:[%s7493_s27 + $0x2f0] ss:$8 sps:$4 sm:$0xff]  }
 0x333   : > { %5090 = vmatprep.subr.bf16.mxu0 %v6415_v23  ;;  %4812 = vmatprep.mubr.bf16.mxu1 %v2780_v26  ;;  %v6497_v23 = vld [vmem:[%s7493_s27 + $0x7f0] ss:$8 sps:$4 sm:$0xff]   ;;  %v6505_v26 = vld [vmem:[%s7493_s27 + $0x804] ss:$8 sps:$4 sm:$0xff]  }
 0x334   : > { %5077 = vmatprep.mubr.bf16.mxu0 %v2790_v27  ;;  %v6500_v27 = vld [vmem:[%s7493_s27 + $0x300] ss:$8 sps:$4 sm:$0xff]  }
 0x335   : > { %4826 = vmatpush1.bf16.msra.mxu1 %v6410_v25  ;;  %v6502_v25 = vld [vmem:[%s7493_s27 + $0x304] ss:$8 sps:$4 sm:$0xff]  }
 0x336   : > { %5091 = vmatpush1.bf16.msra.mxu0 %v6413_v28  ;;  %4827 = vmatprep.subr.bf16.mxu1 %v6418_v3  ;;  %v6503_v28 = vld [vmem:[%s7493_s27 + $0x800] ss:$8 sps:$4 sm:$0xff]   ;;  %v2761_v3 = vld [vmem:[#allocation2 + $0x20] sm:$0xff] }
 0x337   : > { %5092 = vmatprep.subr.bf16.mxu0 %v6421_v41  ;;  %v2771_v41 = vld [vmem:[#allocation2 + $0x70] sm:$0xff] }
 0x338   : > { %4813 = vmatmul.mubr.bf16.gmra.mrb[4].mxu1 %v2779_v60  ;;  %v6509_v60 = vld [vmem:[%s7493_s27 + $0x810] ss:$8 sps:$4 sm:$0xff]  }
 0x339   : > { %5078 = vmatmul.mubr.bf16.gmra.mrb[4].mxu0 %v2789_v4  ;;  %4828 = vmatpush1.bf16.msra.mxu1 %v6416_v56  ;;  %v6508_v56 = vld [vmem:[%s7493_s27 + $0x314] ss:$8 sps:$4 sm:$0xff]   ;;  %v2782_v4 = vld [vmem:[#allocation2 + $0xc8] sm:$0xff] }
 0x33a   : > { %5093 = vmatpush1.bf16.msra.mxu0 %v6419_v52  ;;  %4829 = vmatprep.subr.bf16.mxu1 %v6424_v57  ;;  %v6511_v52 = vld [vmem:[%s7493_s27 + $0x814] ss:$8 sps:$4 sm:$0xff]   ;;  %v6506_v57 = vld [vmem:[%s7493_s27 + $0x310] ss:$8 sps:$4 sm:$0xff]  }
 0x33b   : > { %5094 = vmatprep.subr.bf16.mxu0 %v6427_v29  ;;  %4855 = vmatprep.mubr.bf16.mxu1 %v2762_v32  ;;  %v2792_v29 = vld [vmem:[#allocation2 + $0x118] sm:$0xff]  ;;  %v6512_v32 = vld [vmem:[%s7493_s27 + $0x320] ss:$8 sps:$4 sm:$0xff]  }
 0x33c   : > { %5120 = vmatprep.mubr.bf16.mxu0 %v2772_v12  ;;  %v6515_v12 = vld [vmem:[%s7493_s27 + $0x820] ss:$8 sps:$4 sm:$0xff]  }
 0x33d   : > { %4830 = vmatpush1.bf16.msra.mxu1 %v6422_v30  ;;  %v6514_v30 = vld [vmem:[%s7493_s27 + $0x324] ss:$8 sps:$4 sm:$0xff]  }
 0x33e   : > { %5095 = vmatpush1.bf16.msra.mxu0 %v6425_v31  ;;  %4831 = vmatprep.subr.bf16.mxu1 %v6430_v63  ;;  %v6517_v31 = vld [vmem:[%s7493_s27 + $0x824] ss:$8 sps:$4 sm:$0xff]   ;;  %v6520_v63 = vld [vmem:[%s7493_s27 + $0x334] ss:$8 sps:$4 sm:$0xff]  }
 0x33f   : > { %5096 = vmatprep.subr.bf16.mxu0 %v6433_v2  ;;  %v2781_v2 = vld [vmem:[#allocation2 + $0xc0] sm:$0xff] }
 0x341   : > { %4832 = vmatpush1.bf16.msra.mxu1 %v6428_v8  ;;  %v2791_v8 = vld [vmem:[#allocation2 + $0x110] sm:$0xff] }
 0x342   : > { %5097 = vmatpush1.bf16.msra.mxu0 %v6431_v34  ;;  %4833 = vmatprep.subr.bf16.mxu1 %v6436_v33  ;;  %v6523_v34 = vld [vmem:[%s7493_s27 + $0x834] ss:$8 sps:$4 sm:$0xff]   ;;  %v6518_v33 = vld [vmem:[%s7493_s27 + $0x330] ss:$8 sps:$4 sm:$0xff]  }
 0x343   : > { %5098 = vmatprep.subr.bf16.mxu0 %v6439_v37  ;;  %v6521_v37 = vld [vmem:[%s7493_s27 + $0x830] ss:$8 sps:$4 sm:$0xff]  }
 0x345   : > { %4834 = vmatpush1.bf16.msra.mxu1 %v6434_v38  ;;  %v2764_v38 = vld [vmem:[#allocation2 + $0x38] sm:$0xff] }
 0x346   : > { %5099 = vmatpush1.bf16.msra.mxu0 %v6437_v39  ;;  %4835 = vmatprep.subr.bf16.mxu1 %v6442_v58  ;;  %v2774_v39 = vld [vmem:[#allocation2 + $0x88] sm:$0xff] }
 0x347   : > { %5100 = vmatprep.subr.bf16.mxu0 %v6445_v62  ;;  %v6526_v58 = vld [vmem:[%s7493_s27 + $0x344] ss:$8 sps:$4 sm:$0xff]  }
 0x348   : > { %v6529_v62 = vld [vmem:[%s7493_s27 + $0x844] ss:$8 sps:$4 sm:$0xff]  }
 0x349   : > { %4836 = vmatpush1.bf16.msra.mxu1 %v6440_v35  ;;  %v6524_v35 = vld [vmem:[%s7493_s27 + $0x340] ss:$8 sps:$4 sm:$0xff]  }
 0x34a   : > { %5101 = vmatpush1.bf16.msra.mxu0 %v6443_v59  ;;  %4837 = vmatprep.subr.bf16.mxu1 %v6448_v6  ;;  %v6527_v59 = vld [vmem:[%s7493_s27 + $0x840] ss:$8 sps:$4 sm:$0xff]   ;;  %v6532_v6 = vld [vmem:[%s7493_s27 + $0x354] ss:$8 sps:$4 sm:$0xff]  }
 0x34b   : > { %5102 = vmatprep.subr.bf16.mxu0 %v6451_v9  ;;  %v6535_v9 = vld [vmem:[%s7493_s27 + $0x854] ss:$8 sps:$4 sm:$0xff]  }
 0x34d   : > { %4838 = vmatpush1.bf16.msra.mxu1 %v6446_v43  ;;  %v6530_v43 = vld [vmem:[%s7493_s27 + $0x350] ss:$8 sps:$4 sm:$0xff]  }
 0x34e   : > { %5103 = vmatpush1.bf16.msra.mxu0 %v6449_v44  ;;  %4839 = vmatprep.subr.bf16.mxu1 %v6454_v46  ;;  %v6533_v44 = vld [vmem:[%s7493_s27 + $0x850] ss:$8 sps:$4 sm:$0xff]   ;;  %v6538_v46 = vld [vmem:[%s7493_s27 + $0x364] ss:$8 sps:$4 sm:$0xff]  }
 0x34f   : > { %5104 = vmatprep.subr.bf16.mxu0 %v6457_v15  ;;  %v6541_v15 = vld [vmem:[%s7493_s27 + $0x864] ss:$8 sps:$4 sm:$0xff]  }
 0x351   : > { %4840 = vmatpush1.bf16.msra.mxu1 %v6452_v16  ;;  %v6536_v16 = vld [vmem:[%s7493_s27 + $0x360] ss:$8 sps:$4 sm:$0xff]  }
 0x352   : > { %5105 = vmatpush1.bf16.msra.mxu0 %v6455_v36  ;;  %4841 = vmatprep.subr.bf16.mxu1 %v6460_v42  ;;  %v6539_v36 = vld [vmem:[%s7493_s27 + $0x860] ss:$8 sps:$4 sm:$0xff]   ;;  %v6544_v42 = vld [vmem:[%s7493_s27 + $0x374] ss:$8 sps:$4 sm:$0xff]  }
 0x353   : > { %5106 = vmatprep.subr.bf16.mxu0 %v6463_v47  ;;  %v6547_v47 = vld [vmem:[%s7493_s27 + $0x874] ss:$8 sps:$4 sm:$0xff]  }
 0x355   : > { %4842 = vmatpush1.bf16.msra.mxu1 %v6458_v61  ;;  %v6542_v61 = vld [vmem:[%s7493_s27 + $0x370] ss:$8 sps:$4 sm:$0xff]  }
 0x356   : > { %5107 = vmatpush1.bf16.msra.mxu0 %v6461_v48  ;;  %4843 = vmatprep.subr.bf16.mxu1 %v6466_v24  ;;  %v6545_v48 = vld [vmem:[%s7493_s27 + $0x870] ss:$8 sps:$4 sm:$0xff]   ;;  %v6550_v24 = vld [vmem:[%s7493_s27 + $0x384] ss:$8 sps:$4 sm:$0xff]  }
 0x357   : > { %5108 = vmatprep.subr.bf16.mxu0 %v6469_v40  ;;  %v6553_v40 = vld [vmem:[%s7493_s27 + $0x884] ss:$8 sps:$4 sm:$0xff]  }
 0x359   : > { %4844 = vmatpush1.bf16.msra.mxu1 %v6464_v49  ;;  %v6548_v49 = vld [vmem:[%s7493_s27 + $0x380] ss:$8 sps:$4 sm:$0xff]  }
 0x35a   : > { %5109 = vmatpush1.bf16.msra.mxu0 %v6467_v45  ;;  %4845 = vmatprep.subr.bf16.mxu1 %v6472_v20  ;;  %v6551_v45 = vld [vmem:[%s7493_s27 + $0x880] ss:$8 sps:$4 sm:$0xff]   ;;  %v6556_v20 = vld [vmem:[%s7493_s27 + $0x394] ss:$8 sps:$4 sm:$0xff]  }
 0x35b   : > { %5110 = vmatprep.subr.bf16.mxu0 %v6475_v50  ;;  %v6559_v50 = vld [vmem:[%s7493_s27 + $0x894] ss:$8 sps:$4 sm:$0xff]  }
 0x35d   : > { %4846 = vmatpush1.bf16.msra.mxu1 %v6470_v51  ;;  %v6554_v51 = vld [vmem:[%s7493_s27 + $0x390] ss:$8 sps:$4 sm:$0xff]  }
 0x35e   : > { %5111 = vmatpush1.bf16.msra.mxu0 %v6473_v53  ;;  %4847 = vmatprep.subr.bf16.mxu1 %v6478_v54  ;;  %v6557_v53 = vld [vmem:[%s7493_s27 + $0x890] ss:$8 sps:$4 sm:$0xff]   ;;  %v6562_v54 = vld [vmem:[%s7493_s27 + $0x3a4] ss:$8 sps:$4 sm:$0xff]  }
 0x35f   : > { %5112 = vmatprep.subr.bf16.mxu0 %v6481_v55  ;;  %v6565_v55 = vld [vmem:[%s7493_s27 + $0x8a4] ss:$8 sps:$4 sm:$0xff]  }
 0x361   : > { %4848 = vmatpush1.bf16.msra.mxu1 %v6476_v0  ;;  %v6560_v0 = vld [vmem:[%s7493_s27 + $0x3a0] ss:$8 sps:$4 sm:$0xff]  }
 0x362   : > { %5113 = vmatpush1.bf16.msra.mxu0 %v6479_v1  ;;  %4849 = vmatprep.subr.bf16.mxu1 %v6484_v5  ;;  %v6563_v1 = vld [vmem:[%s7493_s27 + $0x8a0] ss:$8 sps:$4 sm:$0xff]   ;;  %v6568_v5 = vld [vmem:[%s7493_s27 + $0x3b4] ss:$8 sps:$4 sm:$0xff]  }
 0x363   : > { %5114 = vmatprep.subr.bf16.mxu0 %v6487_v7  ;;  %v6571_v7 = vld [vmem:[%s7493_s27 + $0x8b4] ss:$8 sps:$4 sm:$0xff]  }
 0x365   : > { %4850 = vmatpush1.bf16.msra.mxu1 %v6482_v10  ;;  %v6566_v10 = vld [vmem:[%s7493_s27 + $0x3b0] ss:$8 sps:$4 sm:$0xff]  }
 0x366   : > { %5115 = vmatpush1.bf16.msra.mxu0 %v6485_v11  ;;  %4851 = vmatprep.subr.bf16.mxu1 %v6490_v13  ;;  %v6569_v11 = vld [vmem:[%s7493_s27 + $0x8b0] ss:$8 sps:$4 sm:$0xff]   ;;  %v6574_v13 = vld [vmem:[%s7493_s27 + $0x3c4] ss:$8 sps:$4 sm:$0xff]  }
 0x367   : > { %5116 = vmatprep.subr.bf16.mxu0 %v6493_v14  ;;  %v6577_v14 = vld [vmem:[%s7493_s27 + $0x8c4] ss:$8 sps:$4 sm:$0xff]  }
 0x369   : > { %4852 = vmatpush1.bf16.msra.mxu1 %v6488_v17  ;;  %v6572_v17 = vld [vmem:[%s7493_s27 + $0x3c0] ss:$8 sps:$4 sm:$0xff]  }
 0x36a   : > { %5117 = vmatpush1.bf16.msra.mxu0 %v6491_v18  ;;  %4853 = vmatprep.subr.bf16.mxu1 %v6496_v19  ;;  %v6575_v18 = vld [vmem:[%s7493_s27 + $0x8c0] ss:$8 sps:$4 sm:$0xff]   ;;  %v6580_v19 = vld [vmem:[%s7493_s27 + $0x3d4] ss:$8 sps:$4 sm:$0xff]  }
 0x36b   : > { %5118 = vmatprep.subr.bf16.mxu0 %v6499_v21  ;;  %v6583_v21 = vld [vmem:[%s7493_s27 + $0x8d4] ss:$8 sps:$4 sm:$0xff]  }
 0x36d   : > { %4854 = vmatpush1.bf16.msra.mxu1 %v6494_v22  ;;  %v6578_v22 = vld [vmem:[%s7493_s27 + $0x3d0] ss:$8 sps:$4 sm:$0xff]  }
 0x36e   : > { %5119 = vmatpush1.bf16.msra.mxu0 %v6497_v23  ;;  %4876 = vmatprep.subr.bf16.mxu1 %v6502_v25  ;;  %v6581_v23 = vld [vmem:[%s7493_s27 + $0x8d0] ss:$8 sps:$4 sm:$0xff]   ;;  %v6586_v25 = vld [vmem:[%s7493_s27 + $0x3e4] ss:$8 sps:$4 sm:$0xff]  }
 0x36f   : > { %5141 = vmatprep.subr.bf16.mxu0 %v6505_v26  ;;  %v6589_v26 = vld [vmem:[%s7493_s27 + $0x8e4] ss:$8 sps:$4 sm:$0xff]  }
 0x370   : > { %4856 = vmatmul.mubr.bf16.vlgmr.msra.gmra.mrb[0].mxu1 %v2761_v3  ;;  %v6592_v3 = vld [vmem:[%s7493_s27 + $0x3f4] ss:$8 sps:$4 sm:$0xff]  }
 0x371   : > { %5121 = vmatmul.mubr.bf16.vlgmr.msra.gmra.mrb[0].mxu0 %v2771_v41  ;;  %4877 = vmatpush1.bf16.msra.mxu1 %v6500_v27  ;;  %v6584_v27 = vld [vmem:[%s7493_s27 + $0x3e0] ss:$8 sps:$4 sm:$0xff]   ;;  %v6595_v41 = vld [vmem:[%s7493_s27 + $0x8f4] ss:$8 sps:$4 sm:$0xff]  }
 0x372   : > { %5142 = vmatpush1.bf16.msra.mxu0 %v6503_v28  ;;  %4878 = vmatprep.subr.bf16.mxu1 %v6508_v56  ;;  %v6587_v28 = vld [vmem:[%s7493_s27 + $0x8e0] ss:$8 sps:$4 sm:$0xff]   ;;  %v6590_v56 = vld [vmem:[%s7493_s27 + $0x3f0] ss:$8 sps:$4 sm:$0xff]  }
 0x373   : > { %5143 = vmatprep.subr.bf16.mxu0 %v6511_v52  ;;  %4865 = vmatprep.mubr.bf16.mxu1 %v2782_v4  ;;  %v6593_v52 = vld [vmem:[%s7493_s27 + $0x8f0] ss:$8 sps:$4 sm:$0xff]   ;;  %v6596_v4 = vld [vmem:[%s7493_s27 + $0x400] ss:$8 sps:$4 sm:$0xff]  }
 0x374   : > { %5130 = vmatprep.mubr.bf16.mxu0 %v2792_v29  ;;  %v6599_v29 = vld [vmem:[%s7493_s27 + $0x900] ss:$8 sps:$4 sm:$0xff]  }
 0x375   : > { %4879 = vmatpush1.bf16.msra.mxu1 %v6506_v57  ;;  %v6598_v57 = vld [vmem:[%s7493_s27 + $0x404] ss:$8 sps:$4 sm:$0xff]  }
 0x376   : > { %5144 = vmatpush1.bf16.msra.mxu0 %v6509_v60  ;;  %4880 = vmatprep.subr.bf16.mxu1 %v6514_v30  ;;  %v6601_v60 = vld [vmem:[%s7493_s27 + $0x904] ss:$8 sps:$4 sm:$0xff]  }
 0x377   : > { %5145 = vmatprep.subr.bf16.mxu0 %v6517_v31  ;;  %v2763_v30 = vld [vmem:[#allocation2 + $0x30] sm:$0xff]  ;;  %v2773_v31 = vld [vmem:[#allocation2 + $0x80] sm:$0xff] }
 0x378   : > { %4866 = vmatmul.mubr.bf16.gmra.mrb[4].mxu1 %v2781_v2  ;;  %v2794_v2 = vld [vmem:[#allocation2 + $0x128] sm:$0xff] }
 0x379   : > { %5131 = vmatmul.mubr.bf16.gmra.mrb[4].mxu0 %v2791_v8  ;;  %4881 = vmatpush1.bf16.msra.mxu1 %v6512_v32  ;;  %v6604_v32 = vld [vmem:[%s7493_s27 + $0x414] ss:$8 sps:$4 sm:$0xff]   ;;  %v6602_v8 = vld [vmem:[%s7493_s27 + $0x410] ss:$8 sps:$4 sm:$0xff]  }
 0x37a   : > { %5146 = vmatpush1.bf16.msra.mxu0 %v6515_v12  ;;  %4882 = vmatprep.subr.bf16.mxu1 %v6520_v63  ;;  %v6607_v12 = vld [vmem:[%s7493_s27 + $0x914] ss:$8 sps:$4 sm:$0xff]  }
 0x37b   : > { %5147 = vmatprep.subr.bf16.mxu0 %v6523_v34  ;;  %4908 = vmatprep.mubr.bf16.mxu1 %v2764_v38  ;;  %v2784_v63 = vld [vmem:[#allocation2 + $0xd8] sm:$0xff]  ;;  %v6608_v38 = vld [vmem:[%s7493_s27 + $0x420] ss:$8 sps:$4 sm:$0xff]  }
 0x37c   : > { %5173 = vmatprep.mubr.bf16.mxu0 %v2774_v39  ;;  %v6605_v34 = vld [vmem:[%s7493_s27 + $0x910] ss:$8 sps:$4 sm:$0xff]   ;;  %v6611_v39 = vld [vmem:[%s7493_s27 + $0x920] ss:$8 sps:$4 sm:$0xff]  }
 0x37d   : > { %4883 = vmatpush1.bf16.msra.mxu1 %v6518_v33  ;;  %v6610_v33 = vld [vmem:[%s7493_s27 + $0x424] ss:$8 sps:$4 sm:$0xff]  }
 0x37e   : > { %5148 = vmatpush1.bf16.msra.mxu0 %v6521_v37  ;;  %4884 = vmatprep.subr.bf16.mxu1 %v6526_v58  ;;  %v6613_v37 = vld [vmem:[%s7493_s27 + $0x924] ss:$8 sps:$4 sm:$0xff]  }
 0x37f   : > { %5149 = vmatprep.subr.bf16.mxu0 %v6529_v62  ;;  %v2783_v58 = vld [vmem:[#allocation2 + $0xd0] sm:$0xff]  ;;  %v2793_v62 = vld [vmem:[#allocation2 + $0x120] sm:$0xff] }
 0x381   : > { %4885 = vmatpush1.bf16.msra.mxu1 %v6524_v35  ;;  %v6616_v35 = vld [vmem:[%s7493_s27 + $0x434] ss:$8 sps:$4 sm:$0xff]  }
 0x382   : > { %5150 = vmatpush1.bf16.msra.mxu0 %v6527_v59  ;;  %4886 = vmatprep.subr.bf16.mxu1 %v6532_v6  ;;  %v6619_v59 = vld [vmem:[%s7493_s27 + $0x934] ss:$8 sps:$4 sm:$0xff]   ;;  %v2766_v6 = vld [vmem:[#allocation2 + $0x48] sm:$0xff] }
 0x383   : > { %5151 = vmatprep.subr.bf16.mxu0 %v6535_v9  ;;  %v2776_v9 = vld [vmem:[#allocation2 + $0x98] sm:$0xff] }
 0x385   : > { %4887 = vmatpush1.bf16.msra.mxu1 %v6530_v43  ;;  %v6614_v43 = vld [vmem:[%s7493_s27 + $0x430] ss:$8 sps:$4 sm:$0xff]  }
 0x386   : > { %5152 = vmatpush1.bf16.msra.mxu0 %v6533_v44  ;;  %4888 = vmatprep.subr.bf16.mxu1 %v6538_v46  ;;  %v6617_v44 = vld [vmem:[%s7493_s27 + $0x930] ss:$8 sps:$4 sm:$0xff]   ;;  %v6622_v46 = vld [vmem:[%s7493_s27 + $0x444] ss:$8 sps:$4 sm:$0xff]  }
 0x387   : > { %5153 = vmatprep.subr.bf16.mxu0 %v6541_v15  ;;  %v6625_v15 = vld [vmem:[%s7493_s27 + $0x944] ss:$8 sps:$4 sm:$0xff]  }
 0x389   : > { %4889 = vmatpush1.bf16.msra.mxu1 %v6536_v16  ;;  %v6620_v16 = vld [vmem:[%s7493_s27 + $0x440] ss:$8 sps:$4 sm:$0xff]  }
 0x38a   : > { %5154 = vmatpush1.bf16.msra.mxu0 %v6539_v36  ;;  %4890 = vmatprep.subr.bf16.mxu1 %v6544_v42  ;;  %v6623_v36 = vld [vmem:[%s7493_s27 + $0x940] ss:$8 sps:$4 sm:$0xff]   ;;  %v6628_v42 = vld [vmem:[%s7493_s27 + $0x454] ss:$8 sps:$4 sm:$0xff]  }
 0x38b   : > { %5155 = vmatprep.subr.bf16.mxu0 %v6547_v47  ;;  %v6631_v47 = vld [vmem:[%s7493_s27 + $0x954] ss:$8 sps:$4 sm:$0xff]  }
 0x38d   : > { %4891 = vmatpush1.bf16.msra.mxu1 %v6542_v61  ;;  %v6626_v61 = vld [vmem:[%s7493_s27 + $0x450] ss:$8 sps:$4 sm:$0xff]  }
 0x38e   : > { %5156 = vmatpush1.bf16.msra.mxu0 %v6545_v48  ;;  %4892 = vmatprep.subr.bf16.mxu1 %v6550_v24  ;;  %v6629_v48 = vld [vmem:[%s7493_s27 + $0x950] ss:$8 sps:$4 sm:$0xff]   ;;  %v6634_v24 = vld [vmem:[%s7493_s27 + $0x464] ss:$8 sps:$4 sm:$0xff]  }
 0x38f   : > { %5157 = vmatprep.subr.bf16.mxu0 %v6553_v40  ;;  %v6637_v40 = vld [vmem:[%s7493_s27 + $0x964] ss:$8 sps:$4 sm:$0xff]  }
 0x391   : > { %4893 = vmatpush1.bf16.msra.mxu1 %v6548_v49  ;;  %v6632_v49 = vld [vmem:[%s7493_s27 + $0x460] ss:$8 sps:$4 sm:$0xff]  }
 0x392   : > { %5158 = vmatpush1.bf16.msra.mxu0 %v6551_v45  ;;  %4894 = vmatprep.subr.bf16.mxu1 %v6556_v20  ;;  %v6635_v45 = vld [vmem:[%s7493_s27 + $0x960] ss:$8 sps:$4 sm:$0xff]   ;;  %v6640_v20 = vld [vmem:[%s7493_s27 + $0x474] ss:$8 sps:$4 sm:$0xff]  }
 0x393   : > { %5159 = vmatprep.subr.bf16.mxu0 %v6559_v50  ;;  %v6643_v50 = vld [vmem:[%s7493_s27 + $0x974] ss:$8 sps:$4 sm:$0xff]  }
 0x395   : > { %4895 = vmatpush1.bf16.msra.mxu1 %v6554_v51  ;;  %v6638_v51 = vld [vmem:[%s7493_s27 + $0x470] ss:$8 sps:$4 sm:$0xff]  }
 0x396   : > { %5160 = vmatpush1.bf16.msra.mxu0 %v6557_v53  ;;  %4896 = vmatprep.subr.bf16.mxu1 %v6562_v54  ;;  %v6641_v53 = vld [vmem:[%s7493_s27 + $0x970] ss:$8 sps:$4 sm:$0xff]   ;;  %v6646_v54 = vld [vmem:[%s7493_s27 + $0x484] ss:$8 sps:$4 sm:$0xff]  }
 0x397   : > { %5161 = vmatprep.subr.bf16.mxu0 %v6565_v55  ;;  %v6649_v55 = vld [vmem:[%s7493_s27 + $0x984] ss:$8 sps:$4 sm:$0xff]  }
 0x399   : > { %4897 = vmatpush1.bf16.msra.mxu1 %v6560_v0  ;;  %v6644_v0 = vld [vmem:[%s7493_s27 + $0x480] ss:$8 sps:$4 sm:$0xff]  }
 0x39a   : > { %5162 = vmatpush1.bf16.msra.mxu0 %v6563_v1  ;;  %4898 = vmatprep.subr.bf16.mxu1 %v6568_v5  ;;  %v6647_v1 = vld [vmem:[%s7493_s27 + $0x980] ss:$8 sps:$4 sm:$0xff]   ;;  %v6652_v5 = vld [vmem:[%s7493_s27 + $0x494] ss:$8 sps:$4 sm:$0xff]  }
 0x39b   : > { %5163 = vmatprep.subr.bf16.mxu0 %v6571_v7  ;;  %v6655_v7 = vld [vmem:[%s7493_s27 + $0x994] ss:$8 sps:$4 sm:$0xff]  }
 0x39d   : > { %4899 = vmatpush1.bf16.msra.mxu1 %v6566_v10  ;;  %v6650_v10 = vld [vmem:[%s7493_s27 + $0x490] ss:$8 sps:$4 sm:$0xff]  }
 0x39e   : > { %5164 = vmatpush1.bf16.msra.mxu0 %v6569_v11  ;;  %4900 = vmatprep.subr.bf16.mxu1 %v6574_v13  ;;  %v6653_v11 = vld [vmem:[%s7493_s27 + $0x990] ss:$8 sps:$4 sm:$0xff]   ;;  %v6658_v13 = vld [vmem:[%s7493_s27 + $0x4a4] ss:$8 sps:$4 sm:$0xff]  }
 0x39f   : > { %5165 = vmatprep.subr.bf16.mxu0 %v6577_v14  ;;  %v6661_v14 = vld [vmem:[%s7493_s27 + $0x9a4] ss:$8 sps:$4 sm:$0xff]  }
 0x3a1   : > { %4901 = vmatpush1.bf16.msra.mxu1 %v6572_v17  ;;  %v6656_v17 = vld [vmem:[%s7493_s27 + $0x4a0] ss:$8 sps:$4 sm:$0xff]  }
 0x3a2   : > { %5166 = vmatpush1.bf16.msra.mxu0 %v6575_v18  ;;  %4902 = vmatprep.subr.bf16.mxu1 %v6580_v19  ;;  %v6659_v18 = vld [vmem:[%s7493_s27 + $0x9a0] ss:$8 sps:$4 sm:$0xff]   ;;  %v6664_v19 = vld [vmem:[%s7493_s27 + $0x4b4] ss:$8 sps:$4 sm:$0xff]  }
 0x3a3   : > { %5167 = vmatprep.subr.bf16.mxu0 %v6583_v21  ;;  %v6667_v21 = vld [vmem:[%s7493_s27 + $0x9b4] ss:$8 sps:$4 sm:$0xff]  }
 0x3a5   : > { %4903 = vmatpush1.bf16.msra.mxu1 %v6578_v22  ;;  %v6662_v22 = vld [vmem:[%s7493_s27 + $0x4b0] ss:$8 sps:$4 sm:$0xff]  }
 0x3a6   : > { %5168 = vmatpush1.bf16.msra.mxu0 %v6581_v23  ;;  %4904 = vmatprep.subr.bf16.mxu1 %v6586_v25  ;;  %v6665_v23 = vld [vmem:[%s7493_s27 + $0x9b0] ss:$8 sps:$4 sm:$0xff]   ;;  %v6670_v25 = vld [vmem:[%s7493_s27 + $0x4c4] ss:$8 sps:$4 sm:$0xff]  }
 0x3a7   : > { %5169 = vmatprep.subr.bf16.mxu0 %v6589_v26  ;;  %v6673_v26 = vld [vmem:[%s7493_s27 + $0x9c4] ss:$8 sps:$4 sm:$0xff]  }
 0x3a9   : > { %4905 = vmatpush1.bf16.msra.mxu1 %v6584_v27  ;;  %v6668_v27 = vld [vmem:[%s7493_s27 + $0x4c0] ss:$8 sps:$4 sm:$0xff]  }
 0x3aa   : > { %5170 = vmatpush1.bf16.msra.mxu0 %v6587_v28  ;;  %4906 = vmatprep.subr.bf16.mxu1 %v6592_v3  ;;  %v6671_v28 = vld [vmem:[%s7493_s27 + $0x9c0] ss:$8 sps:$4 sm:$0xff]   ;;  %v6676_v3 = vld [vmem:[%s7493_s27 + $0x4d4] ss:$8 sps:$4 sm:$0xff]  }
 0x3ab   : > { %5171 = vmatprep.subr.bf16.mxu0 %v6595_v41  ;;  %v6679_v41 = vld [vmem:[%s7493_s27 + $0x9d4] ss:$8 sps:$4 sm:$0xff]  }
 0x3ad   : > { %4907 = vmatpush1.bf16.msra.mxu1 %v6590_v56  ;;  %v6674_v56 = vld [vmem:[%s7493_s27 + $0x4d0] ss:$8 sps:$4 sm:$0xff]  }
 0x3ae   : > { %5172 = vmatpush1.bf16.msra.mxu0 %v6593_v52  ;;  %4929 = vmatprep.subr.bf16.mxu1 %v6598_v57  ;;  %v6677_v52 = vld [vmem:[%s7493_s27 + $0x9d0] ss:$8 sps:$4 sm:$0xff]   ;;  %v6682_v57 = vld [vmem:[%s7493_s27 + $0x4e4] ss:$8 sps:$4 sm:$0xff]  }
 0x3af   : > { %5194 = vmatprep.subr.bf16.mxu0 %v6601_v60  ;;  %v6685_v60 = vld [vmem:[%s7493_s27 + $0x9e4] ss:$8 sps:$4 sm:$0xff]  }
 0x3b0   : > { %4909 = vmatmul.mubr.bf16.vlgmr.msra.gmra.mrb[0].mxu1 %v2763_v30  ;;  %v6688_v30 = vld [vmem:[%s7493_s27 + $0x4f4] ss:$8 sps:$4 sm:$0xff]  }
 0x3b1   : > { %5174 = vmatmul.mubr.bf16.vlgmr.msra.gmra.mrb[0].mxu0 %v2773_v31  ;;  %4930 = vmatpush1.bf16.msra.mxu1 %v6596_v4  ;;  %v6680_v4 = vld [vmem:[%s7493_s27 + $0x4e0] ss:$8 sps:$4 sm:$0xff]   ;;  %v6691_v31 = vld [vmem:[%s7493_s27 + $0x9f4] ss:$8 sps:$4 sm:$0xff]  }
 0x3b2   : > { %5195 = vmatpush1.bf16.msra.mxu0 %v6599_v29  ;;  %4931 = vmatprep.subr.bf16.mxu1 %v6604_v32  ;;  %v6683_v29 = vld [vmem:[%s7493_s27 + $0x9e0] ss:$8 sps:$4 sm:$0xff]   ;;  %v6686_v32 = vld [vmem:[%s7493_s27 + $0x4f0] ss:$8 sps:$4 sm:$0xff]  }
 0x3b3   : > { %5196 = vmatprep.subr.bf16.mxu0 %v6607_v12  ;;  %4918 = vmatprep.mubr.bf16.mxu1 %v2784_v63  ;;  %v6689_v12 = vld [vmem:[%s7493_s27 + $0x9f0] ss:$8 sps:$4 sm:$0xff]  }
 0x3b4   : > { %5183 = vmatprep.mubr.bf16.mxu0 %v2794_v2  ;;  %v6692_v63 = vld [vmem:[%s7491_s13 + $0x40] sm:$0xff]  }
 0x3b5   : > { %4932 = vmatpush1.bf16.msra.mxu1 %v6602_v8  ;;  %v2765_v2 = vld [vmem:[#allocation2 + $0x40] sm:$0xff]  ;;  %v2775_v8 = vld [vmem:[#allocation2 + $0x90] sm:$0xff] }
 0x3b6   : > { %5197 = vmatpush1.bf16.msra.mxu0 %v6605_v34  ;;  %4933 = vmatprep.subr.bf16.mxu1 %v6610_v33  ;;  %v2786_v34 = vld [vmem:[#allocation2 + $0xe8] sm:$0xff]  ;;  %v2796_v33 = vld [vmem:[#allocation2 + $0x138] sm:$0xff] }
 0x3b7   : > { %5198 = vmatprep.subr.bf16.mxu0 %v6613_v37  ;;  %v6693_v37 = vld [vmem:[%s7491_s13] sm:$0xff]  }
 0x3b8   : > { %4919 = vmatmul.mubr.bf16.gmra.mrb[4].mxu1 %v2783_v58  ;;  %v2785_v58 = vld [vmem:[#allocation2 + $0xe0] sm:$0xff] }
 0x3b9   : > { %5184 = vmatmul.mubr.bf16.gmra.mrb[4].mxu0 %v2793_v62  ;;  %4934 = vmatpush1.bf16.msra.mxu1 %v6608_v38  ;;  %v6694_v38 = vld [vmem:[%s7491_s13 + $0x48] sm:$0xff]   ;;  %v2795_v62 = vld [vmem:[#allocation2 + $0x130] sm:$0xff] }
 0x3ba   : > { %5199 = vmatpush1.bf16.msra.mxu0 %v6611_v39  ;;  %4935 = vmatprep.subr.bf16.mxu1 %v6616_v35  ;;  %v6695_v39 = vld [vmem:[%s7491_s13 + $0x8] sm:$0xff]   ;;  %v6696_v35 = vld [vmem:[%s7491_s13 + $0x50] sm:$0xff]  }
 0x3bb   : > { %5200 = vmatprep.subr.bf16.mxu0 %v6619_v59  ;;  %4961 = vmatprep.mubr.bf16.mxu1 %v2766_v6  ;;  %v6697_v59 = vld [vmem:[%s7491_s13 + $0x10] sm:$0xff]   ;;  %v6698_v6 = vld [vmem:[%s7491_s13 + $0x58] sm:$0xff]  }
 0x3bc   : > { %5226 = vmatprep.mubr.bf16.mxu0 %v2776_v9  ;;  %v6699_v9 = vld [vmem:[%s7491_s13 + $0x18] sm:$0xff]  }
 0x3bd   : > { %4936 = vmatpush1.bf16.msra.mxu1 %v6614_v43  ;;  %v6700_v43 = vld [vmem:[%s7491_s13 + $0x60] sm:$0xff]  }
 0x3be   : > { %5201 = vmatpush1.bf16.msra.mxu0 %v6617_v44  ;;  %4937 = vmatprep.subr.bf16.mxu1 %v6622_v46  ;;  %v6701_v44 = vld [vmem:[%s7491_s13 + $0x20] sm:$0xff]   ;;  %v6702_v46 = vld [vmem:[%s7491_s13 + $0x68] sm:$0xff]  }
 0x3bf   : > { %5202 = vmatprep.subr.bf16.mxu0 %v6625_v15  ;;  %v6703_v15 = vld [vmem:[%s7491_s13 + $0x28] sm:$0xff]  }
 0x3c1   : > { %4938 = vmatpush1.bf16.msra.mxu1 %v6620_v16  ;;  %v6704_v16 = vld [vmem:[%s7491_s13 + $0x70] sm:$0xff]  }
 0x3c2   : > { %5203 = vmatpush1.bf16.msra.mxu0 %v6623_v36  ;;  %4939 = vmatprep.subr.bf16.mxu1 %v6628_v42  ;;  %v6705_v36 = vld [vmem:[%s7491_s13 + $0x30] sm:$0xff]   ;;  %v6706_v42 = vld [vmem:[%s7491_s13 + $0x78] sm:$0xff]  }
 0x3c3   : > { %5204 = vmatprep.subr.bf16.mxu0 %v6631_v47  ;;  %v6707_v47 = vld [vmem:[%s7491_s13 + $0x38] sm:$0xff]  }
 0x3c5   : > { %4940 = vmatpush1.bf16.msra.mxu1 %v6626_v61 }
 0x3c6   : > { %5205 = vmatpush1.bf16.msra.mxu0 %v6629_v48  ;;  %4941 = vmatprep.subr.bf16.mxu1 %v6634_v24 }
 0x3c7   : > { %5206 = vmatprep.subr.bf16.mxu0 %v6637_v40 }
 0x3c9   : > { %4942 = vmatpush1.bf16.msra.mxu1 %v6632_v49 }
 0x3ca   : > { %5207 = vmatpush1.bf16.msra.mxu0 %v6635_v45  ;;  %4943 = vmatprep.subr.bf16.mxu1 %v6640_v20  ;;  %v5255_v45 = vlaneseq }
 0x3cb   : > { %5208 = vmatprep.subr.bf16.mxu0 %v6643_v50 }
 0x3cd   : > { %4944 = vmatpush1.bf16.msra.mxu1 %v6638_v51 }
 0x3ce   : > { %5209 = vmatpush1.bf16.msra.mxu0 %v6641_v53  ;;  %4945 = vmatprep.subr.bf16.mxu1 %v6646_v54 }
 0x3cf   : > { %5210 = vmatprep.subr.bf16.mxu0 %v6649_v55 }
 0x3d1   : > { %4946 = vmatpush1.bf16.msra.mxu1 %v6644_v0 }
 0x3d2   : > { %5211 = vmatpush1.bf16.msra.mxu0 %v6647_v1  ;;  %4947 = vmatprep.subr.bf16.mxu1 %v6652_v5  ;;  %v5256_v5 = vshrl.u32 %v5255_v45, 7 }
 0x3d3   : > { %5212 = vmatprep.subr.bf16.mxu0 %v6655_v7 }
 0x3d5   : > { %4948 = vmatpush1.bf16.msra.mxu1 %v6650_v10 }
 0x3d6   : > { %5213 = vmatpush1.bf16.msra.mxu0 %v6653_v11  ;;  %4949 = vmatprep.subr.bf16.mxu1 %v6658_v13 }
 0x3d7   : > { %5214 = vmatprep.subr.bf16.mxu0 %v6661_v14 }
 0x3d9   : > { %4950 = vmatpush1.bf16.msra.mxu1 %v6656_v17 }
 0x3da   : > { %5215 = vmatpush1.bf16.msra.mxu0 %v6659_v18  ;;  %4951 = vmatprep.subr.bf16.mxu1 %v6664_v19  ;;  %v5257_v18 = vsub.s32 0, %v5256_v5 }
 0x3db   : > { %5216 = vmatprep.subr.bf16.mxu0 %v6667_v21 }
 0x3dd   : > { %4952 = vmatpush1.bf16.msra.mxu1 %v6662_v22 }
 0x3de   : > { %5217 = vmatpush1.bf16.msra.mxu0 %v6665_v23  ;;  %4953 = vmatprep.subr.bf16.mxu1 %v6670_v25  ;;  %v5253_v23 = vld [vmem:[%s1636_s26] sm:$0x3]  ;;  %v5261_v25 = vsub.s32 1, %v5256_v5 }
 0x3df   : > { %5218 = vmatprep.subr.bf16.mxu0 %v6673_v26 }
 0x3e1   : > { %4954 = vmatpush1.bf16.msra.mxu1 %v6668_v27 }
 0x3e2   : > { %5219 = vmatpush1.bf16.msra.mxu0 %v6671_v28  ;;  %4955 = vmatprep.subr.bf16.mxu1 %v6676_v3 }
 0x3e3   : > { %5220 = vmatprep.subr.bf16.mxu0 %v6679_v41 }
 0x3e5   : > { %4956 = vmatpush1.bf16.msra.mxu1 %v6674_v56  ;;  %v5258_v56 = vrot.slane %v5253_v23, %v5257_v18 }
 0x3e6   : > { %5221 = vmatpush1.bf16.msra.mxu0 %v6677_v52  ;;  %4957 = vmatprep.subr.bf16.mxu1 %v6682_v57  ;;  %v5262_v57 = vrot.slane %v5253_v23, %v5261_v25 }
 0x3e7   : > { %5222 = vmatprep.subr.bf16.mxu0 %v6685_v60 }
 0x3e9   : > { %4958 = vmatpush1.bf16.msra.mxu1 %v6680_v4 }
 0x3ea   : > { %5223 = vmatpush1.bf16.msra.mxu0 %v6683_v29  ;;  %4959 = vmatprep.subr.bf16.mxu1 %v6688_v30 }
 0x3eb   : > { %5224 = vmatprep.subr.bf16.mxu0 %v6691_v31 }
 0x3ed   : > { %4960 = vmatpush1.bf16.msra.mxu1 %v6686_v32 }
 0x3ee   : > { %5225 = vmatpush1.bf16.msra.mxu0 %v6689_v12  ;;  %6054 = vmatprep.subr.bf16.mxu1 %v6692_v63 }
 0x3f0   : > { %4962 = vmatmul.mubr.bf16.vlgmr.msra.gmra.mrb[0].mxu1 %v2765_v2 }
 0x3f1   : > { %5227 = vmatmul.mubr.bf16.vlgmr.msra.gmra.mrb[0].mxu0 %v2775_v8  ;;  %4971 = vmatprep.mubr.bf16.mxu1 %v2786_v34  ;;  %v5269_v8 = vld [vmem:[#allocation3] sm:$0xff] }
 0x3f2   : > { %5236 = vmatprep.mubr.bf16.mxu0 %v2796_v33  ;;  %6055 = vmatpush3.bf16.msra.mxu1 %v6693_v37 }
 0x3f3   : > { %6056 = vmatprep.subr.bf16.mxu1 %v6694_v38 }
 0x3f6   : > { %6057 = vmatpush3.bf16.msra.mxu1 %v6695_v39 }
 0x3f7   : > { %6058 = vmatprep.subr.bf16.mxu1 %v6696_v35  ;;  %v6709_v35 = vld [vmem:[%s8381_s6 + $0x8] sm:$0xff] (!%p6040_p11)  }
 0x3f8   : > { %4972 = vmatmul.mubr.bf16.gmra.mrb[4].mxu1 %v2785_v58  ;;  %v6708_v58 = vld [vmem:[%s8381_s6] sm:$0xff] (!%p6040_p11)  }
 0x3f9   : > { %5237 = vmatmul.mubr.bf16.gmra.mrb[4].mxu0 %v2795_v62  ;;  %v6750_v62 = vmov (!%p6040_p11), 0.0  }
 0x3fa   : > { %6059 = vmatpush3.bf16.msra.mxu1 %v6697_v59  ;;  %6085 = vmatprep.subr.bf16.mxu0 (!%p6040_p11), %v6750_v62  ;;  %v6710_v59 = vld [vmem:[%s8381_s6 + $0x10] sm:$0xff] (!%p6040_p11)  }
 0x3fb   : > { %6060 = vmatprep.subr.bf16.mxu1 %v6698_v6  ;;  %6086 = vmatpush3.bf16.msra.mxu0 (!%p6040_p11), %v6708_v58  ;;  %v6711_v6 = vld [vmem:[%s8381_s6 + $0x18] sm:$0xff] (!%p6040_p11)  }
 0x3fc   : > { %6101 = vmatprep.mubr.msk.bf16.mxu0 (!%p6040_p11), %vm6751_vm6, %v6750_v62  ;;  %6087 = vmatprep.subr.bf16.mxu0 (!%p6040_p11), %v6750_v62 }
 0x3fe   : > { %6061 = vmatpush3.bf16.msra.mxu1 %v6699_v9  ;;  %v6712_v9 = vld [vmem:[%s8381_s6 + $0x20] sm:$0xff] (!%p6040_p11)  }
 0x3ff   : > { %6062 = vmatprep.subr.bf16.mxu1 %v6700_v43  ;;  %6088 = vmatpush3.bf16.msra.mxu0 (!%p6040_p11), %v6709_v35  ;;  %v6713_v43 = vld [vmem:[%s8381_s6 + $0x28] sm:$0xff] (!%p6040_p11)  }
 0x400   : > { %6089 = vmatprep.subr.bf16.mxu0 (!%p6040_p11), %v6750_v62 }
 0x402   : > { %6063 = vmatpush3.bf16.msra.mxu1 %v6701_v44 }
 0x403   : > { %6064 = vmatprep.subr.bf16.mxu1 %v6702_v46  ;;  %6090 = vmatpush3.bf16.msra.mxu0 (!%p6040_p11), %v6710_v59  ;;  %v6041_v46 = vld [vmem:[%s8380_s5] ss:$0 sm:$0xff] (!%p6040_p11) }
 0x404   : > { %6091 = vmatprep.subr.bf16.mxu0 (!%p6040_p11), %v6750_v62 }
 0x406   : > { %6065 = vmatpush3.bf16.msra.mxu1 %v6703_v15 }
 0x407   : > { %6066 = vmatprep.subr.bf16.mxu1 %v6704_v16  ;;  %6092 = vmatpush3.bf16.msra.mxu0 (!%p6040_p11), %v6711_v6  ;;  %v6714_v16 = vld [vmem:[%s8381_s6 + $0x30] sm:$0xff] (!%p6040_p11)  }
 0x408   : > { %6093 = vmatprep.subr.bf16.mxu0 (!%p6040_p11), %v6750_v62 }
 0x40a   : > { %6067 = vmatpush3.bf16.msra.mxu1 %v6705_v36 }
 0x40b   : > { %6068 = vmatprep.subr.bf16.mxu1 %v6706_v42  ;;  %6094 = vmatpush3.bf16.msra.mxu0 (!%p6040_p11), %v6712_v9  ;;  %v6715_v42 = vld [vmem:[%s8381_s6 + $0x38] sm:$0xff] (!%p6040_p11)  }
 0x40c   : > { %6095 = vmatprep.subr.bf16.mxu0 (!%p6040_p11), %v6750_v62 }
 0x40e   : > { %6069 = vmatpush3.bf16.msra.mxu1 %v6707_v47 }
 0x40f   : > { %6096 = vmatpush3.bf16.msra.mxu0 (!%p6040_p11), %v6713_v43 }
 0x410   : > { %6097 = vmatprep.subr.bf16.mxu0 (!%p6040_p11), %v6750_v62 }
 0x413   : > { %6098 = vmatpush3.bf16.msra.mxu0 (!%p6040_p11), %v6714_v16 }
 0x414   : > { %6099 = vmatprep.subr.bf16.mxu0 (!%p6040_p11), %v6750_v62 }
 0x417   : > { %6100 = vmatpush3.bf16.msra.mxu0 (!%p6040_p11), %v6715_v42 }
 0x4c3   : > { %v4963_v61 = vpop.f32.mrb[0].mxu1 }
 0x4c4   : > { %v5228_v48 = vpop.f32.mrb[0].mxu0  ;;  %v4965_v40 = vpop.f32.mrb[1].mxu1 }
 0x4c5   : > { %v6105_v24 = vadd.f32 %v5228_v48, %v4963_v61  ;;  %v5230_v49 = vpop.f32.mrb[1].mxu0  ;;  %v4967_v50 = vpop.f32.mrb[2].mxu1  ;;  %v5569_v61 = vand.u32 (!%p6040_p11), 127, %v5255_v45  ;;  %v6042_v48 = vld [vmem:[%s8382_s7] ss:$0 sm:$0xff] (!%p6040_p11) }
 0x4c6   : > { %v6106_v20 = vadd.f32 %v5230_v49, %v4965_v40  ;;  %v5232_v51 = vpop.f32.mrb[2].mxu0  ;;  %v4969_v54 = vpop.f32.mrb[3].mxu1 }
 0x4c7   : > { %v6107_v53 = vadd.f32 %v5232_v51, %v4967_v50  ;;  %v5234_v55 = vpop.f32.mrb[3].mxu0  ;;  %vm5570_vm7 = vcmp.lt.s32.totalorder (!%p6040_p11), %v5569_v61, 10 }
 0x4c8   : > { %v6108_v0 = vadd.f32 %v5234_v55, %v4969_v54 }
 0x4c9   : > { %v5247_v1 = vmax.f32 %v6105_v24, %v6107_v53 }
 0x4ca   : > { %v5248_v7 = vmax.f32 %v6106_v20, %v6108_v0 }
 0x4cb   : > { %v4973_v10 = vpop.f32.mrb[4].mxu1 }
 0x4cc   : > { %v5238_v11 = vpop.f32.mrb[4].mxu0  ;;  %v4975_v14 = vpop.f32.mrb[5].mxu1 }
 0x4cd   : > { %v6109_v13 = vadd.f32 %v5238_v11, %v4973_v10  ;;  %v5240_v17 = vpop.f32.mrb[5].mxu0  ;;  %v4977_v21 = vpop.f32.mrb[6].mxu1 }
 0x4ce   : > { %v6110_v19 = vadd.f32 %v5240_v17, %v4975_v14  ;;  %v5242_v22 = vpop.f32.mrb[6].mxu0  ;;  %v4979_v27 = vpop.f32.mrb[7].mxu1 }
 0x4cf   : > { %v6111_v26 = vadd.f32 %v5242_v22, %v4977_v21  ;;  %v5244_v28 = vpop.f32.mrb[7].mxu0 }
 0x4d0   : > { %v6112_v3 = vadd.f32 %v5244_v28, %v4979_v27 }
 0x4d1   : > { %v5249_v41 = vmax.f32 %v6109_v13, %v6111_v26 }
 0x4d2   : > { %v5250_v52 = vmax.f32 %v6110_v19, %v6112_v3 }
 0x4d3   : > { %v5251_v60 = vmax.f32 %v5247_v1, %v5249_v41 }
 0x4d4   : > { %v5252_v4 = vmax.f32 %v5248_v7, %v5250_v52 }
 0x4d5   : > { %v5265_v29 = vadd.f32 %v5258_v56, %v5251_v60 }
 0x4d6   : > { %v5266_v30 = vadd.f32 %v5262_v57, %v5252_v4 }
 0x4d7   : > { %v5267_v31 = vmax.f32 %v5265_v29, 0.0 }
 0x4d8   : > { %v5268_v32 = vmax.f32 %v5266_v30, 0.0 }
 0x4d9   : > { %v5270_v63 = vpack.c.bf16 %v5267_v31, %v5267_v31 }
 0x4da   : > { %v5271_v12 = vpack.c.bf16 %v5268_v32, %v5268_v32 }
 0x4dc   : > { %5432 = vmatprep.mubr.bf16.mxu1 %v5271_v12 }
 0x4dd   : > { %5433 = vmatmul.mubr.bf16.vlgmr.msra.gmra.mrb[8].mxu1 %v5270_v63 }
 0x5b0   : > { %v6070_v2 = vpop.f32.mrb[8].mxu1  ;;  %5445 = sbr.rel (%p6040_p11) target bundleno = 2008 (0x7d8), region = 98 }
 0x5b1   : > { %v6071_v34 = vpop.f32.mrb[9].mxu1 }
 0x5b2   : > { %v6072_v33 = vadd.f32 %v6071_v34, %v6070_v2  ;;  %v6073_v37 = vpop.f32.mrb[10].mxu1 }
 0x5b3   : > { %v6074_v38 = vpop.f32.mrb[11].mxu1 }
 0x5b4   : > { %v5440_v39 = vadd.f32 %v6072_v33, %v5269_v8 }
 0x5b6   : > { %5441 = vst [vmem:[#allocation3] sm:$0xff] %v5440_v39 }
 0x5bd   : > { %v5446_v44 = vld [vmem:[#allocation3] sm:$0xff] }
 0x5be   : > { %v5454_v15 = vadd.f32 %v6041_v46, %v5446_v44 }
 0x5c0   : > { %v5455_v36 = vmax.f32 %v5454_v15, 0.0 }
 0x5c2   : > { %v5456_v47 = vpack.c.bf16 %v5455_v36, %v5455_v36 }
 0x5c4   : > { %6102 = vmatmul.mubr.bf16.vlgmr.msra.gmra.mrb[0].mxu0 %v5456_v47 }
 0x697   : > { %v5562_v24 = vpop.f32.mrb[0].mxu0 }
 0x698   : > { %v5563_v40 = vadd.f32 %v6042_v48, %v5562_v24  ;;  %v6103_v49 = vpop.f32.mrb[1].mxu0 }
 0x699   : > { %v5565_v20 = vpop.f32.mrb[2].mxu0 }
 0x69a   : > { %v6104_v50 = vpop.f32.mrb[3].mxu0  ;;  %v5571_v51 = vsel %vm5570_vm7, %v5563_v40, -1e+30 }
 0x69b   : > { %5572 = vmax.xlane.f32.xlu0 %v5571_v51 }
 0x728   : > { %v5573_v53 = vpop.xlane.xlu0 %5572 }
 0x729   : > { %v5574_v54 = vsub.f32 %v5571_v51, %v5573_v53 }
 0x72b   : > { %v5575_v55 = vmul.f32 1.442695, %v5574_v54 }
 0x72d   : > { %6716 = vpow2.f32 %v5575_v55 }
 0x737   : > { %v6717_v0 = vpop.eup %6716 }
 0x738   : > { %5577 = vadd.xlane.f32.xlu0 %v6717_v0 }
 0x7c5   : > { %v5578_v1 = vpop.xlane.xlu0 %5577 }
 0x7c6   : > { %6718 = vlog2.f32 %v5578_v1 }
 0x7d0   : > { %v6719_v45 = vpop.eup %6718 }
 0x7d1   : > { %v5580_v5 = vmul.f32 0.6931472, %v6719_v45 }
 0x7d3   : > { %v5581_v7 = vadd.f32 %v5580_v5, %v5573_v53 }
 0x7d5   : > { %v5582_v10 = vsub.f32 %v5563_v40, %v5581_v7 }
 0x7d7   : > { %5583 = vst [vmem:[%s8383_s8] sm:$0xff] %v5582_v10 }
 0x7d8 PF: > { %p15_p12 = scmp.ge.s32.totalorder %s6816_s9, 5   ;;  %s8384_s27 = smov %s6738_s28 }
 0x7d9   : > { %s8385_s28 = smov %s6825_s12  ;;  %s8386_s29 = smov %s6816_s9 }
 0x7da   :  { %17 = sbr.rel (!%p15_p12) target bundleno = 2 (0x2), region = 135 }

</bundles_post_ra>
